<compile_context>
chip_gen: v7x
topology: tpu7x:2x2x1
jax: 0.10.0
libtpu: 0.0.40
codegen_flags: <defaults>
</compile_context>

<pallas_src>
import functools
import math

import jax
import jax.numpy as jnp
from jax.experimental import pallas as pl
from jax.experimental.pallas import tpu as pltpu


def _layernorm(h, gamma, beta, eps=1e-5):
    mean = jnp.mean(h, axis=-1, keepdims=True)
    var = jnp.mean((h - mean) ** 2, axis=-1, keepdims=True)
    return (h - mean) * jax.lax.rsqrt(var + eps) * gamma + beta


def encoder_layer_kernel(
    x_ref,        # (B, T, D)            f32   (resident, constant block)
    wo_w_ref,     # (D, D)               bf16  (resident, constant block)
    pvec_ref,     # (8, D)               f32   packed: wo_b,ln1_g,ln1_b,b2,ln2_g,ln2_b,pad,pad
    w1_ref,       # (D, hidden_chunk)    bf16  (streamed per grid step)
    b1_ref,       # (1, hidden_chunk)    f32   (streamed per grid step)
    w2_ref,       # (hidden_chunk, D)    bf16  (streamed per grid step)
    o_ref,        # (B, T, D)            f32   (written only on last step)
    h_f32_ref,    # (B*T, D) f32 scratch  — LN1 output for the final residual
    h_bf_ref,     # (B*T, D) bf16 scratch — MXU operand for the FFN
    ffn_acc_ref,  # (B*T, D) f32 scratch  — FFN partial-sum accumulator
    *,
    inv_sqrt_dk,
):
    k = pl.program_id(0)
    nk = pl.num_programs(0)
    B, T, D = x_ref.shape
    BT = B * T

    # ---- attention + Wo + residual + LayerNorm1 : once, on the first step ----
    @pl.when(k == 0)
    def _attn_wo_ln1():
        x = x_ref[...]                                  # (B, T, D) f32
        x2 = x.reshape(BT, D)
        x2_bf = x2.astype(jnp.bfloat16)
        x_bf = x2_bf.reshape(B, T, D)

        # Fold Wo into the value path: (attn @ x) @ Wo == attn @ (x @ Wo).
        # Computed before the softmax so the MXU is busy while EUP/XLU work runs.
        xv = jnp.dot(x2_bf, wo_w_ref[...], preferred_element_type=jnp.float32)
        xv = xv.astype(jnp.bfloat16).reshape(B, T, D)   # (B, T, D) bf16

        # Batched contraction over the feature dim: no explicit transpose of x.
        scores = jnp.einsum(
            "btd,bsd->bts", x_bf, x_bf, preferred_element_type=jnp.float32
        ) * inv_sqrt_dk                                 # (B, T, T) f32
        m = jnp.max(scores, axis=-1, keepdims=True)
        p = jnp.exp(scores - m)
        inv_l = pl.reciprocal(jnp.sum(p, axis=-1, keepdims=True), approx=True)
        attn = (p * inv_l).astype(jnp.bfloat16)         # (B, T, T) bf16

        ctx_proj = jnp.einsum(
            "bts,bsd->btd", attn, xv, preferred_element_type=jnp.float32
        ).reshape(BT, D)                                # (BT, D) f32

        h = _layernorm(
            x2 + ctx_proj + pvec_ref[0:1, :],           # + wo_b
            pvec_ref[1:2, :],                           # ln1_g
            pvec_ref[2:3, :],                           # ln1_b
        )
        h_f32_ref[...] = h
        h_bf_ref[...] = h.astype(jnp.bfloat16)

    # ---- FFN hidden-chunk for this grid step (weights streamed by BlockSpec) ----
    z = (
        jnp.dot(h_bf_ref[...], w1_ref[...], preferred_element_type=jnp.float32)
        + b1_ref[...]
    )
    z = jnp.maximum(z, 0.0).astype(jnp.bfloat16)        # (BT, hidden_chunk)
    partial = jnp.dot(z, w2_ref[...], preferred_element_type=jnp.float32)

    @pl.when(k == 0)
    def _init_acc():            # no zero-init round-trip: write chunk 0 directly
        ffn_acc_ref[...] = partial

    @pl.when(k > 0)
    def _accumulate():
        ffn_acc_ref[...] += partial

    # ---- finalize: + b2, residual, LayerNorm2, store output ----
    @pl.when(k == nk - 1)
    def _finalize():
        y = ffn_acc_ref[...] + pvec_ref[3:4, :]         # + b2
        out = _layernorm(
            h_f32_ref[...] + y,
            pvec_ref[4:5, :],                           # ln2_g
            pvec_ref[5:6, :],                           # ln2_b
        )
        o_ref[...] = out.reshape(B, T, D).astype(o_ref.dtype)


def encoder_layer(x, params, *, keys_dim, heads=1, hidden_chunk=512):
    B, T, D = x.shape
    H = params["w1"].shape[1]
    Dv = params["wo_w"].shape[0]
    assert Dv == D, "reference attention leaves values unprojected -> Dv == D"
    assert H % hidden_chunk == 0
    n_chunks = H // hidden_chunk
    inv_sqrt_dk = 1.0 / math.sqrt(keys_dim / heads)

    # Pack the six (1, D) f32 bias / LayerNorm vectors into one (8, D) slab:
    # a single DMA descriptor instead of six sub-KB transfers.
    pvec = jnp.concatenate(
        [
            params["wo_b"], params["ln1_g"], params["ln1_b"],
            params["b2"], params["ln2_g"], params["ln2_b"],
            jnp.zeros((2, D), jnp.float32),
        ],
        axis=0,
    )

    kernel = functools.partial(encoder_layer_kernel, inv_sqrt_dk=inv_sqrt_dk)

    flops = (
        4 * B * T * T * D          # scores + attn @ xv
        + 2 * B * T * D * Dv       # x @ Wo (folded into value path)
        + 4 * B * T * D * H        # FFN fc1 + fc2
    )
    bytes_accessed = (
        2 * x.size * 4                                                     # x in + out (f32)
        + 2 * (params["wo_w"].size + params["w1"].size + params["w2"].size)  # bf16 weights
        + 4 * (pvec.size + params["b1"].size)                              # f32 vectors
    )

    return pl.pallas_call(
        kernel,
        out_shape=jax.ShapeDtypeStruct((B, T, D), x.dtype),
        grid_spec=pltpu.PrefetchScalarGridSpec(
            num_scalar_prefetch=0,
            grid=(n_chunks,),
            in_specs=[
                pl.BlockSpec((B, T, D), lambda k: (0, 0, 0)),          # x (resident)
                pl.BlockSpec((Dv, D), lambda k: (0, 0)),               # Wo (resident)
                pl.BlockSpec((8, D), lambda k: (0, 0)),                # packed vectors
                pl.BlockSpec((D, hidden_chunk), lambda k: (0, k)),     # W1 slice
                pl.BlockSpec((1, hidden_chunk), lambda k: (0, k)),     # b1 slice
                pl.BlockSpec((hidden_chunk, D), lambda k: (k, 0)),     # W2 slice
            ],
            out_specs=pl.BlockSpec((B, T, D), lambda k: (0, 0, 0)),
            scratch_shapes=[
                pltpu.VMEM((B * T, D), jnp.float32),     # h (f32, for residual)
                pltpu.VMEM((B * T, D), jnp.bfloat16),    # h (bf16, MXU operand)
                pltpu.VMEM((B * T, D), jnp.float32),     # FFN accumulator
            ],
        ),
        compiler_params=pltpu.CompilerParams(
            dimension_semantics=("arbitrary",),
        ),
        cost_estimate=pl.CostEstimate(
            flops=flops,
            transcendentals=B * T * T + 3 * B * T,
            bytes_accessed=bytes_accessed,
        ),
    )(x, params["wo_w"], pvec, params["w1"], params["b1"], params["w2"])


def encoder_layer_ref(x, params, *, keys_dim, heads=1):
    """Pure-JAX f32 reference mirroring the (intended) PyTorch forward."""
    inv_sqrt_dk = 1.0 / math.sqrt(keys_dim / heads)
    scores = jnp.einsum("btd,bsd->bts", x, x) * inv_sqrt_dk
    w = jax.nn.softmax(scores, axis=-1)
    ctx = jnp.einsum("bts,bsd->btd", w, x)
    ctx = ctx @ params["wo_w"].astype(jnp.float32) + params["wo_b"][0]
    h = _layernorm(x + ctx, params["ln1_g"][0], params["ln1_b"][0])
    y = jnp.maximum(h @ params["w1"].astype(jnp.float32) + params["b1"][0], 0.0)
    y = y @ params["w2"].astype(jnp.float32) + params["b2"][0]
    return _layernorm(h + y, params["ln2_g"][0], params["ln2_b"][0])


def init_params(key, model_dim, keys_dim, values_dim, hidden_dim=2048):
    ks = jax.random.split(key, 8)
    scale = 0.02
    params = {
        # Wq/Wk/Wv exist in the module but (per the literal reference forward)
        # never influence the output; kept only for shape fidelity.
        "wq": scale * jax.random.normal(ks[0], (model_dim, keys_dim), jnp.float32),
        "wk": scale * jax.random.normal(ks[1], (model_dim, keys_dim), jnp.float32),
        "wv": scale * jax.random.normal(ks[2], (model_dim, values_dim), jnp.float32),
        # MXU weights stored in bf16: half the DMA bytes, MXU-native dtype.
        "wo_w": (scale * jax.random.normal(
            ks[3], (values_dim, model_dim), jnp.float32)).astype(jnp.bfloat16),
        "wo_b": scale * jax.random.normal(ks[4], (1, model_dim), jnp.float32),
        "ln1_g": jnp.ones((1, model_dim), jnp.float32),
        "ln1_b": jnp.zeros((1, model_dim), jnp.float32),
        "w1": (scale * jax.random.normal(
            ks[5], (model_dim, hidden_dim), jnp.float32)).astype(jnp.bfloat16),
        "b1": scale * jax.random.normal(ks[6], (1, hidden_dim), jnp.float32),
        "w2": (scale * jax.random.normal(
            ks[7], (hidden_dim, model_dim), jnp.float32)).astype(jnp.bfloat16),
        "b2": jnp.zeros((1, model_dim), jnp.float32),
        "ln2_g": jnp.ones((1, model_dim), jnp.float32),
        "ln2_b": jnp.zeros((1, model_dim), jnp.float32),
    }
    return params


if __name__ == "__main__":
    B, T = 2, 128
    model_dim = 128
    keys_dim = 128
    values_dim = 128   # must equal model_dim: reference attention leaves values unprojected
    hidden_dim = 2048  # FFN default in the module

    key = jax.random.PRNGKey(0)
    kx, kp = jax.random.split(key)
    x = jax.random.normal(kx, (B, T, model_dim), jnp.float32)
    params = init_params(kp, model_dim, keys_dim, values_dim, hidden_dim)

    out = encoder_layer(x, params, keys_dim=keys_dim, heads=1, hidden_chunk=512)
    out = jax.block_until_ready(out)

    ref = encoder_layer_ref(x, params, keys_dim=keys_dim, heads=1)
    assert out.shape == (B, T, model_dim)
    # bf16 MXU operands (f32 accumulation) vs pure-f32 reference: loosen tol.
    assert jnp.allclose(out, ref, atol=4e-2, rtol=4e-2), (
        float(jnp.max(jnp.abs(out - ref)))
    )

    print("KERNEL_OK")
</pallas_src>

<mosaic_0001>
module attributes {stable_mosaic.version = 11 : i64} {
  func.func @encoder_layer_kernel(%arg0: i32, %arg1: memref<2x128x128xf32, #tpu.memory_space<vmem>>, %arg2: memref<128x128xbf16, #tpu.memory_space<vmem>>, %arg3: memref<8x128xf32, #tpu.memory_space<vmem>>, %arg4: memref<128x512xbf16, #tpu.memory_space<vmem>>, %arg5: memref<1x512xf32, #tpu.memory_space<vmem>>, %arg6: memref<512x128xbf16, #tpu.memory_space<vmem>>, %arg7: memref<2x128x128xf32, #tpu.memory_space<vmem>>, %arg8: memref<256x128xf32, #tpu.memory_space<vmem>>, %arg9: memref<256x128xbf16, #tpu.memory_space<vmem>>, %arg10: memref<256x128xf32, #tpu.memory_space<vmem>>) attributes {dimension_semantics = [#tpu.dimension_semantics<arbitrary>], iteration_bounds = array<i64: 4>, scalar_prefetch = 0 : i64, scratch_operands = 3 : i64, tpu.core_type = #tpu.core_type<tc>, window_params = [{pipeline_mode = #tpu.pipeline_mode<synchronous>, transform_indices = @transform_0, window_bounds = array<i64: 2, 128, 128>}, {pipeline_mode = #tpu.pipeline_mode<synchronous>, transform_indices = @transform_1, window_bounds = array<i64: 128, 128>}, {pipeline_mode = #tpu.pipeline_mode<synchronous>, transform_indices = @transform_2, window_bounds = array<i64: 8, 128>}, {transform_indices = @transform_3, window_bounds = array<i64: 128, 512>}, {transform_indices = @transform_4, window_bounds = array<i64: 1, 512>}, {transform_indices = @transform_5, window_bounds = array<i64: 512, 128>}, {pipeline_mode = #tpu.pipeline_mode<synchronous>, transform_indices = @transform_6, window_bounds = array<i64: 2, 128, 128>}]} {
    %c0_i32 = arith.constant 0 : i32
    %0 = arith.cmpi eq, %arg0, %c0_i32 : i32
    %1 = arith.extui %0 : i1 to i32
    %c0_i32_0 = arith.constant 0 : i32
    %2 = arith.cmpi ne, %1, %c0_i32_0 : i32
    scf.if %2 {
      %c0_15 = arith.constant 0 : index
      %c0_16 = arith.constant 0 : index
      %c0_17 = arith.constant 0 : index
      %23 = vector.load %arg1[%c0_15, %c0_16, %c0_17] : memref<2x128x128xf32, #tpu.memory_space<vmem>>, vector<2x128x128xf32>
      %24 = vector.shape_cast %23 : vector<2x128x128xf32> to vector<256x128xf32>
      %25 = arith.truncf %24 : vector<256x128xf32> to vector<256x128xbf16>
      %26 = vector.shape_cast %25 : vector<256x128xbf16> to vector<2x128x128xbf16>
      %c0_18 = arith.constant 0 : index
      %c0_19 = arith.constant 0 : index
      %27 = vector.load %arg2[%c0_18, %c0_19] : memref<128x128xbf16, #tpu.memory_space<vmem>>, vector<128x128xbf16>
      %cst_20 = arith.constant dense<0.000000e+00> : vector<256x128xf32>
      %28 = tpu.matmul %25, %27, %cst_20 {dimension_numbers = #tpu.dot_dimension_numbers<[1], [0], [0], [1], [0, 0, 1, 1], [], []>} : vector<256x128xbf16>, vector<128x128xbf16>, vector<256x128xf32> -> vector<256x128xf32>
      %29 = arith.truncf %28 : vector<256x128xf32> to vector<256x128xbf16>
      %30 = vector.shape_cast %29 : vector<256x128xbf16> to vector<2x128x128xbf16>
      "tpu.trace_start"() <{level = 10 : i32, message = "btd,bsd->bts"}> : () -> ()
      %cst_21 = arith.constant dense<0.000000e+00> : vector<2x128x128xf32>
      %31 = tpu.matmul %26, %26, %cst_21 {dimension_numbers = #tpu.dot_dimension_numbers<[2], [2], [1], [1], [0, 0, 0, 1, 1, 1], [0], [0]>} : vector<2x128x128xbf16>, vector<2x128x128xbf16>, vector<2x128x128xf32> -> vector<2x128x128xf32>
      "tpu.trace_stop"() : () -> ()
      %cst_22 = arith.constant 0.0883883461 : f32
      %32 = vector.broadcast %cst_22 : f32 to vector<2x128x128xf32>
      %33 = arith.mulf %31, %32 : vector<2x128x128xf32>
      %cst_23 = arith.constant dense<0xFF800000> : vector<2x128xf32>
      %34 = vector.multi_reduction <maximumf>, %33, %cst_23 [2] : vector<2x128x128xf32> to vector<2x128xf32>
      %35 = vector.shape_cast %34 : vector<2x128xf32> to vector<2x128x1xf32>
      %36 = vector.broadcast %35 : vector<2x128x1xf32> to vector<2x128x128xf32>
      %37 = arith.subf %33, %36 : vector<2x128x128xf32>
      %38 = math.exp %37 : vector<2x128x128xf32>
      %cst_24 = arith.constant dense<0.000000e+00> : vector<2x128xf32>
      %39 = vector.multi_reduction <add>, %38, %cst_24 [2] : vector<2x128x128xf32> to vector<2x128xf32>
      %40 = vector.shape_cast %39 : vector<2x128xf32> to vector<2x128x1xf32>
      %41 = tpu.reciprocal %40 {approx = true} : vector<2x128x1xf32> -> vector<2x128x1xf32>
      %42 = vector.broadcast %41 : vector<2x128x1xf32> to vector<2x128x128xf32>
      %43 = arith.mulf %38, %42 : vector<2x128x128xf32>
      %44 = arith.truncf %43 : vector<2x128x128xf32> to vector<2x128x128xbf16>
      "tpu.trace_start"() <{level = 10 : i32, message = "bts,bsd->btd"}> : () -> ()
      %cst_25 = arith.constant dense<0.000000e+00> : vector<2x128x128xf32>
      %45 = tpu.matmul %44, %30, %cst_25 {dimension_numbers = #tpu.dot_dimension_numbers<[2], [1], [1], [2], [0, 0, 0, 1, 1, 2], [0], [0]>} : vector<2x128x128xbf16>, vector<2x128x128xbf16>, vector<2x128x128xf32> -> vector<2x128x128xf32>
      "tpu.trace_stop"() : () -> ()
      %46 = vector.shape_cast %45 : vector<2x128x128xf32> to vector<256x128xf32>
      %47 = arith.addf %24, %46 : vector<256x128xf32>
      %c0_26 = arith.constant 0 : index
      %c0_27 = arith.constant 0 : index
      %48 = vector.load %arg3[%c0_26, %c0_27] : memref<8x128xf32, #tpu.memory_space<vmem>>, vector<1x128xf32>
      %49 = vector.broadcast %48 : vector<1x128xf32> to vector<256x128xf32>
      %50 = arith.addf %47, %49 : vector<256x128xf32>
      %c1 = arith.constant 1 : index
      %c0_28 = arith.constant 0 : index
      %51 = vector.load %arg3[%c1, %c0_28] : memref<8x128xf32, #tpu.memory_space<vmem>>, vector<1x128xf32>
      %c2 = arith.constant 2 : index
      %c0_29 = arith.constant 0 : index
      %52 = vector.load %arg3[%c2, %c0_29] : memref<8x128xf32, #tpu.memory_space<vmem>>, vector<1x128xf32>
      %cst_30 = arith.constant dense<0.000000e+00> : vector<256xf32>
      %53 = vector.multi_reduction <add>, %50, %cst_30 [1] : vector<256x128xf32> to vector<256xf32>
      %54 = vector.shape_cast %53 : vector<256xf32> to vector<256x1xf32>
      %cst_31 = arith.constant 1.280000e+02 : f32
      %55 = vector.broadcast %cst_31 : f32 to vector<256x1xf32>
      %56 = arith.divf %54, %55 : vector<256x1xf32>
      %57 = vector.broadcast %56 : vector<256x1xf32> to vector<256x128xf32>
      %58 = arith.subf %50, %57 : vector<256x128xf32>
      %59 = arith.mulf %58, %58 : vector<256x128xf32>
      %cst_32 = arith.constant dense<0.000000e+00> : vector<256xf32>
      %60 = vector.multi_reduction <add>, %59, %cst_32 [1] : vector<256x128xf32> to vector<256xf32>
      %61 = vector.shape_cast %60 : vector<256xf32> to vector<256x1xf32>
      %cst_33 = arith.constant 1.280000e+02 : f32
      %62 = vector.broadcast %cst_33 : f32 to vector<256x1xf32>
      %63 = arith.divf %61, %62 : vector<256x1xf32>
      %64 = vector.broadcast %56 : vector<256x1xf32> to vector<256x128xf32>
      %65 = arith.subf %50, %64 : vector<256x128xf32>
      %cst_34 = arith.constant 9.99999974E-6 : f32
      %66 = vector.broadcast %cst_34 : f32 to vector<256x1xf32>
      %67 = arith.addf %63, %66 : vector<256x1xf32>
      %68 = math.rsqrt %67 : vector<256x1xf32>
      %69 = vector.broadcast %68 : vector<256x1xf32> to vector<256x128xf32>
      %70 = arith.mulf %65, %69 : vector<256x128xf32>
      %71 = vector.broadcast %51 : vector<1x128xf32> to vector<256x128xf32>
      %72 = arith.mulf %70, %71 : vector<256x128xf32>
      %73 = vector.broadcast %52 : vector<1x128xf32> to vector<256x128xf32>
      %74 = arith.addf %72, %73 : vector<256x128xf32>
      %c0_35 = arith.constant 0 : index
      %c0_36 = arith.constant 0 : index
      %75 = vector.load %arg8[%c0_35, %c0_36] : memref<256x128xf32, #tpu.memory_space<vmem>>, vector<256x128xf32>
      tpu.vector_store %arg8[%c0_35, %c0_36], %74 {strides = array<i32>} : memref<256x128xf32, #tpu.memory_space<vmem>>, vector<256x128xf32>,
      %76 = arith.truncf %74 : vector<256x128xf32> to vector<256x128xbf16>
      %c0_37 = arith.constant 0 : index
      %c0_38 = arith.constant 0 : index
      %77 = vector.load %arg9[%c0_37, %c0_38] : memref<256x128xbf16, #tpu.memory_space<vmem>>, vector<256x128xbf16>
      tpu.vector_store %arg9[%c0_37, %c0_38], %76 {strides = array<i32>} : memref<256x128xbf16, #tpu.memory_space<vmem>>, vector<256x128xbf16>,
    } else {
    }
    %c0 = arith.constant 0 : index
    %c0_1 = arith.constant 0 : index
    %3 = vector.load %arg9[%c0, %c0_1] : memref<256x128xbf16, #tpu.memory_space<vmem>>, vector<256x128xbf16>
    %c0_2 = arith.constant 0 : index
    %c0_3 = arith.constant 0 : index
    %4 = vector.load %arg4[%c0_2, %c0_3] : memref<128x512xbf16, #tpu.memory_space<vmem>>, vector<128x512xbf16>
    %cst = arith.constant dense<0.000000e+00> : vector<256x512xf32>
    %5 = tpu.matmul %3, %4, %cst {dimension_numbers = #tpu.dot_dimension_numbers<[1], [0], [0], [1], [0, 0, 1, 1], [], []>} : vector<256x128xbf16>, vector<128x512xbf16>, vector<256x512xf32> -> vector<256x512xf32>
    %c0_4 = arith.constant 0 : index
    %c0_5 = arith.constant 0 : index
    %6 = vector.load %arg5[%c0_4, %c0_5] : memref<1x512xf32, #tpu.memory_space<vmem>>, vector<1x512xf32>
    %7 = vector.broadcast %6 : vector<1x512xf32> to vector<256x512xf32>
    %8 = arith.addf %5, %7 : vector<256x512xf32>
    %cst_6 = arith.constant 0.000000e+00 : f32
    %9 = vector.broadcast %cst_6 : f32 to vector<256x512xf32>
    %10 = arith.maximumf %8, %9 : vector<256x512xf32>
    %11 = arith.truncf %10 : vector<256x512xf32> to vector<256x512xbf16>
    %c0_7 = arith.constant 0 : index
    %c0_8 = arith.constant 0 : index
    %12 = vector.load %arg6[%c0_7, %c0_8] : memref<512x128xbf16, #tpu.memory_space<vmem>>, vector<512x128xbf16>
    %cst_9 = arith.constant dense<0.000000e+00> : vector<256x128xf32>
    %13 = tpu.matmul %11, %12, %cst_9 {dimension_numbers = #tpu.dot_dimension_numbers<[1], [0], [0], [1], [0, 0, 1, 1], [], []>} : vector<256x512xbf16>, vector<512x128xbf16>, vector<256x128xf32> -> vector<256x128xf32>
    %c0_i32_10 = arith.constant 0 : i32
    %14 = arith.cmpi eq, %arg0, %c0_i32_10 : i32
    %15 = arith.extui %14 : i1 to i32
    %c0_i32_11 = arith.constant 0 : i32
    %16 = arith.cmpi ne, %15, %c0_i32_11 : i32
    scf.if %16 {
      %c0_15 = arith.constant 0 : index
      %c0_16 = arith.constant 0 : index
      %23 = vector.load %arg10[%c0_15, %c0_16] : memref<256x128xf32, #tpu.memory_space<vmem>>, vector<256x128xf32>
      tpu.vector_store %arg10[%c0_15, %c0_16], %13 {strides = array<i32>} : memref<256x128xf32, #tpu.memory_space<vmem>>, vector<256x128xf32>,
    } else {
    }
    %c0_i32_12 = arith.constant 0 : i32
    %17 = arith.cmpi sgt, %arg0, %c0_i32_12 : i32
    %18 = arith.extui %17 : i1 to i32
    %c0_i32_13 = arith.constant 0 : i32
    %19 = arith.cmpi ne, %18, %c0_i32_13 : i32
    scf.if %19 {
      %c0_15 = arith.constant 0 : index
      %c0_16 = arith.constant 0 : index
      %23 = vector.load %arg10[%c0_15, %c0_16] : memref<256x128xf32, #tpu.memory_space<vmem>>, vector<256x128xf32>
      %24 = arith.addf %23, %13 : vector<256x128xf32>
      %c0_17 = arith.constant 0 : index
      %c0_18 = arith.constant 0 : index
      %25 = vector.load %arg10[%c0_17, %c0_18] : memref<256x128xf32, #tpu.memory_space<vmem>>, vector<256x128xf32>
      tpu.vector_store %arg10[%c0_17, %c0_18], %24 {strides = array<i32>} : memref<256x128xf32, #tpu.memory_space<vmem>>, vector<256x128xf32>,
    } else {
    }
    %c3_i32 = arith.constant 3 : i32
    %20 = arith.cmpi eq, %arg0, %c3_i32 : i32
    %21 = arith.extui %20 : i1 to i32
    %c0_i32_14 = arith.constant 0 : i32
    %22 = arith.cmpi ne, %21, %c0_i32_14 : i32
    scf.if %22 {
      %c0_15 = arith.constant 0 : index
      %c0_16 = arith.constant 0 : index
      %23 = vector.load %arg10[%c0_15, %c0_16] : memref<256x128xf32, #tpu.memory_space<vmem>>, vector<256x128xf32>
      %c3 = arith.constant 3 : index
      %c0_17 = arith.constant 0 : index
      %24 = vector.load %arg3[%c3, %c0_17] : memref<8x128xf32, #tpu.memory_space<vmem>>, vector<1x128xf32>
      %25 = vector.broadcast %24 : vector<1x128xf32> to vector<256x128xf32>
      %26 = arith.addf %23, %25 : vector<256x128xf32>
      %c0_18 = arith.constant 0 : index
      %c0_19 = arith.constant 0 : index
      %27 = vector.load %arg8[%c0_18, %c0_19] : memref<256x128xf32, #tpu.memory_space<vmem>>, vector<256x128xf32>
      %28 = arith.addf %27, %26 : vector<256x128xf32>
      %c4 = arith.constant 4 : index
      %c0_20 = arith.constant 0 : index
      %29 = vector.load %arg3[%c4, %c0_20] : memref<8x128xf32, #tpu.memory_space<vmem>>, vector<1x128xf32>
      %c5 = arith.constant 5 : index
      %c0_21 = arith.constant 0 : index
      %30 = vector.load %arg3[%c5, %c0_21] : memref<8x128xf32, #tpu.memory_space<vmem>>, vector<1x128xf32>
      %cst_22 = arith.constant dense<0.000000e+00> : vector<256xf32>
      %31 = vector.multi_reduction <add>, %28, %cst_22 [1] : vector<256x128xf32> to vector<256xf32>
      %32 = vector.shape_cast %31 : vector<256xf32> to vector<256x1xf32>
      %cst_23 = arith.constant 1.280000e+02 : f32
      %33 = vector.broadcast %cst_23 : f32 to vector<256x1xf32>
      %34 = arith.divf %32, %33 : vector<256x1xf32>
      %35 = vector.broadcast %34 : vector<256x1xf32> to vector<256x128xf32>
      %36 = arith.subf %28, %35 : vector<256x128xf32>
      %37 = arith.mulf %36, %36 : vector<256x128xf32>
      %cst_24 = arith.constant dense<0.000000e+00> : vector<256xf32>
      %38 = vector.multi_reduction <add>, %37, %cst_24 [1] : vector<256x128xf32> to vector<256xf32>
      %39 = vector.shape_cast %38 : vector<256xf32> to vector<256x1xf32>
      %cst_25 = arith.constant 1.280000e+02 : f32
      %40 = vector.broadcast %cst_25 : f32 to vector<256x1xf32>
      %41 = arith.divf %39, %40 : vector<256x1xf32>
      %42 = vector.broadcast %34 : vector<256x1xf32> to vector<256x128xf32>
      %43 = arith.subf %28, %42 : vector<256x128xf32>
      %cst_26 = arith.constant 9.99999974E-6 : f32
      %44 = vector.broadcast %cst_26 : f32 to vector<256x1xf32>
      %45 = arith.addf %41, %44 : vector<256x1xf32>
      %46 = math.rsqrt %45 : vector<256x1xf32>
      %47 = vector.broadcast %46 : vector<256x1xf32> to vector<256x128xf32>
      %48 = arith.mulf %43, %47 : vector<256x128xf32>
      %49 = vector.broadcast %29 : vector<1x128xf32> to vector<256x128xf32>
      %50 = arith.mulf %48, %49 : vector<256x128xf32>
      %51 = vector.broadcast %30 : vector<1x128xf32> to vector<256x128xf32>
      %52 = arith.addf %50, %51 : vector<256x128xf32>
      %53 = vector.shape_cast %52 : vector<256x128xf32> to vector<2x128x128xf32>
      %c0_27 = arith.constant 0 : index
      %c0_28 = arith.constant 0 : index
      %c0_29 = arith.constant 0 : index
      %54 = vector.load %arg7[%c0_27, %c0_28, %c0_29] : memref<2x128x128xf32, #tpu.memory_space<vmem>>, vector<2x128x128xf32>
      tpu.vector_store %arg7[%c0_27, %c0_28, %c0_29], %53 {strides = array<i32>} : memref<2x128x128xf32, #tpu.memory_space<vmem>>, vector<2x128x128xf32>,
    } else {
    }
    return
  }
  func.func @transform_0(%arg0: i32) -> (i32, i32, i32) {
    %c0_i32 = arith.constant 0 : i32
    %c0_i32_0 = arith.constant 0 : i32
    %c0_i32_1 = arith.constant 0 : i32
    %c0_i32_2 = arith.constant 0 : i32
    return %c0_i32, %c0_i32_0, %c0_i32_1 : i32, i32, i32
  }
  func.func @transform_1(%arg0: i32) -> (i32, i32) {
    %c0_i32 = arith.constant 0 : i32
    %c0_i32_0 = arith.constant 0 : i32
    %c0_i32_1 = arith.constant 0 : i32
    return %c0_i32, %c0_i32_0 : i32, i32
  }
  func.func @transform_2(%arg0: i32) -> (i32, i32) {
    %c0_i32 = arith.constant 0 : i32
    %c0_i32_0 = arith.constant 0 : i32
    %c0_i32_1 = arith.constant 0 : i32
    return %c0_i32, %c0_i32_0 : i32, i32
  }
  func.func @transform_3(%arg0: i32) -> (i32, i32) {
    %c0_i32 = arith.constant 0 : i32
    %c0_i32_0 = arith.constant 0 : i32
    return %c0_i32, %arg0 : i32, i32
  }
  func.func @transform_4(%arg0: i32) -> (i32, i32) {
    %c0_i32 = arith.constant 0 : i32
    %c0_i32_0 = arith.constant 0 : i32
    return %c0_i32, %arg0 : i32, i32
  }
  func.func @transform_5(%arg0: i32) -> (i32, i32) {
    %c0_i32 = arith.constant 0 : i32
    %c0_i32_0 = arith.constant 0 : i32
    return %arg0, %c0_i32 : i32, i32
  }
  func.func @transform_6(%arg0: i32) -> (i32, i32, i32) {
    %c0_i32 = arith.constant 0 : i32
    %c0_i32_0 = arith.constant 0 : i32
    %c0_i32_1 = arith.constant 0 : i32
    %c0_i32_2 = arith.constant 0 : i32
    return %c0_i32, %c0_i32_0, %c0_i32_1 : i32, i32, i32
  }
}

</mosaic_0001>

<bundles_post_ra>
// kernel: tpu_custom_call.1
= control target key start
LH: loop header
LB: loop body
LE: loop exit
PB: predicated region body
PF: predicated region fallthrough
CT: control target
= control target key end

     0   :  { %s7384_s0 = inlined_call_operand.hbm [shape: f32[2,128,128], index: 0, kind: input, shape index: {}]   ;;  %s7385_s1 = inlined_call_operand.hbm [shape: bf16[128,128], index: 1, kind: input, shape index: {}]   ;;  %s7386_s2 = inlined_call_operand.hbm [shape: f32[8,128], index: 2, kind: input, shape index: {}]   ;;  %s7387_s3 = inlined_call_operand.hbm [shape: bf16[128,2048], index: 3, kind: input, shape index: {}]   ;;  %s7388_s4 = inlined_call_operand.hbm [shape: f32[1,2048], index: 4, kind: input, shape index: {}]   ;;  %s7389_s5 = inlined_call_operand.hbm [shape: bf16[2048,128], index: 5, kind: input, shape index: {}]   ;;  %s7390_s6 = inlined_call_operand.hbm [shape: f32[2,128,128], index: 6, kind: output, shape index: {}]  }
   0x1   :  { %7409 = sst [smem:[#allocation25_spill]] %s7385_s1 }
   0x2   :  { %7410 = sst [smem:[#allocation26_spill]] %s7387_s3 }
   0x3   :  { %7411 = sst [smem:[#allocation27_spill]] %s7390_s6 }
   0x4   :  { %11 = vsyncpa [#allocation6], 0 }
   0x5   :  { %12 = vsyncpa [#allocation9], 0 }
   0x6   :  { %13 = vsyncpa [#allocation12], 0 }
   0x7   :  { %15 = vsyncpa [#allocation12 + $0x1], 0 }
   0x8   :  { %16 = vsyncpa [#allocation15], 0 }
   0x9   :  { %18 = vsyncpa [#allocation15 + $0x1], 0 }
   0xa   :  { %19 = vsyncpa [#allocation7], 0  ;;  %s5598_s21 = smov 0   ;;  %s5600_s22 = smov 0  }
   0xb   :  { %s5602_s23 = smov 0   ;;  %s5604_s24 = smov 0  }
   0xc LB: > { %7412 = sst [smem:[#allocation22_spill]] %s5540_s23  ;;  %s5617_s25 = sadd.s32 4294967295, %s5544_s24   ;;  %s5544_s24 = sphi %s5604_s24, %s7442_s24   ;;  %s5540_s23 = sphi %s5602_s23, %s7444_s23   ;;  %s5536_s22 = sphi %s5600_s22, %s7446_s22   ;;  %s5532_s21 = sphi %s5598_s21, %s7445_s21  }
   0xd   : > { %s5620_s26 = sadd.s32 1, %s5544_s24   ;;  %s95_s28 = sadd.s32 1, %s5540_s23 }
   0xe   : > { %7413 = sst [smem:[#allocation23_spill]] %s5620_s26  ;;  %s92_s27 = ssub.s32 %s5544_s24, %s5620_s26 }
   0xf   : > { %p93_p0 = scmp.eq.s32.totalorder %s92_s27, 0  ;;  %p102_p1 = scmp.ne.s32.totalorder %s5540_s23, %s5536_s22 }
  0x10   : > { %p103_p2 = scmp.eq.s32.totalorder %s5544_s24, 0  ;;  %p108_p3 = scmp.ne.s32.totalorder %s5536_s22, %s5532_s21 }
  0x11   : > { %s5630_s29 = scalar_select %p93_p0, %s5540_s23, %s95_s28  }
  0x12   : > { %p5632_p4 = por %p103_p2, %p102_p1  ;;  %p7391_p5 = scmp.eq.s32.totalorder %s5617_s25, 0 }
  0x13   : > { %7414 = sst [smem:[#allocation24_spill]] %s5630_s29  ;;  %p4207_p6 = scmp.ge.s32.totalorder %s5544_s24, 1 }
  0x14   : > { %p192_p7 = scmp.lt.s32.totalorder %s5544_s24, 5  ;;  %p5641_p8 = por %p7391_p5, %p108_p3 }
  0x15   : > { %s5546_s9 = smov [#allocation8]   ;;  %p4866_p13 = scmp.lt.s32.totalorder %s5544_s24, 4 }
  0x16   : > { %s7416_s7 = scalar_select %p5641_p8, 1, 0 }
  0x17   : > { %p5646_p10 = pnand %p4207_p6, %p192_p7  ;;  %s217_s10 = sshll.u32 %s5546_s9, 4  ;;  %s218_s10 = int_to_ptr.vmem [resolvable:$true] %s217_s10 }
  0x18   : > { %s242_s12 = sand.u32 1, %s5544_s24   ;;  %s5661_s13 = sand.u32 1, %s5540_s23  }
  0x19   : > { %s7417_s8 = scalar_select %p5646_p10, 1, 0 }
  0x1a   : > { %p4843_p11 = pneg %p5646_p10  ;;  %p5665_p0 = pnand %p4866_p13, %p5632_p4 }
  0x1b   : > { %s7420_s1 = sld [smem:[#allocation25_spill]] }
  0x1c   : > { %p5654_p12 = pnand %p4843_p11, %p7391_p5 }
  0x1d   : > { %s7419_s14 = scalar_select %p5665_p0, 1, 0 }
  0x1e   : > { %s7418_s11 = scalar_select %p5654_p12, 1, 0 }
  0x1f   : > { %p5677_p2 = pneg %p5654_p12 }
  0x21   : > { %s5294_s17 = scalar_lea.hbm %s7420_s1, 1024 }
  0x22   : > { %p5295_p1 = scmp.ne.s32.totalorder %s7420_s1, %s5294_s17  ;;  %p5301_p6 = scmp.lt.u32.totalorder %s5294_s17, %s7420_s1 }
  0x23   : > { %s7421_s20 = scalar_select %p5677_p2, 1, 0 }
  0x24   : > { %p5297_p3 = pnand %p5677_p2, %p5295_p1 }
  0x26   : > { %p5298_p4 = pneg %p5297_p3 }
  0x28   : > { %p5303_p7 = pnand %p5301_p6, %p5298_p4 }
  0x2a   : > { %5306 = shalt.err (!%p5303_p7)
}
  0x2b   : > { %s5307_s28 = scalar_lea.vmem %s218_s10, 1024  ;;  %p5315_p5 = scmp.lt.s32.totalorder %s218_s10, %s218_s10 }
  0x2c   : > { %p5308_p11 = scmp.ne.s32.totalorder %s218_s10, %s5307_s28  ;;  %p5316_p8 = scmp.lt.s32.totalorder %s5307_s28, %s5307_s28 }
  0x2e   : > { %p5310_p13 = pnand %p5308_p11, %p5677_p2  ;;  %p5317_p10 = por %p5316_p8, %p5315_p5 }
  0x30   : > { %p5311_p9 = pneg %p5310_p13 }
  0x32   : > { %p5318_p0 = pnand %p5317_p10, %p5311_p9 }
  0x34   : > { %5321 = shalt.err (!%p5318_p0)
}
  0x35   : > { %s7400_s30 = smov 64   ;;  %s7401_s9 = smov 4  }
  0x36   : > { %4849 = dma.hbm_to_vmem [thread:$0]  (!%p5654_p12), %s7420_s1, 1024, %s218_s10, [#allocation9], %s7400_s30, %s7400_s30, %s7401_s9  }
  0x37   : > { %s7402_s17 = sshll.u32 %s5661_s13, 8  ;;  %s4314_s18 = sshll.u32 %s5544_s24, 8 }
  0x38   : > { %s7422_s3 = sld [smem:[#allocation26_spill]]  ;;  %s246_s28 = scalar_lea.vmem [#allocation11], %s7402_s17 }
  0x39   : > { %s253_s29 = sshll.u32 %s246_s28, 4  ;;  %s5707_s23 = scalar_lea.sflag [#allocation12], %s242_s12  ;;  %s5705_s29 = int_to_ptr.vmem [resolvable:$true] %s253_s29 }
  0x3a   : > { %p7423_p8 = scmp.ne.s32.totalorder %s7419_s14, 0 }
  0x3c   : > { %p5713_p9 = pneg %p7423_p8 }
  0x3e   : > { %s5701_s27 = scalar_lea.hbm %s7422_s3, %s4314_s18  ;;  %s5327_s19 = scalar_lea.hbm %s7422_s3, 16384 }
  0x3f   : > { %s5322_s15 = scalar_lea.hbm %s5701_s27, 4096  ;;  %p5328_p1 = scmp.lt.u32.totalorder %s5701_s27, %s7422_s3 }
  0x40   : > { %p5323_p5 = scmp.ne.s32.totalorder %s5701_s27, %s5322_s15  ;;  %p5329_p3 = scmp.lt.u32.totalorder %s5327_s19, %s5322_s15 }
  0x41   : > { %s7424_s10 = scalar_select %p5713_p9, 1, 0 }
  0x42   : > { %p5325_p10 = pnand %p5713_p9, %p5323_p5  ;;  %p5330_p4 = por %p5329_p3, %p5328_p1 }
  0x43   : > { %p5331_p6 = scmp.lt.u32.totalorder %s5322_s15, %s5701_s27 }
  0x44   : > { %p5326_p0 = pneg %p5325_p10 }
  0x45   : > { %p5332_p7 = por %p5331_p6, %p5330_p4 }
  0x47   : > { %p5333_p11 = pnand %p5332_p7, %p5326_p0 }
  0x49   : > { %5336 = shalt.err (!%p5333_p11)
}
  0x4a   : > { %s5337_s12 = scalar_lea.vmem %s5705_s29, 4096  ;;  %s5549_s16 = smov [#allocation11]  }
  0x4b   : > { %p5338_p13 = scmp.ne.s32.totalorder %s5705_s29, %s5337_s12  ;;  %s5342_s18 = sshll.u32 %s5549_s16, 4  ;;  %s5343_s18 = int_to_ptr.vmem [resolvable:$false] %s5342_s18 }
  0x4c   : > { %s5344_s21 = scalar_lea.vmem %s5343_s18, 8192  ;;  %p5345_p12 = scmp.lt.s32.totalorder %s5705_s29, %s5343_s18 }
  0x4d   : > { %p5340_p5 = pnand %p5338_p13, %p5713_p9  ;;  %p5346_p2 = scmp.lt.s32.totalorder %s5344_s21, %s5337_s12 }
  0x4f   : > { %p5341_p10 = pneg %p5340_p5  ;;  %p5347_p1 = por %p5346_p2, %p5345_p12 }
  0x51   : > { %p5348_p3 = pnand %p5347_p1, %p5341_p10 }
  0x53   : > { %5351 = shalt.err (!%p5348_p3)
}
  0x54   : > { %s5550_s15 = smov 1024   ;;  %s5551_s19 = smov 256  }
  0x55   : > { %s5552_s28 = smov 16   ;;  %s5553_s30 = smov [#allocation5]  }
  0x56   : > { %4856 = dma.hbm_to_vmem [thread:$0]  (!%p7423_p8), %s5701_s27, 4096, %s5705_s29, %s5707_s23, %s5550_s15, %s5551_s19, %s5552_s28  }
  0x57   : > { %s204_s9 = sshll.u32 %s5553_s30, 4  ;;  %s5352_s12 = scalar_lea.hbm %s7384_s0, 4096  ;;  %s205_s9 = int_to_ptr.vmem [resolvable:$true] %s204_s9 }
  0x58   : > { %p5353_p12 = scmp.ne.s32.totalorder %s7384_s0, %s5352_s12  ;;  %p7425_p2 = scmp.ne.s32.totalorder %s7421_s20, 0 }
  0x59   : > { %p5359_p6 = scmp.lt.u32.totalorder %s5352_s12, %s7384_s0 }
  0x5a   : > { %p5355_p0 = pnand %p5353_p12, %p7425_p2 }
  0x5c   : > { %p5356_p4 = pneg %p5355_p0 }
  0x5e   : > { %p5361_p7 = pnand %p5359_p6, %p5356_p4 }
  0x60   : > { %5364 = shalt.err (!%p5361_p7)
}
  0x61   : > { %s5365_s29 = scalar_lea.vmem %s205_s9, 4096  ;;  %p5373_p10 = scmp.lt.s32.totalorder %s205_s9, %s205_s9 }
  0x62   : > { %p5366_p11 = scmp.ne.s32.totalorder %s205_s9, %s5365_s29  ;;  %p5374_p1 = scmp.lt.s32.totalorder %s5365_s29, %s5365_s29 }
  0x64   : > { %p5368_p13 = pnand %p5366_p11, %p7425_p2  ;;  %p5375_p3 = por %p5374_p1, %p5373_p10 }
  0x66   : > { %p5369_p5 = pneg %p5368_p13 }
  0x68   : > { %p5376_p8 = pnand %p5375_p3, %p5369_p5 }
  0x6a   : > { %5379 = shalt.err (!%p5376_p8)
}
  0x6b   : > { %s5554_s30 = smov 128   ;;  %s5555_s1 = smov 8  }
  0x6c   : > { %p7426_p12 = scmp.ne.s32.totalorder %s7418_s11, 0  ;;  %s4215_s27 = sshll.u32 %s5661_s13, 2 }
  0x6d   : > { %s5556_s15 = smov [#allocation10]   ;;  %s4315_s28 = sshll.u32 %s5544_s24, 6 }
  0x6e   : > { %4846 = dma.hbm_to_vmem [thread:$0]  (!%p7426_p12), %s7384_s0, 4096, %s205_s9, [#allocation6], %s5554_s30, %s5554_s30, %s5555_s1  }
  0x6f   : > { %s231_s19 = sshll.u32 %s5556_s15, 4  ;;  %s5380_s18 = scalar_lea.hbm %s7386_s2, 128  ;;  %s232_s19 = int_to_ptr.vmem [resolvable:$true] %s231_s19 }
  0x70   : > { %p5381_p8 = scmp.ne.s32.totalorder %s7386_s2, %s5380_s18  ;;  %p5387_p6 = scmp.lt.u32.totalorder %s5380_s18, %s7386_s2 }
  0x72   : > { %p5383_p0 = pnand %p5381_p8, %p7425_p2 }
  0x74   : > { %p5384_p4 = pneg %p5383_p0 }
  0x76   : > { %p5389_p7 = pnand %p5387_p6, %p5384_p4 }
  0x78   : > { %5392 = shalt.err (!%p5389_p7)
}
  0x79   : > { %s5393_s9 = scalar_lea.vmem %s232_s19, 128  ;;  %p5401_p10 = scmp.lt.s32.totalorder %s232_s19, %s232_s19 }
  0x7a   : > { %p5394_p11 = scmp.ne.s32.totalorder %s232_s19, %s5393_s9  ;;  %p5402_p1 = scmp.lt.s32.totalorder %s5393_s9, %s5393_s9 }
  0x7c   : > { %p5396_p13 = pnand %p5394_p11, %p7425_p2  ;;  %p5403_p3 = por %p5402_p1, %p5401_p10 }
  0x7e   : > { %p5397_p5 = pneg %p5396_p13 }
  0x80   : > { %p5404_p9 = pnand %p5403_p3, %p5397_p5 }
  0x82   : > { %5407 = shalt.err (!%p5404_p9)
}
  0x83   : > { %4852 = dma.hbm_to_vmem [thread:$0]  (!%p7426_p12), %s7386_s2, 128, %s232_s19, [#allocation9]  }
  0x84   : > { %s5778_s3 = scalar_lea.hbm %s7388_s4, %s4315_s28  ;;  %s267_s20 = scalar_lea.vmem [#allocation13], %s4215_s27 }
  0x85   : > { %s275_s17 = sshll.u32 %s267_s20, 4  ;;  %s5408_s15 = scalar_lea.hbm %s5778_s3, 64  ;;  %s276_s17 = int_to_ptr.vmem [resolvable:$true] %s275_s17 }
  0x86   : > { %p5409_p9 = scmp.ne.s32.totalorder %s5778_s3, %s5408_s15  ;;  %p7427_p2 = scmp.ne.s32.totalorder %s7424_s10, 0 }
  0x87   : > { %s5413_s19 = scalar_lea.hbm %s7388_s4, 256  ;;  %p5414_p12 = scmp.lt.u32.totalorder %s5778_s3, %s7388_s4 }
  0x88   : > { %p5411_p8 = pnand %p5409_p9, %p7427_p2  ;;  %p5415_p4 = scmp.lt.u32.totalorder %s5413_s19, %s5408_s15 }
  0x89   : > { %p5417_p7 = scmp.lt.u32.totalorder %s5408_s15, %s5778_s3 }
  0x8a   : > { %p5412_p0 = pneg %p5411_p8  ;;  %p5416_p6 = por %p5415_p4, %p5414_p12 }
  0x8c   : > { %p5418_p11 = por %p5417_p7, %p5416_p6 }
  0x8e   : > { %p5419_p13 = pnand %p5418_p11, %p5412_p0 }
  0x90   : > { %5422 = shalt.err (!%p5419_p13)
}
  0x91   : > { %s5423_s27 = scalar_lea.vmem %s276_s17, 64  ;;  %s5557_s28 = smov [#allocation13]  }
  0x92   : > { %p5424_p5 = scmp.ne.s32.totalorder %s276_s17, %s5423_s27  ;;  %s5428_s21 = sshll.u32 %s5557_s28, 4  ;;  %s5429_s21 = int_to_ptr.vmem [resolvable:$false] %s5428_s21 }
  0x93   : > { %s5430_s29 = scalar_lea.vmem %s5429_s21, 128  ;;  %p5431_p3 = scmp.lt.s32.totalorder %s276_s17, %s5429_s21 }
  0x94   : > { %p5426_p10 = pnand %p5424_p5, %p7427_p2  ;;  %p5432_p9 = scmp.lt.s32.totalorder %s5430_s29, %s5423_s27 }
  0x96   : > { %p5427_p1 = pneg %p5426_p10  ;;  %p5433_p8 = por %p5432_p9, %p5431_p3 }
  0x98   : > { %p5434_p4 = pnand %p5433_p8, %p5427_p1 }
  0x9a   : > { %5437 = shalt.err (!%p5434_p4)
}
  0x9b   : > { %p7428_p12 = scmp.ne.s32.totalorder %s7419_s14, 0  ;;  %s4316_s9 = sshll.u32 %s5544_s24, 12 }
  0x9c   : > { %s5802_s6 = scalar_lea.hbm %s7389_s5, %s4316_s9  ;;  %s7429_s26 = sshll.u32 %s5661_s13, 8 }
  0x9d   : > { %4859 = dma.hbm_to_vmem [thread:$0]  (!%p7428_p12), %s5778_s3, 64, %s276_s17, %s5707_s23  }
  0x9e   : > { %s286_s20 = scalar_lea.vmem [#allocation14], %s7429_s26  ;;  %s283_s11 = scalar_lea.sflag [#allocation15], %s5661_s13 }
  0x9f   : > { %s293_s15 = sshll.u32 %s286_s20, 4  ;;  %s5438_s16 = scalar_lea.hbm %s5802_s6, 4096  ;;  %s5806_s15 = int_to_ptr.vmem [resolvable:$true] %s293_s15 }
  0xa0   : > { %p5439_p0 = scmp.ne.s32.totalorder %s5802_s6, %s5438_s16  ;;  %s5443_s3 = scalar_lea.hbm %s7389_s5, 16384 }
  0xa1   : > { %p5444_p11 = scmp.lt.u32.totalorder %s5802_s6, %s7389_s5  ;;  %p5445_p13 = scmp.lt.u32.totalorder %s5443_s3, %s5438_s16 }
  0xa2   : > { %p5441_p6 = pnand %p5439_p0, %p7427_p2  ;;  %p5447_p10 = scmp.lt.u32.totalorder %s5438_s16, %s5802_s6 }
  0xa3   : > { %p5446_p5 = por %p5445_p13, %p5444_p11 }
  0xa4   : > { %p5442_p7 = pneg %p5441_p6 }
  0xa5   : > { %p5448_p1 = por %p5447_p10, %p5446_p5 }
  0xa7   : > { %p5449_p3 = pnand %p5448_p1, %p5442_p7 }
  0xa9   : > { %5452 = shalt.err (!%p5449_p3)
}
  0xaa   : > { %s5453_s12 = scalar_lea.vmem %s5806_s15, 4096  ;;  %s5558_s18 = smov [#allocation14]  }
  0xab   : > { %p5454_p9 = scmp.ne.s32.totalorder %s5806_s15, %s5453_s12  ;;  %s5458_s27 = sshll.u32 %s5558_s18, 4  ;;  %s5459_s27 = int_to_ptr.vmem [resolvable:$false] %s5458_s27 }
  0xac   : > { %s5460_s28 = scalar_lea.vmem %s5459_s27, 8192  ;;  %p5461_p0 = scmp.lt.s32.totalorder %s5806_s15, %s5459_s27 }
  0xad   : > { %p5456_p8 = pnand %p5454_p9, %p7427_p2  ;;  %p5462_p6 = scmp.lt.s32.totalorder %s5460_s28, %s5453_s12 }
  0xaf   : > { %p5457_p4 = pneg %p5456_p8  ;;  %p5463_p11 = por %p5462_p6, %p5461_p0 }
  0xb1   : > { %p5464_p13 = pnand %p5463_p11, %p5457_p4 }
  0xb3   : > { %5467 = shalt.err (!%p5464_p13)
}
  0xb4   : > { %s7430_s21 = smov 4   ;;  %s7431_s29 = smov 64  }
  0xb5   : > { %4862 = dma.hbm_to_vmem [thread:$0]  (!%p7428_p12), %s5802_s6, 4096, %s5806_s15, %s283_s11, %s7431_s29, %s7431_s29, %s7430_s21  }
  0xb6   : > { %p7432_p2 = scmp.ne.s32.totalorder %s7417_s8, 0 }
  0xb7   : > { %p7433_p7 = scmp.eq.s32.totalorder (!%p7432_p2), %s5617_s25, 0 }
  0xb8   : > { %305 = sbr.rel (%p7432_p2) target bundleno = 2444 (0x98c), region = 44 }
  0xbf   : > { %5511 = dma.done.wait (%p7433_p7), [#allocation6], 4096   ;;  %p7434_p5 = pmov %p7433_p7 }
  0xc1   : > { %5513 = vsyncadd (%p7434_p5), [#allocation6], 4294963200  ;;  %p7435_p10 = pmov %p7434_p5 }
  0xc2   : > { %p7436_p1 = pmov %p7434_p5 }
  0xc3   : > { %5515 = dma.done.wait (%p7435_p10), [#allocation9], 1152  }
  0xc4   : > { %5517 = vsyncadd (%p7436_p1), [#allocation9], 4294966144  ;;  %s319_s13 = sand.u32 1, %s5617_s25   ;;  %s321_s14 = sand.u32 1, %s5536_s22  }
  0xc5   : > { %s4225_s10 = sshll.u32 %s321_s14, 8  ;;  %s320_s8 = scalar_lea.sflag [#allocation12], %s319_s13 }
  0xc6   : > { %s5847_s9 = scalar_lea.vmem [#allocation11], %s4225_s10  ;;  %p7437_p12 = scmp.ne.s32.totalorder %s7416_s7, 0 }
  0xc8   : > { %5519 = dma.done.wait (%p7437_p12), %s320_s8, 4160  }
  0xc9   : > { %5521 = vsyncadd (%p7437_p12), %s320_s8, 4294963136  ;;  %s4226_s30 = sshll.u32 %s321_s14, 2  ;;  %s338_s6 = scalar_lea.sflag [#allocation15], %s321_s14 }
  0xca   : > { %s5853_s1 = scalar_lea.vmem [#allocation13], %s4226_s30  ;;  %s5855_s26 = scalar_lea.vmem [#allocation14], %s4225_s10 }
  0xcb   : > { %5523 = dma.done.wait (%p7437_p12), %s338_s6, 4096  }
  0xcc   : > { %5525 = vsyncadd (%p7437_p12), %s338_s6, 4294963200  ;;  %p7438_p3 = scmp.ne.s32.totalorder %s5617_s25, 0 }
  0xcd   : > { %v4918_v0 = vld [vmem:[#allocation8] sm:$0xff] (!%p7438_p3)   ;;  %v384_v2 = vld [vmem:[#allocation5 + $0x8] sm:$0xff] (!%p7438_p3)  ;;  %v4920_v5 = vld [vmem:[#allocation8 + $0x10] sm:$0xff] (!%p7438_p3)  }
  0xce   : > { %382 = sbr.rel (%p7438_p3) target bundleno = 1413 (0x585), region = 72  ;;  %v383_v1 = vld [vmem:[#allocation5] sm:$0xff] (!%p7438_p3)  ;;  %4629 = vmatprep.subr.bf16.mxu0 (!%p7438_p3), %v4918_v0  ;;  %v4919_v4 = vld [vmem:[#allocation8 + $0x8] sm:$0xff] (!%p7438_p3)   ;;  %v385_v6 = vld [vmem:[#allocation5 + $0x10] sm:$0xff] (!%p7438_p3) }
  0xcf   : > { %v415_v3 = vpack.c.bf16 (!%p7438_p3), %v384_v2, %v383_v1  ;;  %4630 = vmatpush3.bf16.msra.mxu0 (!%p7438_p3), %v4918_v0  ;;  %v386_v7 = vld [vmem:[#allocation5 + $0x18] sm:$0xff] (!%p7438_p3)  ;;  %v387_v9 = vld [vmem:[#allocation5 + $0x20] sm:$0xff] (!%p7438_p3)  ;;  %v388_v10 = vld [vmem:[#allocation5 + $0x28] sm:$0xff] (!%p7438_p3) }
  0xd0   : > { %4631 = vmatprep.subr.bf16.mxu0 (!%p7438_p3), %v4919_v4  ;;  %v5863_v8 = vpack.c.bf16 (!%p7438_p3), %v386_v7, %v385_v6  ;;  %v4921_v11 = vld [vmem:[#allocation8 + $0x18] sm:$0xff] (!%p7438_p3)   ;;  %v5866_v12 = vpack.c.bf16 (!%p7438_p3), %v388_v10, %v387_v9  ;;  %v4922_v13 = vld [vmem:[#allocation8 + $0x20] sm:$0xff] (!%p7438_p3)   ;;  %v389_v14 = vld [vmem:[#allocation5 + $0x30] sm:$0xff] (!%p7438_p3) }
  0xd1   : > { %4677 = vmatprep.subr.bf16.mxu1 (!%p7438_p3), %v415_v3  ;;  %4645 = vmatprep.mubr.bf16.mxu0 (!%p7438_p3), %v415_v3  ;;  %v390_v15 = vld [vmem:[#allocation5 + $0x38] sm:$0xff] (!%p7438_p3)  ;;  %v4923_v16 = vld [vmem:[#allocation8 + $0x28] sm:$0xff] (!%p7438_p3)   ;;  %v4924_v18 = vld [vmem:[#allocation8 + $0x30] sm:$0xff] (!%p7438_p3)  }
  0xd2   : > { %4678 = vmatpush3.bf16.xpose.msra.mxu1 (!%p7438_p3), %v415_v3  ;;  %4693 = vmatprep.mubr.bf16.mxu1 (!%p7438_p3), %v415_v3  ;;  %v5870_v17 = vpack.c.bf16 (!%p7438_p3), %v390_v15, %v389_v14  ;;  %v391_v19 = vld [vmem:[#allocation5 + $0x40] sm:$0xff] (!%p7438_p3)  ;;  %v392_v20 = vld [vmem:[#allocation5 + $0x48] sm:$0xff] (!%p7438_p3)  ;;  %v4925_v21 = vld [vmem:[#allocation8 + $0x38] sm:$0xff] (!%p7438_p3)  }
  0xd3   : > { %4632 = vmatpush3.bf16.msra.mxu0 (!%p7438_p3), %v4919_v4  ;;  %4679 = vmatprep.subr.bf16.mxu1 (!%p7438_p3), %v5863_v8  ;;  %v399_v22 = vld [vmem:[#allocation5 + $0x80] sm:$0xff] (!%p7438_p3)  ;;  %v400_v23 = vld [vmem:[#allocation5 + $0x88] sm:$0xff] (!%p7438_p3)  ;;  %v5874_v24 = vpack.c.bf16 (!%p7438_p3), %v392_v20, %v391_v19  ;;  %v393_v26 = vld [vmem:[#allocation5 + $0x50] sm:$0xff] (!%p7438_p3) }
  0xd4   : > { %4633 = vmatprep.subr.bf16.mxu0 (!%p7438_p3), %v4920_v5  ;;  %v5876_v25 = vpack.c.bf16 (!%p7438_p3), %v400_v23, %v399_v22  ;;  %v394_v27 = vld [vmem:[#allocation5 + $0x58] sm:$0xff] (!%p7438_p3)  ;;  %v401_v29 = vld [vmem:[#allocation5 + $0x90] sm:$0xff] (!%p7438_p3)  ;;  %v395_v32 = vld [vmem:[#allocation5 + $0x60] sm:$0xff] (!%p7438_p3) }
  0xd5   : > { %v420_v28 = vpack.c.bf16 %v394_v27, %v393_v26  ;;  %v402_v30 = vld [vmem:[#allocation5 + $0x98] sm:$0xff]  ;;  %v396_v33 = vld [vmem:[#allocation5 + $0x68] sm:$0xff]  ;;  %v403_v35 = vld [vmem:[#allocation5 + $0xa0] sm:$0xff] }
  0xd6   : > { %v5884_v31 = vpack.c.bf16 %v402_v30, %v401_v29  ;;  %v421_v34 = vpack.c.bf16 %v396_v33, %v395_v32  ;;  %v404_v36 = vld [vmem:[#allocation5 + $0xa8] sm:$0xff]  ;;  %v397_v38 = vld [vmem:[#allocation5 + $0x70] sm:$0xff]  ;;  %v398_v39 = vld [vmem:[#allocation5 + $0x78] sm:$0xff] }
  0xd7   : > { %4634 = vmatpush3.bf16.msra.mxu0 %v4920_v5  ;;  %v425_v37 = vpack.c.bf16 %v404_v36, %v403_v35  ;;  %v422_v40 = vpack.c.bf16 %v398_v39, %v397_v38  ;;  %v405_v41 = vld [vmem:[#allocation5 + $0xb0] sm:$0xff]  ;;  %v406_v42 = vld [vmem:[#allocation5 + $0xb8] sm:$0xff]  ;;  %v407_v44 = vld [vmem:[#allocation5 + $0xc0] sm:$0xff] }
  0xd8   : > { %4635 = vmatprep.subr.bf16.mxu0 %v4921_v11  ;;  %v426_v43 = vpack.c.bf16 %v406_v42, %v405_v41  ;;  %v408_v45 = vld [vmem:[#allocation5 + $0xc8] sm:$0xff]  ;;  %v409_v47 = vld [vmem:[#allocation5 + $0xd0] sm:$0xff]  ;;  %v410_v48 = vld [vmem:[#allocation5 + $0xd8] sm:$0xff] }
  0xd9   : > { %v427_v46 = vpack.c.bf16 %v408_v45, %v407_v44  ;;  %v428_v49 = vpack.c.bf16 %v410_v48, %v409_v47  ;;  %v411_v50 = vld [vmem:[#allocation5 + $0xe0] sm:$0xff]  ;;  %v412_v51 = vld [vmem:[#allocation5 + $0xe8] sm:$0xff]  ;;  %v413_v53 = vld [vmem:[#allocation5 + $0xf0] sm:$0xff] }
  0xda   : > { %4680 = vmatpush3.bf16.xpose.msra.mxu1 %v5863_v8  ;;  %v429_v52 = vpack.c.bf16 %v412_v51, %v411_v50  ;;  %v414_v54 = vld [vmem:[#allocation5 + $0xf8] sm:$0xff] }
  0xdb   : > { %4681 = vmatprep.subr.bf16.mxu1 %v5866_v12  ;;  %4636 = vmatpush3.bf16.msra.mxu0 %v4921_v11  ;;  %v430_v55 = vpack.c.bf16 %v414_v54, %v413_v53 }
  0xdc   : > { %4637 = vmatprep.subr.bf16.mxu0 %v4922_v13 }
  0xdf   : > { %4638 = vmatpush3.bf16.msra.mxu0 %v4922_v13 }
  0xe0   : > { %4639 = vmatprep.subr.bf16.mxu0 %v4923_v16 }
  0xe2   : > { %4682 = vmatpush3.bf16.xpose.msra.mxu1 %v5866_v12 }
  0xe3   : > { %4683 = vmatprep.subr.bf16.mxu1 %v5870_v17  ;;  %4640 = vmatpush3.bf16.msra.mxu0 %v4923_v16 }
  0xe4   : > { %4641 = vmatprep.subr.bf16.mxu0 %v4924_v18 }
  0xe7   : > { %4642 = vmatpush3.bf16.msra.mxu0 %v4924_v18 }
  0xe8   : > { %4643 = vmatprep.subr.bf16.mxu0 %v4925_v21 }
  0xea   : > { %4684 = vmatpush3.bf16.xpose.msra.mxu1 %v5870_v17 }
  0xeb   : > { %4685 = vmatprep.subr.bf16.mxu1 %v5874_v24  ;;  %4644 = vmatpush3.bf16.msra.mxu0 %v4925_v21 }
  0xec   : > { %4709 = vmatprep.subr.bf16.mxu0 %v5876_v25 }
  0xee   : > { %4646 = vmatmul.mubr.bf16.vlgmr.msra.gmra.mrb[0].mxu0 %v5863_v8 }
  0xef   : > { %4649 = vmatprep.mubr.bf16.mxu0 %v5866_v12 }
  0xf2   : > { %4686 = vmatpush3.bf16.xpose.msra.mxu1 %v5874_v24 }
  0xf3   : > { %4687 = vmatprep.subr.bf16.mxu1 %v420_v28 }
  0xf4   : > { %4710 = vmatpush3.bf16.xpose.msra.mxu0 %v5876_v25 }
  0xf5   : > { %4711 = vmatprep.subr.bf16.mxu0 %v5884_v31 }
  0xf6   : > { %4650 = vmatmul.mubr.bf16.gmra.mrb[4].mxu0 %v5870_v17 }
  0xf7   : > { %4653 = vmatprep.mubr.bf16.mxu0 %v5874_v24 }
  0xfa   : > { %4688 = vmatpush3.bf16.xpose.msra.mxu1 %v420_v28 }
  0xfb   : > { %4689 = vmatprep.subr.bf16.mxu1 %v421_v34 }
  0xfc   : > { %4712 = vmatpush3.bf16.xpose.msra.mxu0 %v5884_v31 }
  0xfd   : > { %4713 = vmatprep.subr.bf16.mxu0 %v425_v37 }
  0xfe   : > { %4654 = vmatmul.mubr.bf16.gmra.mrb[8].mxu0 %v420_v28 }
  0xff   : > { %4657 = vmatprep.mubr.bf16.mxu0 %v421_v34 }
 0x102   : > { %4690 = vmatpush3.bf16.xpose.msra.mxu1 %v421_v34 }
 0x103   : > { %4691 = vmatprep.subr.bf16.mxu1 %v422_v40 }
 0x104   : > { %4714 = vmatpush3.bf16.xpose.msra.mxu0 %v425_v37 }
 0x105   : > { %4715 = vmatprep.subr.bf16.mxu0 %v426_v43 }
 0x106   : > { %4658 = vmatmul.mubr.bf16.gmra.mrb[12].mxu0 %v422_v40 }
 0x107   : > { %4661 = vmatprep.mubr.bf16.mxu0 %v5876_v25 }
 0x10a   : > { %4692 = vmatpush3.bf16.xpose.msra.mxu1 %v422_v40 }
 0x10c   : > { %4716 = vmatpush3.bf16.xpose.msra.mxu0 %v426_v43 }
 0x10d   : > { %4717 = vmatprep.subr.bf16.mxu0 %v427_v46 }
 0x10e   : > { %4662 = vmatmul.mubr.bf16.gmra.mrb[16].mxu0 %v5884_v31 }
 0x10f   : > { %4665 = vmatprep.mubr.bf16.mxu0 %v425_v37 }
 0x111   : > { %4694 = vmatmul.mubr.bf16.vlgmr.msra.gmra.mrb[0].mxu1 %v5863_v8 }
 0x112   : > { %4697 = vmatprep.mubr.bf16.mxu1 %v5866_v12 }
 0x114   : > { %4718 = vmatpush3.bf16.xpose.msra.mxu0 %v427_v46 }
 0x115   : > { %4719 = vmatprep.subr.bf16.mxu0 %v428_v49 }
 0x116   : > { %4666 = vmatmul.mubr.bf16.gmra.mrb[20].mxu0 %v426_v43 }
 0x117   : > { %4669 = vmatprep.mubr.bf16.mxu0 %v427_v46 }
 0x119   : > { %4698 = vmatmul.mubr.bf16.gmra.mrb[4].mxu1 %v5870_v17 }
 0x11a   : > { %4701 = vmatprep.mubr.bf16.mxu1 %v5874_v24 }
 0x11c   : > { %4720 = vmatpush3.bf16.xpose.msra.mxu0 %v428_v49 }
 0x11d   : > { %4721 = vmatprep.subr.bf16.mxu0 %v429_v52 }
 0x11e   : > { %4670 = vmatmul.mubr.bf16.gmra.mrb[24].mxu0 %v428_v49 }
 0x11f   : > { %4673 = vmatprep.mubr.bf16.mxu0 %v429_v52 }
 0x121   : > { %4702 = vmatmul.mubr.bf16.gmra.mrb[8].mxu1 %v420_v28 }
 0x122   : > { %4705 = vmatprep.mubr.bf16.mxu1 %v421_v34 }
 0x124   : > { %4722 = vmatpush3.bf16.xpose.msra.mxu0 %v429_v52 }
 0x125   : > { %4723 = vmatprep.subr.bf16.mxu0 %v430_v55 }
 0x126   : > { %4674 = vmatmul.mubr.bf16.gmra.mrb[28].mxu0 %v430_v55 }
 0x127   : > { %4725 = vmatprep.mubr.bf16.mxu0 %v5876_v25 }
 0x129   : > { %4706 = vmatmul.mubr.bf16.gmra.mrb[12].mxu1 %v422_v40 }
 0x12c   : > { %4724 = vmatpush3.bf16.xpose.msra.mxu0 %v430_v55 }
 0x133   : > { %4726 = vmatmul.mubr.bf16.vlgmr.msra.gmra.mrb[32].mxu0 %v5884_v31 }
 0x134   : > { %4729 = vmatprep.mubr.bf16.mxu0 %v425_v37 }
 0x13b   : > { %4730 = vmatmul.mubr.bf16.gmra.mrb[36].mxu0 %v426_v43 }
 0x13c   : > { %4733 = vmatprep.mubr.bf16.mxu0 %v427_v46 }
 0x143   : > { %4734 = vmatmul.mubr.bf16.gmra.mrb[40].mxu0 %v428_v49 }
 0x144   : > { %4737 = vmatprep.mubr.bf16.mxu0 %v429_v52 }
 0x14b   : > { %4738 = vmatmul.mubr.bf16.gmra.mrb[44].mxu0 %v430_v55 }
 0x1c1   : > { %v4647_v56 = vpop.f32.mrb[0].mxu0 }
 0x1c2   : > { %v529_v57 = vpop.f32.mrb[1].mxu0 }
 0x1c3   : > { %v4648_v58 = vpop.f32.mrb[2].mxu0 }
 0x1c4   : > { %v657_v59 = vpack.c.bf16 %v4648_v58, %v4647_v56  ;;  %v532_v60 = vpop.f32.mrb[3].mxu0 }
 0x1c5   : > { %v656_v61 = vpack.c.bf16 %v532_v60, %v529_v57 }
 0x1c7   : > { %4741 = vmatprep.subr.bf16.mxu1 %v656_v61 }
 0x1c8   : > { %4742 = vmatpush3.bf16.msra.mxu1 %v656_v61 }
 0x1c9   : > { %v4651_v62 = vpop.f32.mrb[4].mxu0  ;;  %4743 = vmatprep.subr.bf16.mxu1 %v657_v59 }
 0x1ca   : > { %v545_v63 = vpop.f32.mrb[5].mxu0 }
 0x1cb   : > { %v4652_v0 = vpop.f32.mrb[6].mxu0 }
 0x1cc   : > { %v659_v1 = vpack.c.bf16 %v4652_v0, %v4651_v62  ;;  %v548_v2 = vpop.f32.mrb[7].mxu0  ;;  %4744 = vmatpush3.bf16.msra.mxu1 %v657_v59 }
 0x1cd   : > { %v658_v3 = vpack.c.bf16 %v548_v2, %v545_v63 }
 0x1cf   : > { %4745 = vmatprep.subr.bf16.mxu1 %v658_v3 }
 0x1d0   : > { %4746 = vmatpush3.bf16.msra.mxu1 %v658_v3 }
 0x1d1   : > { %v4655_v4 = vpop.f32.mrb[8].mxu0  ;;  %4747 = vmatprep.subr.bf16.mxu1 %v659_v1 }
 0x1d2   : > { %v561_v5 = vpop.f32.mrb[9].mxu0 }
 0x1d3   : > { %v4656_v6 = vpop.f32.mrb[10].mxu0 }
 0x1d4   : > { %v661_v7 = vpack.c.bf16 %v4656_v6, %v4655_v4  ;;  %v564_v8 = vpop.f32.mrb[11].mxu0  ;;  %4748 = vmatpush3.bf16.msra.mxu1 %v659_v1 }
 0x1d5   : > { %v660_v9 = vpack.c.bf16 %v564_v8, %v561_v5 }
 0x1d7   : > { %4749 = vmatprep.subr.bf16.mxu1 %v660_v9 }
 0x1d8   : > { %4750 = vmatpush3.bf16.msra.mxu1 %v660_v9 }
 0x1d9   : > { %v4659_v10 = vpop.f32.mrb[12].mxu0  ;;  %4751 = vmatprep.subr.bf16.mxu1 %v661_v7 }
 0x1da   : > { %v577_v11 = vpop.f32.mrb[13].mxu0 }
 0x1db   : > { %v4660_v12 = vpop.f32.mrb[14].mxu0 }
 0x1dc   : > { %v663_v13 = vpack.c.bf16 %v4660_v12, %v4659_v10  ;;  %v580_v14 = vpop.f32.mrb[15].mxu0  ;;  %4752 = vmatpush3.bf16.msra.mxu1 %v661_v7 }
 0x1dd   : > { %v662_v15 = vpack.c.bf16 %v580_v14, %v577_v11 }
 0x1df   : > { %4753 = vmatprep.subr.bf16.mxu1 %v662_v15 }
 0x1e0   : > { %4754 = vmatpush3.bf16.msra.mxu1 %v662_v15 }
 0x1e1   : > { %v4663_v16 = vpop.f32.mrb[16].mxu0  ;;  %4755 = vmatprep.subr.bf16.mxu1 %v663_v13 }
 0x1e2   : > { %v593_v17 = vpop.f32.mrb[17].mxu0 }
 0x1e3   : > { %v4664_v19 = vpop.f32.mrb[18].mxu0 }
 0x1e4   : > { %v4695_v18 = vpop.f32.mrb[0].mxu1  ;;  %v5901_v22 = vpack.c.bf16 %v4664_v19, %v4663_v16  ;;  %v596_v23 = vpop.f32.mrb[19].mxu0  ;;  %4756 = vmatpush3.bf16.msra.mxu1 %v663_v13 }
 0x1e5   : > { %v5899_v20 = vmul.f32 0.088388346, %v4695_v18  ;;  %v706_v21 = vpop.f32.mrb[1].mxu1  ;;  %v5905_v25 = vpack.c.bf16 %v596_v23, %v593_v17 }
 0x1e6   : > { %v5903_v24 = vmul.f32 0.088388346, %v706_v21  ;;  %v4696_v26 = vpop.f32.mrb[2].mxu1 }
 0x1e7   : > { %902 = vmax.xlane.f32.xlu1 %v5899_v20  ;;  %v5908_v27 = vmul.f32 0.088388346, %v4696_v26  ;;  %v709_v28 = vpop.f32.mrb[3].mxu1  ;;  %4773 = vmatprep.subr.bf16.mxu0 %v5905_v25 }
 0x1e8   : > { %898 = vmax.xlane.f32.xlu0 %v5903_v24  ;;  %v5911_v29 = vmul.f32 0.088388346, %v709_v28  ;;  %4774 = vmatpush3.bf16.msra.mxu0 %v5905_v25 }
 0x1e9   : > { %4805 = vmatprep.subr.bf16.mxu1 %v5905_v25  ;;  %v4667_v30 = vpop.f32.mrb[20].mxu0  ;;  %4775 = vmatprep.subr.bf16.mxu0 %v5901_v22 }
 0x1ea   : > { %v609_v31 = vpop.f32.mrb[21].mxu0 }
 0x1eb   : > { %904 = vmax.xlane.f32.xlu1 %v5908_v27  ;;  %v4668_v33 = vpop.f32.mrb[22].mxu0 }
 0x1ec   : > { %900 = vmax.xlane.f32.xlu0 %v5911_v29  ;;  %v4699_v32 = vpop.f32.mrb[4].mxu1  ;;  %v5921_v36 = vpack.c.bf16 %v4668_v33, %v4667_v30  ;;  %v612_v37 = vpop.f32.mrb[23].mxu0  ;;  %4776 = vmatpush3.bf16.msra.mxu0 %v5901_v22 }
 0x1ed   : > { %v5919_v34 = vmul.f32 0.088388346, %v4699_v32  ;;  %v722_v35 = vpop.f32.mrb[5].mxu1  ;;  %v5924_v39 = vpack.c.bf16 %v612_v37, %v609_v31 }
 0x1ee   : > { %v4700_v38 = vpop.f32.mrb[6].mxu1  ;;  %v5928_v42 = vmul.f32 0.088388346, %v722_v35 }
 0x1ef   : > { %v5926_v40 = vmul.f32 0.088388346, %v4700_v38  ;;  %v725_v41 = vpop.f32.mrb[7].mxu1  ;;  %4777 = vmatprep.subr.bf16.mxu0 %v5924_v39 }
 0x1f0   : > { %910 = vmax.xlane.f32.xlu0 %v5919_v34  ;;  %v5933_v43 = vmul.f32 0.088388346, %v725_v41  ;;  %4778 = vmatpush3.bf16.msra.mxu0 %v5924_v39 }
 0x1f1   : > { %912 = vmax.xlane.f32.xlu1 %v5926_v40  ;;  %v4671_v44 = vpop.f32.mrb[24].mxu0  ;;  %4779 = vmatprep.subr.bf16.mxu0 %v5921_v36 }
 0x1f2   : > { %v625_v45 = vpop.f32.mrb[25].mxu0 }
 0x1f3   : > { %v4672_v47 = vpop.f32.mrb[26].mxu0 }
 0x1f4   : > { %906 = vmax.xlane.f32.xlu0 %v5928_v42  ;;  %v4703_v46 = vpop.f32.mrb[8].mxu1  ;;  %v5941_v50 = vpack.c.bf16 %v4672_v47, %v4671_v44  ;;  %v628_v51 = vpop.f32.mrb[27].mxu0  ;;  %4780 = vmatpush3.bf16.msra.mxu0 %v5921_v36 }
 0x1f5   : > { %v5938_v48 = vmul.f32 0.088388346, %v4703_v46  ;;  %908 = vmax.xlane.f32.xlu1 %v5933_v43  ;;  %v738_v49 = vpop.f32.mrb[9].mxu1  ;;  %v5944_v53 = vpack.c.bf16 %v628_v51, %v625_v45 }
 0x1f6   : > { %v4704_v52 = vpop.f32.mrb[10].mxu1  ;;  %v5948_v56 = vmul.f32 0.088388346, %v738_v49 }
 0x1f7   : > { %v5946_v54 = vmul.f32 0.088388346, %v4704_v52  ;;  %v741_v55 = vpop.f32.mrb[11].mxu1  ;;  %4781 = vmatprep.subr.bf16.mxu0 %v5944_v53 }
 0x1f8   : > { %918 = vmax.xlane.f32.xlu0 %v5938_v48  ;;  %v5953_v57 = vmul.f32 0.088388346, %v741_v55  ;;  %4782 = vmatpush3.bf16.msra.mxu0 %v5944_v53 }
 0x1f9   : > { %920 = vmax.xlane.f32.xlu1 %v5946_v54  ;;  %v4675_v58 = vpop.f32.mrb[28].mxu0  ;;  %4783 = vmatprep.subr.bf16.mxu0 %v5941_v50 }
 0x1fa   : > { %v641_v59 = vpop.f32.mrb[29].mxu0 }
 0x1fb   : > { %v4676_v61 = vpop.f32.mrb[30].mxu0 }
 0x1fc   : > { %914 = vmax.xlane.f32.xlu0 %v5948_v56  ;;  %v4707_v60 = vpop.f32.mrb[12].mxu1  ;;  %v5961_v0 = vpack.c.bf16 %v4676_v61, %v4675_v58  ;;  %v644_v1 = vpop.f32.mrb[31].mxu0  ;;  %4784 = vmatpush3.bf16.msra.mxu0 %v5941_v50 }
 0x1fd   : > { %v5958_v62 = vmul.f32 0.088388346, %v4707_v60  ;;  %916 = vmax.xlane.f32.xlu1 %v5953_v57  ;;  %v754_v63 = vpop.f32.mrb[13].mxu1  ;;  %v5964_v3 = vpack.c.bf16 %v644_v1, %v641_v59 }
 0x1fe   : > { %v4708_v2 = vpop.f32.mrb[14].mxu1  ;;  %v5968_v6 = vmul.f32 0.088388346, %v754_v63 }
 0x1ff   : > { %v5966_v4 = vmul.f32 0.088388346, %v4708_v2  ;;  %v757_v5 = vpop.f32.mrb[15].mxu1  ;;  %4785 = vmatprep.subr.bf16.mxu0 %v5964_v3 }
 0x200   : > { %926 = vmax.xlane.f32.xlu0 %v5958_v62  ;;  %v5973_v7 = vmul.f32 0.088388346, %v757_v5  ;;  %4786 = vmatpush3.bf16.msra.mxu0 %v5964_v3 }
 0x201   : > { %928 = vmax.xlane.f32.xlu1 %v5966_v4  ;;  %4787 = vmatprep.subr.bf16.mxu0 %v5961_v0 }
 0x204   : > { %922 = vmax.xlane.f32.xlu0 %v5968_v6  ;;  %4788 = vmatpush3.bf16.msra.mxu0 %v5961_v0 }
 0x205   : > { %924 = vmax.xlane.f32.xlu1 %v5973_v7 }
 0x206   : > { %v4727_v8 = vpop.f32.mrb[32].mxu0 }
 0x207   : > { %v5980_v9 = vmul.f32 0.088388346, %v4727_v8  ;;  %v803_v10 = vpop.f32.mrb[33].mxu0 }
 0x208   : > { %v4728_v11 = vpop.f32.mrb[34].mxu0  ;;  %v5985_v14 = vmul.f32 0.088388346, %v803_v10 }
 0x209   : > { %v5982_v12 = vmul.f32 0.088388346, %v4728_v11  ;;  %934 = vmax.xlane.f32.xlu0 %v5980_v9  ;;  %v806_v13 = vpop.f32.mrb[35].mxu0 }
 0x20a   : > { %v5988_v15 = vmul.f32 0.088388346, %v806_v13 }
 0x20b   : > { %936 = vmax.xlane.f32.xlu1 %v5982_v12 }
 0x20d   : > { %930 = vmax.xlane.f32.xlu0 %v5985_v14 }
 0x20e   : > { %v4731_v16 = vpop.f32.mrb[36].mxu0 }
 0x20f   : > { %932 = vmax.xlane.f32.xlu1 %v5988_v15  ;;  %v819_v17 = vpop.f32.mrb[37].mxu0  ;;  %v6009_v41 = vmul.f32 0.088388346, %v4731_v16 }
 0x210   : > { %v5992_v18 = vmul.f32 0.088388346, %v819_v17  ;;  %v4732_v19 = vpop.f32.mrb[38].mxu0 }
 0x211   : > { %v822_v21 = vpop.f32.mrb[39].mxu0  ;;  %v6012_v46 = vmul.f32 0.088388346, %v4732_v19 }
 0x212   : > { %v5994_v23 = vmul.f32 0.088388346, %v822_v21  ;;  %938 = vmax.xlane.f32.xlu0 %v5992_v18 }
 0x214   : > { %940 = vmax.xlane.f32.xlu1 %v5994_v23 }
 0x216   : > { %v4735_v26 = vpop.f32.mrb[40].mxu0 }
 0x217   : > { %v5998_v28 = vmul.f32 0.088388346, %v4735_v26  ;;  %v835_v30 = vpop.f32.mrb[41].mxu0 }
 0x218   : > { %v4736_v31 = vpop.f32.mrb[42].mxu0  ;;  %v6003_v35 = vmul.f32 0.088388346, %v835_v30 }
 0x219   : > { %v6000_v32 = vmul.f32 0.088388346, %v4736_v31  ;;  %950 = vmax.xlane.f32.xlu0 %v5998_v28  ;;  %v838_v33 = vpop.f32.mrb[43].mxu0 }
 0x21a   : > { %v6006_v37 = vmul.f32 0.088388346, %v838_v33 }
 0x21b   : > { %952 = vmax.xlane.f32.xlu1 %v6000_v32 }
 0x21d   : > { %946 = vmax.xlane.f32.xlu0 %v6003_v35 }
 0x21e   : > { %v4739_v38 = vpop.f32.mrb[44].mxu0 }
 0x21f   : > { %948 = vmax.xlane.f32.xlu1 %v6006_v37  ;;  %v851_v44 = vpop.f32.mrb[45].mxu0  ;;  %v6020_v52 = vmul.f32 0.088388346, %v4739_v38 }
 0x220   : > { %v4740_v45 = vpop.f32.mrb[46].mxu0  ;;  %v6015_v47 = vmul.f32 0.088388346, %v851_v44 }
 0x221   : > { %942 = vmax.xlane.f32.xlu0 %v6009_v41  ;;  %v854_v49 = vpop.f32.mrb[47].mxu0  ;;  %v6023_v55 = vmul.f32 0.088388346, %v4740_v45 }
 0x222   : > { %v6018_v51 = vmul.f32 0.088388346, %v854_v49 }
 0x223   : > { %944 = vmax.xlane.f32.xlu1 %v6012_v46 }
 0x225   : > { %954 = vmax.xlane.f32.xlu0 %v6015_v47 }
 0x227   : > { %956 = vmax.xlane.f32.xlu1 %v6018_v51 }
 0x229   : > { %958 = vmax.xlane.f32.xlu0 %v6020_v52 }
 0x22b   : > { %960 = vmax.xlane.f32.xlu1 %v6023_v55 }
 0x274   : > { %v903_v58 = vpop.xlane.xlu1 %902 }
 0x275   : > { %v964_v59 = vsub.f32 %v5899_v20, %v903_v58  ;;  %v899_v60 = vpop.xlane.xlu0 %898 }
 0x276   : > { %v962_v61 = vsub.f32 %v5903_v24, %v899_v60 }
 0x277   : > { %v998_v63 = vmul.f32 1.442695, %v964_v59 }
 0x278   : > { %v994_v1 = vmul.f32 1.442695, %v962_v61  ;;  %v905_v2 = vpop.xlane.xlu1 %904 }
 0x279   : > { %4926 = vpow2.f32 %v998_v63  ;;  %v965_v5 = vsub.f32 %v5908_v27, %v905_v2  ;;  %v901_v8 = vpop.xlane.xlu0 %900 }
 0x27a   : > { %v963_v10 = vsub.f32 %v5911_v29, %v901_v8  ;;  %4928 = vpow2.f32 %v994_v1 }
 0x27b   : > { %v1000_v11 = vmul.f32 1.442695, %v965_v5 }
 0x27c   : > { %v996_v13 = vmul.f32 1.442695, %v963_v10 }
 0x27d   : > { %4930 = vpow2.f32 %v1000_v11  ;;  %v911_v16 = vpop.xlane.xlu0 %910 }
 0x27e   : > { %v968_v17 = vsub.f32 %v5919_v34, %v911_v16  ;;  %v913_v20 = vpop.xlane.xlu1 %912  ;;  %4932 = vpow2.f32 %v996_v13 }
 0x27f   : > { %v969_v19 = vsub.f32 %v5926_v40, %v913_v20 }
 0x280   : > { %v1006_v24 = vmul.f32 1.442695, %v968_v17 }
 0x281   : > { %v1008_v21 = vmul.f32 1.442695, %v969_v19  ;;  %v907_v26 = vpop.xlane.xlu0 %906 }
 0x282   : > { %4934 = vpow2.f32 %v1006_v24  ;;  %v966_v27 = vsub.f32 %v5928_v42, %v907_v26  ;;  %v909_v30 = vpop.xlane.xlu1 %908 }
 0x283   : > { %v6035_v31 = vpop.eup %4926  ;;  %v967_v29 = vsub.f32 %v5933_v43, %v909_v30  ;;  %4936 = vpow2.f32 %v1008_v21 }
 0x284   : > { %v1002_v33 = vmul.f32 1.442695, %v966_v27  ;;  %1062 = vadd.xlane.f32.xlu0 %v6035_v31  ;;  %v6039_v44 = vpop.eup %4928 }
 0x285   : > { %v1004_v34 = vmul.f32 1.442695, %v967_v29  ;;  %v919_v38 = vpop.xlane.xlu0 %918 }
 0x286   : > { %4938 = vpow2.f32 %v1002_v33  ;;  %v972_v40 = vsub.f32 %v5938_v48, %v919_v38  ;;  %v921_v45 = vpop.xlane.xlu1 %920 }
 0x287   : > { %v6042_v49 = vpop.eup %4930  ;;  %v973_v42 = vsub.f32 %v5946_v54, %v921_v45  ;;  %4940 = vpow2.f32 %v1004_v34 }
 0x288   : > { %v1014_v58 = vmul.f32 1.442695, %v972_v40  ;;  %1058 = vadd.xlane.f32.xlu0 %v6039_v44  ;;  %1064 = vadd.xlane.f32.xlu1 %v6042_v49  ;;  %v6048_v63 = vpop.eup %4932 }
 0x289   : > { %v1016_v43 = vmul.f32 1.442695, %v973_v42  ;;  %v915_v59 = vpop.xlane.xlu0 %914 }
 0x28a   : > { %4942 = vpow2.f32 %v1014_v58  ;;  %v970_v60 = vsub.f32 %v5948_v56, %v915_v59  ;;  %v917_v61 = vpop.xlane.xlu1 %916 }
 0x28b   : > { %v971_v48 = vsub.f32 %v5953_v57, %v917_v61  ;;  %4944 = vpow2.f32 %v1016_v43 }
 0x28c   : > { %v6051_v1 = vpop.eup %4934  ;;  %v1010_v2 = vmul.f32 1.442695, %v970_v60  ;;  %1060 = vadd.xlane.f32.xlu1 %v6048_v63 }
 0x28d   : > { %v1012_v54 = vmul.f32 1.442695, %v971_v48  ;;  %v927_v5 = vpop.xlane.xlu0 %926  ;;  %1070 = vadd.xlane.f32.xlu0 %v6051_v1  ;;  %v6056_v56 = vpop.eup %4936 }
 0x28e   : > { %4946 = vpow2.f32 %v1010_v2  ;;  %v976_v8 = vsub.f32 %v5958_v62, %v927_v5  ;;  %v929_v10 = vpop.xlane.xlu1 %928 }
 0x28f   : > { %v977_v11 = vsub.f32 %v5966_v4, %v929_v10  ;;  %4948 = vpow2.f32 %v1012_v54 }
 0x290   : > { %v6059_v13 = vpop.eup %4938  ;;  %v1022_v57 = vmul.f32 1.442695, %v976_v8  ;;  %1072 = vadd.xlane.f32.xlu1 %v6056_v56 }
 0x291   : > { %v1024_v16 = vmul.f32 1.442695, %v977_v11  ;;  %v923_v17 = vpop.xlane.xlu0 %922  ;;  %1066 = vadd.xlane.f32.xlu0 %v6059_v13  ;;  %v6064_v62 = vpop.eup %4940 }
 0x292   : > { %4950 = vpow2.f32 %v1022_v57  ;;  %v974_v20 = vsub.f32 %v5968_v6, %v923_v17  ;;  %v925_v19 = vpop.xlane.xlu1 %924 }
 0x293   : > { %v975_v24 = vsub.f32 %v5973_v7, %v925_v19  ;;  %4952 = vpow2.f32 %v1024_v16 }
 0x294   : > { %v6067_v21 = vpop.eup %4942  ;;  %v1018_v4 = vmul.f32 1.442695, %v974_v20  ;;  %1068 = vadd.xlane.f32.xlu1 %v6064_v62 }
 0x295   : > { %v1020_v26 = vmul.f32 1.442695, %v975_v24  ;;  %1078 = vadd.xlane.f32.xlu0 %v6067_v21  ;;  %v6071_v27 = vpop.eup %4944 }
 0x296   : > { %4954 = vpow2.f32 %v1018_v4  ;;  %v935_v30 = vpop.xlane.xlu0 %934 }
 0x297   : > { %v980_v6 = vsub.f32 %v5980_v9, %v935_v30  ;;  %4956 = vpow2.f32 %v1020_v26 }
 0x298   : > { %v6073_v29 = vpop.eup %4946  ;;  %1080 = vadd.xlane.f32.xlu1 %v6071_v27  ;;  %v937_v7 = vpop.xlane.xlu1 %936 }
 0x299   : > { %1074 = vadd.xlane.f32.xlu0 %v6073_v29  ;;  %v1030_v33 = vmul.f32 1.442695, %v980_v6  ;;  %v981_v34 = vsub.f32 %v5982_v12, %v937_v7  ;;  %v6079_v38 = vpop.eup %4948 }
 0x29a   : > { %v931_v40 = vpop.xlane.xlu0 %930 }
 0x29b   : > { %4958 = vpow2.f32 %v1030_v33  ;;  %v1032_v42 = vmul.f32 1.442695, %v981_v34  ;;  %v978_v58 = vsub.f32 %v5985_v14, %v931_v40 }
 0x29c   : > { %v6081_v45 = vpop.eup %4950  ;;  %1076 = vadd.xlane.f32.xlu1 %v6079_v38  ;;  %v933_v9 = vpop.xlane.xlu1 %932 }
 0x29d   : > { %1086 = vadd.xlane.f32.xlu0 %v6081_v45  ;;  %4960 = vpow2.f32 %v1032_v42  ;;  %v1026_v43 = vmul.f32 1.442695, %v978_v58  ;;  %v979_v59 = vsub.f32 %v5988_v15, %v933_v9  ;;  %v6087_v60 = vpop.eup %4952 }
 0x29f   : > { %4962 = vpow2.f32 %v1026_v43  ;;  %v1028_v61 = vmul.f32 1.442695, %v979_v59  ;;  %v939_v48 = vpop.xlane.xlu0 %938 }
 0x2a0   : > { %v6089_v12 = vpop.eup %4954  ;;  %1088 = vadd.xlane.f32.xlu1 %v6087_v60  ;;  %v982_v14 = vsub.f32 %v5992_v18, %v939_v48 }
 0x2a1   : > { %1082 = vadd.xlane.f32.xlu0 %v6089_v12  ;;  %4964 = vpow2.f32 %v1028_v61  ;;  %v941_v2 = vpop.xlane.xlu1 %940  ;;  %v6094_v54 = vpop.eup %4956 }
 0x2a2   : > { %v1034_v5 = vmul.f32 1.442695, %v982_v14  ;;  %v983_v15 = vsub.f32 %v5994_v23, %v941_v2 }
 0x2a4   : > { %1084 = vadd.xlane.f32.xlu1 %v6094_v54  ;;  %4966 = vpow2.f32 %v1034_v5  ;;  %v1036_v8 = vmul.f32 1.442695, %v983_v15 }
 0x2a5   : > { %v6098_v10 = vpop.eup %4958 }
 0x2a6   : > { %4968 = vpow2.f32 %v1036_v8  ;;  %v951_v11 = vpop.xlane.xlu0 %950  ;;  %1094 = vadd.xlane.f32.xlu0 %v6098_v10 }
 0x2a7   : > { %v6101_v57 = vpop.eup %4960  ;;  %v988_v18 = vsub.f32 %v5998_v28, %v951_v11 }
 0x2a8   : > { %v953_v16 = vpop.xlane.xlu1 %952  ;;  %1096 = vadd.xlane.f32.xlu1 %v6101_v57 }
 0x2a9   : > { %v6105_v17 = vpop.eup %4962  ;;  %v1046_v23 = vmul.f32 1.442695, %v988_v18  ;;  %v989_v20 = vsub.f32 %v6000_v32, %v953_v16 }
 0x2aa   : > { %v947_v19 = vpop.xlane.xlu0 %946  ;;  %1090 = vadd.xlane.f32.xlu0 %v6105_v17 }
 0x2ab   : > { %v6109_v24 = vpop.eup %4964  ;;  %4970 = vpow2.f32 %v1046_v23  ;;  %v1048_v4 = vmul.f32 1.442695, %v989_v20  ;;  %v986_v26 = vsub.f32 %v6003_v35, %v947_v19 }
 0x2ac   : > { %v949_v30 = vpop.xlane.xlu1 %948  ;;  %1092 = vadd.xlane.f32.xlu1 %v6109_v24 }
 0x2ad   : > { %4972 = vpow2.f32 %v1048_v4  ;;  %v1042_v28 = vmul.f32 1.442695, %v986_v26  ;;  %v987_v6 = vsub.f32 %v6006_v37, %v949_v30 }
 0x2ae   : > { %v6114_v7 = vpop.eup %4966  ;;  %v943_v33 = vpop.xlane.xlu0 %942 }
 0x2af   : > { %4974 = vpow2.f32 %v1042_v28  ;;  %v1044_v32 = vmul.f32 1.442695, %v987_v6  ;;  %v984_v34 = vsub.f32 %v6009_v41, %v943_v33  ;;  %1098 = vadd.xlane.f32.xlu0 %v6114_v7 }
 0x2b0   : > { %v6118_v40 = vpop.eup %4968  ;;  %v945_v42 = vpop.xlane.xlu1 %944 }
 0x2b1   : > { %4976 = vpow2.f32 %v1044_v32  ;;  %v1038_v35 = vmul.f32 1.442695, %v984_v34  ;;  %v985_v58 = vsub.f32 %v6012_v46, %v945_v42  ;;  %1100 = vadd.xlane.f32.xlu1 %v6118_v40 }
 0x2b2   : > { %v955_v9 = vpop.xlane.xlu0 %954 }
 0x2b3   : > { %4978 = vpow2.f32 %v1038_v35  ;;  %v1040_v37 = vmul.f32 1.442695, %v985_v58  ;;  %v990_v43 = vsub.f32 %v6015_v47, %v955_v9 }
 0x2b4   : > { %v957_v59 = vpop.xlane.xlu1 %956 }
 0x2b5   : > { %v6123_v61 = vpop.eup %4970  ;;  %4980 = vpow2.f32 %v1040_v37  ;;  %v1050_v41 = vmul.f32 1.442695, %v990_v43  ;;  %v991_v48 = vsub.f32 %v6018_v51, %v957_v59 }
 0x2b6   : > { %1110 = vadd.xlane.f32.xlu0 %v6123_v61  ;;  %v959_v14 = vpop.xlane.xlu0 %958 }
 0x2b7   : > { %v6127_v2 = vpop.eup %4972  ;;  %4982 = vpow2.f32 %v1050_v41  ;;  %v1052_v46 = vmul.f32 1.442695, %v991_v48  ;;  %v992_v5 = vsub.f32 %v6020_v52, %v959_v14 }
 0x2b8   : > { %1112 = vadd.xlane.f32.xlu1 %v6127_v2  ;;  %v961_v15 = vpop.xlane.xlu1 %960 }
 0x2b9   : > { %v6131_v47 = vpop.eup %4974  ;;  %4984 = vpow2.f32 %v1052_v46  ;;  %v1054_v8 = vmul.f32 1.442695, %v992_v5  ;;  %v993_v11 = vsub.f32 %v6023_v55, %v961_v15 }
 0x2ba   : > { %1106 = vadd.xlane.f32.xlu0 %v6131_v47 }
 0x2bb   : > { %v6135_v51 = vpop.eup %4976  ;;  %4986 = vpow2.f32 %v1054_v8  ;;  %v1056_v18 = vmul.f32 1.442695, %v993_v11 }
 0x2bc   : > { %1108 = vadd.xlane.f32.xlu1 %v6135_v51 }
 0x2bd   : > { %v6138_v16 = vpop.eup %4978  ;;  %4988 = vpow2.f32 %v1056_v18 }
 0x2be   : > { %1102 = vadd.xlane.f32.xlu0 %v6138_v16 }
 0x2bf   : > { %v6141_v52 = vpop.eup %4980 }
 0x2c0   : > { %1104 = vadd.xlane.f32.xlu1 %v6141_v52 }
 0x2c1   : > { %v6144_v23 = vpop.eup %4982 }
 0x2c2   : > { %1114 = vadd.xlane.f32.xlu0 %v6144_v23 }
 0x2c3   : > { %v6147_v55 = vpop.eup %4984 }
 0x2c4   : > { %1116 = vadd.xlane.f32.xlu1 %v6147_v55 }
 0x2c5   : > { %v6150_v20 = vpop.eup %4986 }
 0x2c6   : > { %1118 = vadd.xlane.f32.xlu0 %v6150_v20 }
 0x2c7   : > { %v6153_v19 = vpop.eup %4988 }
 0x2c8   : > { %1120 = vadd.xlane.f32.xlu1 %v6153_v19 }
 0x311   : > { %v1063_v4 = vpop.xlane.xlu0 %1062 }
 0x315   : > { %v1059_v26 = vpop.xlane.xlu0 %1058  ;;  %v1065_v30 = vpop.xlane.xlu1 %1064 }
 0x316   : > { %4990 = vrcp.f32 %v1065_v30 }
 0x317   : > { %4992 = vrcp.f32 %v1059_v26 }
 0x318   : > { %4994 = vrcp.f32 %v1063_v4 }
 0x319   : > { %v1061_v28 = vpop.xlane.xlu1 %1060 }
 0x31a   : > { %4996 = vrcp.f32 %v1061_v28  ;;  %v1071_v6 = vpop.xlane.xlu0 %1070 }
 0x31d   : > { %v1073_v33 = vpop.xlane.xlu1 %1072 }
 0x31e   : > { %v1067_v32 = vpop.xlane.xlu0 %1066  ;;  %4998 = vrcp.f32 %v1073_v33 }
 0x31f   : > { %5000 = vrcp.f32 %v1067_v32 }
 0x320   : > { %v4991_v34 = vpop.eup %4990  ;;  %5002 = vrcp.f32 %v1071_v6 }
 0x321   : > { %v1069_v42 = vpop.xlane.xlu1 %1068  ;;  %v4993_v35 = vpop.eup %4992  ;;  %v1157_v43 = vmul.f32 %v4991_v34, %v6042_v49 }
 0x322   : > { %5004 = vrcp.f32 %v1069_v42  ;;  %v1079_v58 = vpop.xlane.xlu0 %1078  ;;  %v4995_v9 = vpop.eup %4994  ;;  %v1154_v41 = vmul.f32 %v4993_v35, %v6039_v44 }
 0x323   : > { %v1156_v14 = vmul.f32 %v4995_v9, %v6035_v31 }
 0x324   : > { %v4997_v37 = vpop.eup %4996 }
 0x325   : > { %v1081_v59 = vpop.xlane.xlu1 %1080  ;;  %v1155_v48 = vmul.f32 %v4997_v37, %v6048_v63  ;;  %v1187_v15 = vpack.c.bf16 %v1157_v43, %v1156_v14 }
 0x326   : > { %v1075_v46 = vpop.xlane.xlu0 %1074  ;;  %5006 = vrcp.f32 %v1081_v59 }
 0x327   : > { %v1186_v5 = vpack.c.bf16 %v1155_v48, %v1154_v41  ;;  %5008 = vrcp.f32 %v1075_v46 }
 0x328   : > { %v4999_v8 = vpop.eup %4998  ;;  %5010 = vrcp.f32 %v1079_v58 }
 0x329   : > { %4757 = vmatprep.mubr.bf16.mxu1 %v1186_v5  ;;  %v1077_v11 = vpop.xlane.xlu1 %1076  ;;  %v5001_v18 = vpop.eup %5000  ;;  %v1161_v31 = vmul.f32 %v4999_v8, %v6056_v56 }
 0x32a   : > { %5012 = vrcp.f32 %v1077_v11  ;;  %v1087_v4 = vpop.xlane.xlu0 %1086  ;;  %4758 = vmatmul.mubr.bf16.vlgmr.msra.gmra.mrb[16].mxu1 %v1187_v15  ;;  %v5003_v49 = vpop.eup %5002  ;;  %v1158_v26 = vmul.f32 %v5001_v18, %v6059_v13 }
 0x32b   : > { %4813 = vmatpush3.bf16.msra.mxu1 %v5905_v25  ;;  %v1160_v6 = vmul.f32 %v5003_v49, %v6051_v1 }
 0x32c   : > { %v5005_v44 = vpop.eup %5004  ;;  %4806 = vmatprep.subr.bf16.mxu1 %v5901_v22 }
 0x32d   : > { %v1089_v63 = vpop.xlane.xlu1 %1088  ;;  %v1159_v30 = vmul.f32 %v5005_v44, %v6064_v62  ;;  %v1189_v25 = vpack.c.bf16 %v1161_v31, %v1160_v6 }
 0x32e   : > { %v1083_v28 = vpop.xlane.xlu0 %1082  ;;  %5014 = vrcp.f32 %v1089_v63 }
 0x32f   : > { %4814 = vmatpush3.bf16.msra.mxu1 %v5901_v22  ;;  %v1188_v33 = vpack.c.bf16 %v1159_v30, %v1158_v26  ;;  %5016 = vrcp.f32 %v1083_v28 }
 0x330   : > { %4807 = vmatprep.subr.bf16.mxu1 %v5924_v39  ;;  %v5007_v32 = vpop.eup %5006  ;;  %5018 = vrcp.f32 %v1087_v4 }
 0x331   : > { %4761 = vmatprep.mubr.bf16.mxu1 %v1188_v33  ;;  %v1085_v56 = vpop.xlane.xlu1 %1084  ;;  %v5009_v34 = vpop.eup %5008  ;;  %v1165_v22 = vmul.f32 %v5007_v32, %v6071_v27 }
 0x332   : > { %5020 = vrcp.f32 %v1085_v56  ;;  %4762 = vmatmul.mubr.bf16.gmra.mrb[20].mxu1 %v1189_v25  ;;  %v5011_v13 = vpop.eup %5010  ;;  %v1162_v42 = vmul.f32 %v5009_v34, %v6073_v29 }
 0x333   : > { %4815 = vmatpush3.bf16.msra.mxu1 %v5924_v39  ;;  %v1095_v1 = vpop.xlane.xlu0 %1094  ;;  %v1164_v9 = vmul.f32 %v5011_v13, %v6067_v21 }
 0x334   : > { %v5013_v62 = vpop.eup %5012  ;;  %4808 = vmatprep.subr.bf16.mxu1 %v5921_v36 }
 0x335   : > { %v1163_v35 = vmul.f32 %v5013_v62, %v6079_v38  ;;  %v1097_v58 = vpop.xlane.xlu1 %1096  ;;  %v1191_v43 = vpack.c.bf16 %v1165_v22, %v1164_v9 }
 0x336   : > { %5022 = vrcp.f32 %v1097_v58 }
 0x337   : > { %4816 = vmatpush3.bf16.msra.mxu1 %v5921_v36  ;;  %v1190_v37 = vpack.c.bf16 %v1163_v35, %v1162_v42  ;;  %v1091_v39 = vpop.xlane.xlu0 %1090 }
 0x338   : > { %4809 = vmatprep.subr.bf16.mxu1 %v5944_v53  ;;  %v5015_v59 = vpop.eup %5014  ;;  %5024 = vrcp.f32 %v1091_v39 }
 0x339   : > { %4765 = vmatprep.mubr.bf16.mxu1 %v1190_v37  ;;  %v5017_v41 = vpop.eup %5016  ;;  %5026 = vrcp.f32 %v1095_v1  ;;  %v1093_v27 = vpop.xlane.xlu1 %1092  ;;  %v1169_v36 = vmul.f32 %v5015_v59, %v6087_v60 }
 0x33a   : > { %4766 = vmatmul.mubr.bf16.gmra.mrb[24].mxu1 %v1191_v43  ;;  %v5019_v29 = vpop.eup %5018  ;;  %5028 = vrcp.f32 %v1093_v27  ;;  %v1166_v48 = vmul.f32 %v5017_v41, %v6089_v12 }
 0x33b   : > { %4817 = vmatpush3.bf16.msra.mxu1 %v5944_v53  ;;  %v1168_v46 = vmul.f32 %v5019_v29, %v6081_v45 }
 0x33c   : > { %v5021_v21 = vpop.eup %5020  ;;  %4810 = vmatprep.subr.bf16.mxu1 %v5941_v50  ;;  %v1099_v38 = vpop.xlane.xlu0 %1098 }
 0x33d   : > { %v1167_v14 = vmul.f32 %v5021_v21, %v6094_v54  ;;  %5030 = vrcp.f32 %v1099_v38  ;;  %v1193_v53 = vpack.c.bf16 %v1169_v36, %v1168_v46  ;;  %v6203_v21 = vld [vmem:[#allocation10] ss:$0 sm:$0xff]  ;;  %v5118_v36 = vld [vmem:[#allocation5 + $0x10] sm:$0xff] }
 0x33e   : > { %v1101_v15 = vpop.xlane.xlu1 %1100 }
 0x33f   : > { %4818 = vmatpush3.bf16.msra.mxu1 %v5941_v50  ;;  %v1192_v5 = vpack.c.bf16 %v1167_v14, %v1166_v48  ;;  %5032 = vrcp.f32 %v1101_v15 }
 0x340   : > { %4811 = vmatprep.subr.bf16.mxu1 %v5964_v3  ;;  %v5023_v8 = vpop.eup %5022 }
 0x341   : > { %4769 = vmatprep.mubr.bf16.mxu1 %v1192_v5  ;;  %v1173_v45 = vmul.f32 %v5023_v8, %v6101_v57 }
 0x342   : > { %4770 = vmatmul.mubr.bf16.gmra.mrb[28].mxu1 %v1193_v53  ;;  %v5025_v60 = vpop.eup %5024 }
 0x343   : > { %4819 = vmatpush3.bf16.msra.mxu1 %v5964_v3  ;;  %v5027_v12 = vpop.eup %5026  ;;  %v1111_v54 = vpop.xlane.xlu0 %1110  ;;  %v1170_v18 = vmul.f32 %v5025_v60, %v6105_v17 }
 0x344   : > { %4812 = vmatprep.subr.bf16.mxu1 %v5961_v0  ;;  %v5029_v11 = vpop.eup %5028  ;;  %v1172_v49 = vmul.f32 %v5027_v12, %v6098_v10 }
 0x345   : > { %v1113_v50 = vpop.xlane.xlu1 %1112  ;;  %v1171_v4 = vmul.f32 %v5029_v11, %v6109_v24 }
 0x346   : > { %5034 = vrcp.f32 %v1113_v50  ;;  %v1195_v63 = vpack.c.bf16 %v1173_v45, %v1172_v49 }
 0x347   : > { %4820 = vmatpush3.bf16.msra.mxu1 %v5961_v0  ;;  %v5031_v44 = vpop.eup %5030  ;;  %v1107_v31 = vpop.xlane.xlu0 %1106  ;;  %v1194_v3 = vpack.c.bf16 %v1171_v4, %v1170_v18  ;;  %v5123_v4 = vld [vmem:[#allocation5 + $0x20] sm:$0xff] }
 0x348   : > { %5036 = vrcp.f32 %v1107_v31  ;;  %v1174_v57 = vmul.f32 %v5031_v44, %v6114_v7  ;;  %v5124_v44 = vld [vmem:[#allocation5 + $0x38] sm:$0xff] }
 0x349   : > { %v5033_v26 = vpop.eup %5032  ;;  %5038 = vrcp.f32 %v1111_v54  ;;  %4789 = vmatprep.mubr.bf16.mxu0 %v1194_v3  ;;  %v1109_v30 = vpop.xlane.xlu1 %1108  ;;  %v5122_v54 = vld [vmem:[#allocation5 + $0x30] sm:$0xff] }
 0x34a   : > { %5040 = vrcp.f32 %v1109_v30  ;;  %4790 = vmatmul.mubr.bf16.vlgmr.msra.gmra.mrb[48].mxu0 %v1195_v63  ;;  %v1175_v17 = vmul.f32 %v5033_v26, %v6118_v40  ;;  %v5125_v26 = vld [vmem:[#allocation5 + $0x28] sm:$0xff] }
 0x34b   : > { %v1103_v24 = vpop.xlane.xlu0 %1102 }
 0x34c   : > { %5042 = vrcp.f32 %v1103_v24  ;;  %v1196_v10 = vpack.c.bf16 %v1175_v17, %v1174_v57 }
 0x34d   : > { %v1105_v0 = vpop.xlane.xlu1 %1104 }
 0x34e   : > { %5044 = vrcp.f32 %v1105_v0  ;;  %4793 = vmatprep.mubr.bf16.mxu0 %v1196_v10  ;;  %v5126_v10 = vld [vmem:[#allocation5 + $0x50] sm:$0xff] }
 0x34f   : > { %v1115_v28 = vpop.xlane.xlu0 %1114 }
 0x350   : > { %5046 = vrcp.f32 %v1115_v28  ;;  %v5035_v6 = vpop.eup %5034 }
 0x351   : > { %v1117_v33 = vpop.xlane.xlu1 %1116  ;;  %v1181_v13 = vmul.f32 %v5035_v6, %v6127_v2 }
 0x352   : > { %v5037_v25 = vpop.eup %5036  ;;  %5048 = vrcp.f32 %v1117_v33 }
 0x353   : > { %v5039_v32 = vpop.eup %5038  ;;  %v1119_v56 = vpop.xlane.xlu0 %1118  ;;  %v1178_v40 = vmul.f32 %v5037_v25, %v6131_v47  ;;  %v5127_v25 = vld [vmem:[#allocation5 + $0x40] sm:$0xff] }
 0x354   : > { %v5041_v34 = vpop.eup %5040  ;;  %5050 = vrcp.f32 %v1119_v56  ;;  %v1180_v22 = vmul.f32 %v5039_v32, %v6123_v61  ;;  %v5128_v56 = vld [vmem:[#allocation5 + $0x58] sm:$0xff] }
 0x355   : > { %v1121_v7 = vpop.xlane.xlu1 %1120  ;;  %v1179_v62 = vmul.f32 %v5041_v34, %v6135_v51 }
 0x356   : > { %v5043_v1 = vpop.eup %5042  ;;  %5052 = vrcp.f32 %v1121_v7  ;;  %v1199_v58 = vpack.c.bf16 %v1181_v13, %v1180_v22 }
 0x357   : > { %v1198_v42 = vpack.c.bf16 %v1179_v62, %v1178_v40  ;;  %v1176_v9 = vmul.f32 %v5043_v1, %v6138_v16  ;;  %v5129_v40 = vld [vmem:[#allocation5 + $0x48] sm:$0xff] }
 0x358   : > { %v5045_v35 = vpop.eup %5044 }
 0x359   : > { %4797 = vmatprep.mubr.bf16.mxu1 %v1198_v42  ;;  %v1177_v37 = vmul.f32 %v5045_v35, %v6141_v52  ;;  %v5130_v35 = vld [vmem:[#allocation5 + $0x70] sm:$0xff] }
 0x35a   : > { %v5047_v39 = vpop.eup %5046  ;;  %4798 = vmatmul.mubr.bf16.vlgmr.msra.gmra.mrb[32].mxu1 %v1199_v58 }
 0x35b   : > { %v1197_v2 = vpack.c.bf16 %v1177_v37, %v1176_v9  ;;  %v1182_v47 = vmul.f32 %v5047_v39, %v6144_v23  ;;  %v5119_v23 = vld [vmem:[#allocation5] sm:$0xff] }
 0x35c   : > { %v5049_v43 = vpop.eup %5048 }
 0x35d   : > { %4794 = vmatmul.mubr.bf16.gmra.mrb[52].mxu0 %v1197_v2  ;;  %v1183_v51 = vmul.f32 %v5049_v43, %v6147_v55  ;;  %v5120_v55 = vld [vmem:[#allocation5 + $0x18] sm:$0xff]  ;;  %v5131_v2 = vld [vmem:[#allocation5 + $0x60] sm:$0xff] }
 0x35e   : > { %v5051_v59 = vpop.eup %5050 }
 0x35f   : > { %v1200_v61 = vpack.c.bf16 %v1183_v51, %v1182_v47  ;;  %v1184_v27 = vmul.f32 %v5051_v59, %v6150_v20  ;;  %v5121_v20 = vld [vmem:[#allocation5 + $0x8] sm:$0xff]  ;;  %v5132_v47 = vld [vmem:[#allocation5 + $0x78] sm:$0xff] }
 0x360   : > { %v5053_v41 = vpop.eup %5052 }
 0x361   : > { %4801 = vmatprep.mubr.bf16.mxu1 %v1200_v61  ;;  %v1185_v29 = vmul.f32 %v5053_v41, %v6153_v19  ;;  %v5133_v41 = vld [vmem:[#allocation5 + $0x68] sm:$0xff] }
 0x363   : > { %v1201_v16 = vpack.c.bf16 %v1185_v29, %v1184_v27 }
 0x365   : > { %4802 = vmatmul.mubr.bf16.gmra.mrb[36].mxu1 %v1201_v16 }
 0x3fd   : > { %v4759_v52 = vpop.f32.mrb[16].mxu1 }
 0x3fe   : > { %v1398_v38 = vadd.f32 %v5118_v36, %v4759_v52  ;;  %v1236_v48 = vpop.f32.mrb[17].mxu1 }
 0x3ff   : > { %v4760_v14 = vpop.f32.mrb[18].mxu1  ;;  %v1396_v46 = vadd.f32 %v5119_v23, %v1236_v48 }
 0x400   : > { %v1399_v5 = vadd.f32 %v5120_v55, %v4760_v14  ;;  %v1239_v15 = vpop.f32.mrb[19].mxu1  ;;  %v6206_v53 = vadd.f32 %v6203_v21, %v1398_v38  ;;  %v5134_v38 = vld [vmem:[#allocation5 + $0x90] sm:$0xff] }
 0x401   : > { %v1397_v8 = vadd.f32 %v5121_v20, %v1239_v15  ;;  %v6214_v60 = vadd.f32 %v6203_v21, %v1396_v46  ;;  %v5135_v46 = vld [vmem:[#allocation5 + $0x80] sm:$0xff] }
 0x402   : > { %1471 = vadd.xlane.f32.xlu0 %v6206_v53  ;;  %v6210_v19 = vadd.f32 %v6203_v21, %v1399_v5  ;;  %v5136_v5 = vld [vmem:[#allocation5 + $0x98] sm:$0xff] }
 0x403   : > { %v6218_v50 = vadd.f32 %v6203_v21, %v1397_v8 }
 0x404   : > { %1473 = vadd.xlane.f32.xlu1 %v6210_v19 }
 0x405   : > { %v4763_v12 = vpop.f32.mrb[20].mxu1 }
 0x406   : > { %v1402_v11 = vadd.f32 %v5122_v54, %v4763_v12  ;;  %1467 = vadd.xlane.f32.xlu0 %v6214_v60  ;;  %v1252_v45 = vpop.f32.mrb[21].mxu1  ;;  %v5137_v12 = vld [vmem:[#allocation5 + $0x88] sm:$0xff] }
 0x407   : > { %v4764_v18 = vpop.f32.mrb[22].mxu1  ;;  %v1400_v49 = vadd.f32 %v5123_v4, %v1252_v45 }
 0x408   : > { %v1403_v31 = vadd.f32 %v5124_v44, %v4764_v18  ;;  %1469 = vadd.xlane.f32.xlu1 %v6218_v50  ;;  %v1255_v3 = vpop.f32.mrb[23].mxu1  ;;  %v6222_v63 = vadd.f32 %v6203_v21, %v1402_v11  ;;  %v5138_v44 = vld [vmem:[#allocation5 + $0xc0] sm:$0xff] }
 0x409   : > { %v1401_v30 = vadd.f32 %v5125_v26, %v1255_v3  ;;  %v6230_v17 = vadd.f32 %v6203_v21, %v1400_v49 }
 0x40a   : > { %1479 = vadd.xlane.f32.xlu0 %v6222_v63  ;;  %v6226_v57 = vadd.f32 %v6203_v21, %v1403_v31 }
 0x40b   : > { %v6234_v6 = vadd.f32 %v6203_v21, %v1401_v30 }
 0x40c   : > { %1481 = vadd.xlane.f32.xlu1 %v6226_v57 }
 0x40d   : > { %v4767_v24 = vpop.f32.mrb[24].mxu1 }
 0x40e   : > { %v1406_v0 = vadd.f32 %v5126_v10, %v4767_v24  ;;  %1475 = vadd.xlane.f32.xlu0 %v6230_v17  ;;  %v1268_v28 = vpop.f32.mrb[25].mxu1  ;;  %v5139_v24 = vld [vmem:[#allocation5 + $0xb0] sm:$0xff] }
 0x40f   : > { %v4768_v33 = vpop.f32.mrb[26].mxu1  ;;  %v1404_v32 = vadd.f32 %v5127_v25, %v1268_v28 }
 0x410   : > { %v1407_v34 = vadd.f32 %v5128_v56, %v4768_v33  ;;  %1477 = vadd.xlane.f32.xlu1 %v6234_v6  ;;  %v1271_v13 = vpop.f32.mrb[27].mxu1  ;;  %v6238_v7 = vadd.f32 %v6203_v21, %v1406_v0  ;;  %v5140_v0 = vld [vmem:[#allocation5 + $0xc8] sm:$0xff]  ;;  %v5141_v56 = vld [vmem:[#allocation5 + $0xa0] sm:$0xff] }
 0x411   : > { %v1405_v62 = vadd.f32 %v5129_v40, %v1271_v13  ;;  %v6246_v22 = vadd.f32 %v6203_v21, %v1404_v32  ;;  %v5142_v13 = vld [vmem:[#allocation5 + $0xb8] sm:$0xff] }
 0x412   : > { %1487 = vadd.xlane.f32.xlu0 %v6238_v7  ;;  %v6242_v1 = vadd.f32 %v6203_v21, %v1407_v34 }
 0x413   : > { %v6250_v37 = vadd.f32 %v6203_v21, %v1405_v62 }
 0x414   : > { %1489 = vadd.xlane.f32.xlu1 %v6242_v1 }
 0x415   : > { %v4771_v42 = vpop.f32.mrb[28].mxu1 }
 0x416   : > { %v1410_v58 = vadd.f32 %v5130_v35, %v4771_v42  ;;  %1483 = vadd.xlane.f32.xlu0 %v6246_v22  ;;  %v1284_v9 = vpop.f32.mrb[29].mxu1 }
 0x417   : > { %v4772_v39 = vpop.f32.mrb[30].mxu1  ;;  %v1408_v43 = vadd.f32 %v5131_v2, %v1284_v9  ;;  %v5144_v2 = vld [vmem:[#allocation5 + $0xd0] sm:$0xff] }
 0x418   : > { %v1411_v51 = vadd.f32 %v5132_v47, %v4772_v39  ;;  %1485 = vadd.xlane.f32.xlu1 %v6250_v37  ;;  %v1287_v59 = vpop.f32.mrb[31].mxu1  ;;  %v6254_v61 = vadd.f32 %v6203_v21, %v1410_v58  ;;  %v5143_v58 = vld [vmem:[#allocation5 + $0xa8] sm:$0xff] }
 0x419   : > { %v1409_v27 = vadd.f32 %v5133_v41, %v1287_v59  ;;  %v6262_v16 = vadd.f32 %v6203_v21, %v1408_v43  ;;  %v5145_v59 = vld [vmem:[#allocation5 + $0xd8] sm:$0xff] }
 0x41a   : > { %1495 = vadd.xlane.f32.xlu0 %v6254_v61  ;;  %v6258_v29 = vadd.f32 %v6203_v21, %v1411_v51 }
 0x41b   : > { %v6266_v52 = vadd.f32 %v6203_v21, %v1409_v27  ;;  %v5146_v27 = vld [vmem:[#allocation5 + $0xf0] sm:$0xff] }
 0x41c   : > { %1497 = vadd.xlane.f32.xlu1 %v6258_v29 }
 0x41d   : > { %v4791_v36 = vpop.f32.mrb[48].mxu0 }
 0x41e   : > { %1491 = vadd.xlane.f32.xlu0 %v6262_v16  ;;  %v1414_v48 = vadd.f32 %v5134_v38, %v4791_v36  ;;  %v1333_v14 = vpop.f32.mrb[49].mxu0 }
 0x41f   : > { %v4792_v23 = vpop.f32.mrb[50].mxu0  ;;  %v1412_v55 = vadd.f32 %v5135_v46, %v1333_v14  ;;  %v5147_v14 = vld [vmem:[#allocation5 + $0xe0] sm:$0xff] }
 0x420   : > { %1493 = vadd.xlane.f32.xlu1 %v6266_v52  ;;  %v1415_v15 = vadd.f32 %v5136_v5, %v4792_v23  ;;  %v1336_v20 = vpop.f32.mrb[51].mxu0  ;;  %v6270_v8 = vadd.f32 %v6203_v21, %v1414_v48 }
 0x421   : > { %v1413_v54 = vadd.f32 %v5137_v12, %v1336_v20  ;;  %v6278_v45 = vadd.f32 %v6203_v21, %v1412_v55  ;;  %v5148_v55 = vld [vmem:[#allocation5 + $0xf8] sm:$0xff] }
 0x422   : > { %1503 = vadd.xlane.f32.xlu0 %v6270_v8  ;;  %v6274_v11 = vadd.f32 %v6203_v21, %v1415_v15 }
 0x423   : > { %v6282_v18 = vadd.f32 %v6203_v21, %v1413_v54  ;;  %v5149_v54 = vld [vmem:[#allocation5 + $0xe8] sm:$0xff] }
 0x424   : > { %1505 = vadd.xlane.f32.xlu1 %v6274_v11 }
 0x426   : > { %1499 = vadd.xlane.f32.xlu0 %v6278_v45 }
 0x428   : > { %1501 = vadd.xlane.f32.xlu1 %v6282_v18 }
 0x42d   : > { %v4799_v4 = vpop.f32.mrb[32].mxu1 }
 0x42e   : > { %v1365_v49 = vpop.f32.mrb[33].mxu1  ;;  %v1422_v43 = vadd.f32 %v5144_v2, %v4799_v4 }
 0x42f   : > { %v1420_v31 = vadd.f32 %v5138_v44, %v1365_v49  ;;  %v4800_v3 = vpop.f32.mrb[34].mxu1 }
 0x430   : > { %v4795_v26 = vpop.f32.mrb[52].mxu0  ;;  %v1368_v30 = vpop.f32.mrb[35].mxu1  ;;  %v1423_v41 = vadd.f32 %v5145_v59, %v4800_v3  ;;  %v6308_v20 = vadd.f32 %v6203_v21, %v1422_v43 }
 0x431   : > { %v1418_v10 = vadd.f32 %v5139_v24, %v4795_v26  ;;  %v1421_v28 = vadd.f32 %v5140_v0, %v1368_v30  ;;  %v1349_v33 = vpop.f32.mrb[53].mxu0  ;;  %v6286_v25 = vadd.f32 %v6203_v21, %v1420_v31 }
 0x432   : > { %v4796_v32 = vpop.f32.mrb[54].mxu0  ;;  %v1416_v34 = vadd.f32 %v5141_v56, %v1349_v33  ;;  %v6318_v44 = vadd.f32 %v6203_v21, %v1423_v41 }
 0x433   : > { %v1419_v40 = vadd.f32 %v5142_v13, %v4796_v32  ;;  %v1352_v62 = vpop.f32.mrb[55].mxu0  ;;  %v6289_v42 = vadd.f32 %v6203_v21, %v1418_v10  ;;  %v6292_v35 = vadd.f32 %v6203_v21, %v1421_v28 }
 0x434   : > { %v1417_v9 = vadd.f32 %v5143_v58, %v1352_v62  ;;  %v6300_v47 = vadd.f32 %v6203_v21, %v1416_v34 }
 0x435   : > { %1511 = vadd.xlane.f32.xlu0 %v6289_v42  ;;  %v6296_v39 = vadd.f32 %v6203_v21, %v1419_v40 }
 0x436   : > { %v6304_v48 = vadd.f32 %v6203_v21, %v1417_v9 }
 0x437   : > { %1513 = vadd.xlane.f32.xlu1 %v6296_v39 }
 0x438   : > { %v4803_v51 = vpop.f32.mrb[36].mxu1 }
 0x439   : > { %v1426_v36 = vadd.f32 %v5146_v27, %v4803_v51  ;;  %v1381_v38 = vpop.f32.mrb[37].mxu1  ;;  %1507 = vadd.xlane.f32.xlu0 %v6300_v47 }
 0x43a   : > { %v1424_v23 = vadd.f32 %v5147_v14, %v1381_v38  ;;  %v4804_v46 = vpop.f32.mrb[38].mxu1 }
 0x43b   : > { %v1427_v5 = vadd.f32 %v5148_v55, %v4804_v46  ;;  %v1384_v15 = vpop.f32.mrb[39].mxu1  ;;  %1509 = vadd.xlane.f32.xlu1 %v6304_v48  ;;  %v6311_v12 = vadd.f32 %v6203_v21, %v1426_v36 }
 0x43c   : > { %v1425_v4 = vadd.f32 %v5149_v54, %v1384_v15  ;;  %v6314_v49 = vadd.f32 %v6203_v21, %v1424_v23 }
 0x43d   : > { %1519 = vadd.xlane.f32.xlu0 %v6308_v20  ;;  %v6321_v31 = vadd.f32 %v6203_v21, %v1427_v5 }
 0x43e   : > { %v6324_v3 = vadd.f32 %v6203_v21, %v1425_v4 }
 0x43f   : > { %1521 = vadd.xlane.f32.xlu1 %v6318_v44 }
 0x441   : > { %1515 = vadd.xlane.f32.xlu0 %v6286_v25 }
 0x443   : > { %1517 = vadd.xlane.f32.xlu1 %v6292_v35 }
 0x445   : > { %1523 = vadd.xlane.f32.xlu0 %v6314_v49 }
 0x447   : > { %1525 = vadd.xlane.f32.xlu1 %v6324_v3 }
 0x449   : > { %1527 = vadd.xlane.f32.xlu0 %v6311_v12 }
 0x44b   : > { %1529 = vadd.xlane.f32.xlu1 %v6321_v31 }
 0x48f   : > { %v1472_v26 = vpop.xlane.xlu0 %1471 }
 0x490   : > { %v1534_v30 = vmul.f32 0.0078125, %v1472_v26 }
 0x491   : > { %v1474_v24 = vpop.xlane.xlu1 %1473 }
 0x492   : > { %v6334_v21 = vsub.f32 %v6206_v53, %v1534_v30  ;;  %v1535_v10 = vmul.f32 0.0078125, %v1474_v24 }
 0x493   : > { %v1468_v0 = vpop.xlane.xlu0 %1467 }
 0x494   : > { %v6337_v28 = vsub.f32 %v6210_v19, %v1535_v10  ;;  %v1532_v33 = vmul.f32 0.0078125, %v1468_v0  ;;  %v1598_v32 = vmul.f32 %v6334_v21, %v6334_v21 }
 0x495   : > { %v1470_v56 = vpop.xlane.xlu1 %1469 }
 0x496   : > { %v6342_v34 = vsub.f32 %v6214_v60, %v1532_v33  ;;  %v1533_v13 = vmul.f32 0.0078125, %v1470_v56  ;;  %1632 = vadd.xlane.f32.xlu0 %v1598_v32  ;;  %v1599_v40 = vmul.f32 %v6337_v28, %v6337_v28 }
 0x497   : > { %v1480_v53 = vpop.xlane.xlu0 %1479 }
 0x498   : > { %v6347_v62 = vsub.f32 %v6218_v50, %v1533_v13  ;;  %v1538_v58 = vmul.f32 0.0078125, %v1480_v53  ;;  %1634 = vadd.xlane.f32.xlu1 %v1599_v40  ;;  %v1596_v19 = vmul.f32 %v6342_v34, %v6342_v34 }
 0x499   : > { %v1482_v9 = vpop.xlane.xlu1 %1481 }
 0x49a   : > { %v6352_v2 = vsub.f32 %v6222_v63, %v1538_v58  ;;  %v1539_v60 = vmul.f32 0.0078125, %v1482_v9  ;;  %1628 = vadd.xlane.f32.xlu0 %v1596_v19  ;;  %v1597_v43 = vmul.f32 %v6347_v62, %v6347_v62 }
 0x49b   : > { %v1476_v51 = vpop.xlane.xlu0 %1475 }
 0x49c   : > { %v6357_v59 = vsub.f32 %v6226_v57, %v1539_v60  ;;  %v1536_v50 = vmul.f32 0.0078125, %v1476_v51  ;;  %1630 = vadd.xlane.f32.xlu1 %v1597_v43  ;;  %v1602_v41 = vmul.f32 %v6352_v2, %v6352_v2 }
 0x49d   : > { %v1478_v27 = vpop.xlane.xlu1 %1477 }
 0x49e   : > { %v6362_v36 = vsub.f32 %v6230_v17, %v1536_v50  ;;  %v1537_v63 = vmul.f32 0.0078125, %v1478_v27  ;;  %1640 = vadd.xlane.f32.xlu0 %v1602_v41  ;;  %v1603_v38 = vmul.f32 %v6357_v59, %v6357_v59 }
 0x49f   : > { %v1488_v14 = vpop.xlane.xlu0 %1487 }
 0x4a0   : > { %v6367_v23 = vsub.f32 %v6234_v6, %v1537_v63  ;;  %v1542_v57 = vmul.f32 0.0078125, %v1488_v14  ;;  %1642 = vadd.xlane.f32.xlu1 %v1603_v38  ;;  %v1600_v46 = vmul.f32 %v6362_v36, %v6362_v36 }
 0x4a1   : > { %v1490_v55 = vpop.xlane.xlu1 %1489 }
 0x4a2   : > { %v6372_v5 = vsub.f32 %v6238_v7, %v1542_v57  ;;  %v1543_v17 = vmul.f32 0.0078125, %v1490_v55  ;;  %1636 = vadd.xlane.f32.xlu0 %v1600_v46  ;;  %v1601_v15 = vmul.f32 %v6367_v23, %v6367_v23 }
 0x4a3   : > { %v1484_v54 = vpop.xlane.xlu0 %1483 }
 0x4a4   : > { %v6377_v4 = vsub.f32 %v6242_v1, %v1543_v17  ;;  %v1540_v6 = vmul.f32 0.0078125, %v1484_v54  ;;  %1638 = vadd.xlane.f32.xlu1 %v1601_v15  ;;  %v1606_v26 = vmul.f32 %v6372_v5, %v6372_v5 }
 0x4a5   : > { %v1486_v30 = vpop.xlane.xlu1 %1485 }
 0x4a6   : > { %v6382_v24 = vsub.f32 %v6246_v22, %v1540_v6  ;;  %v1541_v7 = vmul.f32 0.0078125, %v1486_v30  ;;  %1648 = vadd.xlane.f32.xlu0 %v1606_v26  ;;  %v1607_v10 = vmul.f32 %v6377_v4, %v6377_v4 }
 0x4a7   : > { %v1496_v0 = vpop.xlane.xlu0 %1495 }
 0x4a8   : > { %v6387_v33 = vsub.f32 %v6250_v37, %v1541_v7  ;;  %v1546_v1 = vmul.f32 0.0078125, %v1496_v0  ;;  %1650 = vadd.xlane.f32.xlu1 %v1607_v10  ;;  %v1604_v32 = vmul.f32 %v6382_v24, %v6382_v24 }
 0x4a9   : > { %v1498_v56 = vpop.xlane.xlu1 %1497 }
 0x4aa   : > { %v6392_v13 = vsub.f32 %v6254_v61, %v1546_v1  ;;  %v1547_v22 = vmul.f32 0.0078125, %v1498_v56  ;;  %1644 = vadd.xlane.f32.xlu0 %v1604_v32  ;;  %v1605_v40 = vmul.f32 %v6387_v33, %v6387_v33 }
 0x4ab   : > { %v1492_v53 = vpop.xlane.xlu0 %1491 }
 0x4ac   : > { %v6397_v58 = vsub.f32 %v6258_v29, %v1547_v22  ;;  %v1544_v37 = vmul.f32 0.0078125, %v1492_v53  ;;  %1646 = vadd.xlane.f32.xlu1 %v1605_v40  ;;  %v1610_v19 = vmul.f32 %v6392_v13, %v6392_v13 }
 0x4ad   : > { %v1494_v9 = vpop.xlane.xlu1 %1493 }
 0x4ae   : > { %v6402_v60 = vsub.f32 %v6262_v16, %v1544_v37  ;;  %v1545_v61 = vmul.f32 0.0078125, %v1494_v9  ;;  %1656 = vadd.xlane.f32.xlu0 %v1610_v19  ;;  %v1611_v43 = vmul.f32 %v6397_v58, %v6397_v58 }
 0x4af   : > { %v1504_v29 = vpop.xlane.xlu0 %1503 }
 0x4b0   : > { %v6407_v51 = vsub.f32 %v6266_v52, %v1545_v61  ;;  %1658 = vadd.xlane.f32.xlu1 %v1611_v43  ;;  %v1608_v50 = vmul.f32 %v6402_v60, %v6402_v60  ;;  %v1550_v41 = vmul.f32 0.0078125, %v1504_v29 }
 0x4b1   : > { %v1506_v27 = vpop.xlane.xlu1 %1505 }
 0x4b2   : > { %1652 = vadd.xlane.f32.xlu0 %v1608_v50  ;;  %v1609_v16 = vmul.f32 %v6407_v51, %v6407_v51  ;;  %v6414_v63 = vsub.f32 %v6270_v8, %v1550_v41  ;;  %v1551_v38 = vmul.f32 0.0078125, %v1506_v27 }
 0x4b3   : > { %v1500_v14 = vpop.xlane.xlu0 %1499 }
 0x4b4   : > { %1654 = vadd.xlane.f32.xlu1 %v1609_v16  ;;  %v6417_v52 = vsub.f32 %v6274_v11, %v1551_v38  ;;  %v1548_v57 = vmul.f32 0.0078125, %v1500_v14  ;;  %v1614_v46 = vmul.f32 %v6414_v63, %v6414_v63 }
 0x4b5   : > { %v1502_v55 = vpop.xlane.xlu1 %1501 }
 0x4b6   : > { %v6422_v17 = vsub.f32 %v6278_v45, %v1548_v57  ;;  %v1549_v15 = vmul.f32 0.0078125, %v1502_v55  ;;  %1664 = vadd.xlane.f32.xlu0 %v1614_v46  ;;  %v1615_v8 = vmul.f32 %v6417_v52, %v6417_v52 }
 0x4b8   : > { %v6427_v54 = vsub.f32 %v6282_v18, %v1549_v15  ;;  %1666 = vadd.xlane.f32.xlu1 %v1615_v8  ;;  %v1612_v11 = vmul.f32 %v6422_v17, %v6422_v17 }
 0x4ba   : > { %1660 = vadd.xlane.f32.xlu0 %v1612_v11  ;;  %v1613_v6 = vmul.f32 %v6427_v54, %v6427_v54 }
 0x4bc   : > { %1662 = vadd.xlane.f32.xlu1 %v1613_v6 }
 0x4c2   : > { %v1512_v26 = vpop.xlane.xlu0 %1511 }
 0x4c3   : > { %v1554_v45 = vmul.f32 0.0078125, %v1512_v26 }
 0x4c4   : > { %v1514_v30 = vpop.xlane.xlu1 %1513 }
 0x4c5   : > { %v6434_v7 = vsub.f32 %v6289_v42, %v1554_v45  ;;  %v1555_v10 = vmul.f32 0.0078125, %v1514_v30 }
 0x4c6   : > { %v1508_v0 = vpop.xlane.xlu0 %1507 }
 0x4c7   : > { %v6437_v18 = vsub.f32 %v6296_v39, %v1555_v10  ;;  %v1552_v1 = vmul.f32 0.0078125, %v1508_v0  ;;  %v1618_v32 = vmul.f32 %v6434_v7, %v6434_v7 }
 0x4c8   : > { %v1510_v56 = vpop.xlane.xlu1 %1509 }
 0x4c9   : > { %v6442_v22 = vsub.f32 %v6300_v47, %v1552_v1  ;;  %v1553_v40 = vmul.f32 0.0078125, %v1510_v56  ;;  %1672 = vadd.xlane.f32.xlu0 %v1618_v32  ;;  %v1619_v53 = vmul.f32 %v6437_v18, %v6437_v18 }
 0x4ca   : > { %v1520_v42 = vpop.xlane.xlu0 %1519 }
 0x4cb   : > { %v6447_v37 = vsub.f32 %v6304_v48, %v1553_v40  ;;  %v1558_v19 = vmul.f32 0.0078125, %v1520_v42  ;;  %1674 = vadd.xlane.f32.xlu1 %v1619_v53  ;;  %v1616_v39 = vmul.f32 %v6442_v22, %v6442_v22 }
 0x4cc   : > { %v1522_v9 = vpop.xlane.xlu1 %1521 }
 0x4cd   : > { %v6452_v61 = vsub.f32 %v6308_v20, %v1558_v19  ;;  %v1559_v47 = vmul.f32 0.0078125, %v1522_v9  ;;  %1668 = vadd.xlane.f32.xlu0 %v1616_v39  ;;  %v1617_v43 = vmul.f32 %v6447_v37, %v6447_v37 }
 0x4ce   : > { %v1516_v29 = vpop.xlane.xlu0 %1515 }
 0x4cf   : > { %v6457_v50 = vsub.f32 %v6318_v44, %v1559_v47  ;;  %v1556_v48 = vmul.f32 0.0078125, %v1516_v29  ;;  %1670 = vadd.xlane.f32.xlu1 %v1617_v43  ;;  %v1622_v41 = vmul.f32 %v6452_v61, %v6452_v61 }
 0x4d0   : > { %v1518_v27 = vpop.xlane.xlu1 %1517 }
 0x4d1   : > { %v6462_v16 = vsub.f32 %v6286_v25, %v1556_v48  ;;  %v1557_v20 = vmul.f32 0.0078125, %v1518_v27  ;;  %1680 = vadd.xlane.f32.xlu0 %v1622_v41  ;;  %v1623_v38 = vmul.f32 %v6457_v50, %v6457_v50 }
 0x4d2   : > { %v1524_v14 = vpop.xlane.xlu0 %1523 }
 0x4d3   : > { %v6467_v57 = vsub.f32 %v6292_v35, %v1557_v20  ;;  %v1560_v44 = vmul.f32 0.0078125, %v1524_v14  ;;  %1682 = vadd.xlane.f32.xlu1 %v1623_v38  ;;  %v1620_v46 = vmul.f32 %v6462_v16, %v6462_v16 }
 0x4d4   : > { %v1526_v55 = vpop.xlane.xlu1 %1525 }
 0x4d5   : > { %v6472_v15 = vsub.f32 %v6314_v49, %v1560_v44  ;;  %v1561_v25 = vmul.f32 0.0078125, %v1526_v55  ;;  %1676 = vadd.xlane.f32.xlu0 %v1620_v46  ;;  %v1621_v8 = vmul.f32 %v6467_v57, %v6467_v57 }
 0x4d6   : > { %v1528_v11 = vpop.xlane.xlu0 %1527 }
 0x4d7   : > { %v6477_v6 = vsub.f32 %v6324_v3, %v1561_v25  ;;  %v1562_v35 = vmul.f32 0.0078125, %v1528_v11  ;;  %1678 = vadd.xlane.f32.xlu1 %v1621_v8  ;;  %v1624_v26 = vmul.f32 %v6472_v15, %v6472_v15  ;;  %v6493_v25 = vld [vmem:[#allocation10 + $0x1] ss:$0 sm:$0xff] }
 0x4d8   : > { %v1530_v45 = vpop.xlane.xlu1 %1529 }
 0x4d9   : > { %v6482_v30 = vsub.f32 %v6311_v12, %v1562_v35  ;;  %v1563_v49 = vmul.f32 0.0078125, %v1530_v45  ;;  %1684 = vadd.xlane.f32.xlu0 %v1624_v26  ;;  %v1625_v10 = vmul.f32 %v6477_v6, %v6477_v6 }
 0x4db   : > { %v6487_v0 = vsub.f32 %v6321_v31, %v1563_v49  ;;  %1686 = vadd.xlane.f32.xlu1 %v1625_v10  ;;  %v1626_v3 = vmul.f32 %v6482_v30, %v6482_v30  ;;  %v6496_v49 = vld [vmem:[#allocation10 + $0x2] ss:$0 sm:$0xff] }
 0x4dd   : > { %1688 = vadd.xlane.f32.xlu0 %v1626_v3  ;;  %v1627_v1 = vmul.f32 %v6487_v0, %v6487_v0 }
 0x4df   : > { %1690 = vadd.xlane.f32.xlu1 %v1627_v1 }
 0x523   : > { %v1633_v32 = vpop.xlane.xlu0 %1632 }
 0x524   : > { %v1694_v12 = vmul.f32 0.0078125, %v1633_v32 }
 0x525   : > { %v1635_v56 = vpop.xlane.xlu1 %1634 }
 0x526   : > { %v1726_v40 = vadd.f32 1e-05, %v1694_v12  ;;  %v1695_v53 = vmul.f32 0.0078125, %v1635_v56 }
 0x527   : > { %v1629_v42 = vpop.xlane.xlu0 %1628 }
 0x528   : > { %5054 = vrsqrt.f32 %v1726_v40  ;;  %v1727_v19 = vadd.f32 1e-05, %v1695_v53  ;;  %v1692_v39 = vmul.f32 0.0078125, %v1629_v42 }
 0x529   : > { %v1631_v31 = vpop.xlane.xlu1 %1630 }
 0x52a   : > { %5056 = vrsqrt.f32 %v1727_v19  ;;  %v1724_v9 = vadd.f32 1e-05, %v1692_v39  ;;  %v1693_v47 = vmul.f32 0.0078125, %v1631_v31 }
 0x52b   : > { %v1641_v43 = vpop.xlane.xlu0 %1640 }
 0x52c   : > { %5058 = vrsqrt.f32 %v1724_v9  ;;  %v1725_v29 = vadd.f32 1e-05, %v1693_v47  ;;  %v1698_v48 = vmul.f32 0.0078125, %v1641_v43 }
 0x52d   : > { %v1643_v41 = vpop.xlane.xlu1 %1642 }
 0x52e   : > { %5060 = vrsqrt.f32 %v1725_v29  ;;  %v1730_v27 = vadd.f32 1e-05, %v1698_v48  ;;  %v1699_v20 = vmul.f32 0.0078125, %v1643_v41 }
 0x52f   : > { %v1637_v38 = vpop.xlane.xlu0 %1636 }
 0x530   : > { %5062 = vrsqrt.f32 %v1730_v27  ;;  %v1731_v14 = vadd.f32 1e-05, %v1699_v20  ;;  %v1696_v44 = vmul.f32 0.0078125, %v1637_v38 }
 0x531   : > { %v1639_v46 = vpop.xlane.xlu1 %1638 }
 0x532   : > { %v5055_v55 = vpop.eup %5054  ;;  %5064 = vrsqrt.f32 %v1731_v14  ;;  %v1728_v8 = vadd.f32 1e-05, %v1696_v44  ;;  %v1697_v11 = vmul.f32 0.0078125, %v1639_v46 }
 0x533   : > { %v1790_v35 = vmul.f32 %v5055_v55, %v6334_v21  ;;  %v1649_v26 = vpop.xlane.xlu0 %1648 }
 0x534   : > { %v5057_v45 = vpop.eup %5056  ;;  %5066 = vrsqrt.f32 %v1728_v8  ;;  %v1729_v10 = vadd.f32 1e-05, %v1697_v11  ;;  %v1702_v3 = vmul.f32 0.0078125, %v1649_v26 }
 0x535   : > { %v1826_v1 = vmul.f32 %v6493_v25, %v1790_v35  ;;  %v1791_v32 = vmul.f32 %v5057_v45, %v6337_v28  ;;  %v1651_v12 = vpop.xlane.xlu1 %1650 }
 0x536   : > { %v5059_v56 = vpop.eup %5058  ;;  %5068 = vrsqrt.f32 %v1729_v10  ;;  %v1734_v40 = vadd.f32 1e-05, %v1702_v3  ;;  %v1703_v53 = vmul.f32 0.0078125, %v1651_v12 }
 0x537   : > { %v1862_v42 = vadd.f32 %v6496_v49, %v1826_v1  ;;  %v1827_v21 = vmul.f32 %v6493_v25, %v1791_v32  ;;  %v1788_v19 = vmul.f32 %v5059_v56, %v6342_v34  ;;  %v1645_v39 = vpop.xlane.xlu0 %1644 }
 0x538   : > { %v5061_v31 = vpop.eup %5060  ;;  %5070 = vrsqrt.f32 %v1734_v40  ;;  %v1735_v9 = vadd.f32 1e-05, %v1703_v53  ;;  %v1700_v47 = vmul.f32 0.0078125, %v1645_v39 }
 0x539   : > { %1894 = vst [vmem:[#allocation2 + $0x10] sm:$0xff] %v1862_v42  ;;  %v1863_v43 = vadd.f32 %v6496_v49, %v1827_v21  ;;  %v1824_v28 = vmul.f32 %v6493_v25, %v1788_v19  ;;  %v1789_v29 = vmul.f32 %v5061_v31, %v6347_v62  ;;  %v1647_v48 = vpop.xlane.xlu1 %1646 }
 0x53a   : > { %v5063_v41 = vpop.eup %5062  ;;  %5072 = vrsqrt.f32 %v1735_v9  ;;  %v1732_v27 = vadd.f32 1e-05, %v1700_v47  ;;  %v1701_v20 = vmul.f32 0.0078125, %v1647_v48 }
 0x53b   : > { %1895 = vst [vmem:[#allocation2 + $0x18] sm:$0xff] %v1863_v43  ;;  %v1925_v38 = vpack.c.bf16 %v1863_v43, %v1862_v42  ;;  %v1860_v34 = vadd.f32 %v6496_v49, %v1824_v28  ;;  %v1825_v14 = vmul.f32 %v6493_v25, %v1789_v29  ;;  %v1794_v44 = vmul.f32 %v5063_v41, %v6352_v2  ;;  %v1657_v46 = vpop.xlane.xlu0 %1656 }
 0x53c   : > { %v5065_v55 = vpop.eup %5064  ;;  %5074 = vrsqrt.f32 %v1732_v27  ;;  %v1733_v8 = vadd.f32 1e-05, %v1701_v20  ;;  %v1706_v11 = vmul.f32 0.0078125, %v1657_v46 }
 0x53d   : > { %1941 = vst [vmem:[#allocation3 + $0x8] sm:$0xff] %v1925_v38  ;;  %1892 = vst [vmem:[#allocation2] sm:$0xff] %v1860_v34  ;;  %v1861_v62 = vadd.f32 %v6496_v49, %v1825_v14  ;;  %v1830_v35 = vmul.f32 %v6493_v25, %v1794_v44  ;;  %v1795_v26 = vmul.f32 %v5065_v55, %v6357_v59  ;;  %v1659_v45 = vpop.xlane.xlu1 %1658 }
 0x53e   : > { %v5067_v10 = vpop.eup %5066  ;;  %5076 = vrsqrt.f32 %v1733_v8  ;;  %v1738_v3 = vadd.f32 1e-05, %v1706_v11  ;;  %v1707_v1 = vmul.f32 0.0078125, %v1659_v45 }
 0x53f   : > { %1893 = vst [vmem:[#allocation2 + $0x8] sm:$0xff] %v1861_v62  ;;  %v1924_v2 = vpack.c.bf16 %v1861_v62, %v1860_v34  ;;  %v1866_v32 = vadd.f32 %v6496_v49, %v1830_v35  ;;  %v1831_v12 = vmul.f32 %v6493_v25, %v1795_v26  ;;  %v1792_v56 = vmul.f32 %v5067_v10, %v6362_v36  ;;  %v1653_v40 = vpop.xlane.xlu0 %1652 }
 0x540   : > { %v5069_v53 = vpop.eup %5068  ;;  %5078 = vrsqrt.f32 %v1738_v3  ;;  %v1739_v42 = vadd.f32 1e-05, %v1707_v1  ;;  %v1704_v21 = vmul.f32 0.0078125, %v1653_v40 }
 0x541   : > { %1940 = vst [vmem:[#allocation3] sm:$0xff] %v1924_v2  ;;  %1898 = vst [vmem:[#allocation2 + $0x30] sm:$0xff] %v1866_v32  ;;  %v1867_v59 = vadd.f32 %v6496_v49, %v1831_v12  ;;  %v1828_v19 = vmul.f32 %v6493_v25, %v1792_v56  ;;  %v1793_v39 = vmul.f32 %v5069_v53, %v6367_v23  ;;  %v1655_v31 = vpop.xlane.xlu1 %1654 }
 0x542   : > { %v5071_v9 = vpop.eup %5070  ;;  %5080 = vrsqrt.f32 %v1739_v42  ;;  %v1736_v47 = vadd.f32 1e-05, %v1704_v21  ;;  %v1705_v43 = vmul.f32 0.0078125, %v1655_v31 }
 0x543   : > { %1899 = vst [vmem:[#allocation2 + $0x38] sm:$0xff] %v1867_v59  ;;  %v1927_v36 = vpack.c.bf16 %v1867_v59, %v1866_v32  ;;  %v1864_v28 = vadd.f32 %v6496_v49, %v1828_v19  ;;  %v1829_v29 = vmul.f32 %v6493_v25, %v1793_v39  ;;  %v1798_v48 = vmul.f32 %v5071_v9, %v6372_v5  ;;  %v1665_v20 = vpop.xlane.xlu0 %1664 }
 0x544   : > { %v5073_v41 = vpop.eup %5072  ;;  %5082 = vrsqrt.f32 %v1736_v47  ;;  %v1737_v27 = vadd.f32 1e-05, %v1705_v43  ;;  %v1710_v14 = vmul.f32 0.0078125, %v1665_v20 }
 0x545   : > { %1943 = vst [vmem:[#allocation3 + $0x18] sm:$0xff] %v1927_v36  ;;  %1896 = vst [vmem:[#allocation2 + $0x20] sm:$0xff] %v1864_v28  ;;  %v1865_v23 = vadd.f32 %v6496_v49, %v1829_v29  ;;  %v1834_v38 = vmul.f32 %v6493_v25, %v1798_v48  ;;  %v1799_v34 = vmul.f32 %v5073_v41, %v6377_v4  ;;  %v1667_v46 = vpop.xlane.xlu1 %1666 }
 0x546   : > { %v5075_v44 = vpop.eup %5074  ;;  %5084 = vrsqrt.f32 %v1737_v27  ;;  %v1742_v35 = vadd.f32 1e-05, %v1710_v14  ;;  %v1711_v26 = vmul.f32 0.0078125, %v1667_v46 }
 0x547   : > { %1897 = vst [vmem:[#allocation2 + $0x28] sm:$0xff] %v1865_v23  ;;  %v1926_v55 = vpack.c.bf16 %v1865_v23, %v1864_v28  ;;  %v1870_v5 = vadd.f32 %v6496_v49, %v1834_v38  ;;  %v1835_v8 = vmul.f32 %v6493_v25, %v1799_v34  ;;  %v1796_v11 = vmul.f32 %v5075_v44, %v6382_v24  ;;  %v1661_v45 = vpop.xlane.xlu0 %1660 }
 0x548   : > { %v5077_v62 = vpop.eup %5076  ;;  %v1708_v1 = vmul.f32 0.0078125, %v1661_v45  ;;  %5086 = vrsqrt.f32 %v1742_v35  ;;  %v1743_v32 = vadd.f32 1e-05, %v1711_v26 }
 0x549   : > { %1942 = vst [vmem:[#allocation3 + $0x10] sm:$0xff] %v1926_v55  ;;  %1902 = vst [vmem:[#allocation2 + $0x50] sm:$0xff] %v1870_v5  ;;  %v1871_v4 = vadd.f32 %v6496_v49, %v1835_v8  ;;  %v1832_v10 = vmul.f32 %v6493_v25, %v1796_v11  ;;  %v1797_v3 = vmul.f32 %v5077_v62, %v6387_v33  ;;  %v1663_v12 = vpop.xlane.xlu1 %1662 }
 0x54a   : > { %v5079_v2 = vpop.eup %5078  ;;  %5088 = vrsqrt.f32 %v1743_v32  ;;  %v1740_v21 = vadd.f32 1e-05, %v1708_v1  ;;  %v1709_v59 = vmul.f32 0.0078125, %v1663_v12 }
 0x54b   : > { %1903 = vst [vmem:[#allocation2 + $0x58] sm:$0xff] %v1871_v4  ;;  %v1929_v56 = vpack.c.bf16 %v1871_v4, %v1870_v5  ;;  %v1868_v24 = vadd.f32 %v6496_v49, %v1832_v10  ;;  %v1833_v40 = vmul.f32 %v6493_v25, %v1797_v3  ;;  %v1802_v53 = vmul.f32 %v5079_v2, %v6392_v13 }
 0x54c   : > { %v5081_v42 = vpop.eup %5080  ;;  %5090 = vrsqrt.f32 %v1740_v21  ;;  %v1741_v9 = vadd.f32 1e-05, %v1709_v59 }
 0x54d   : > { %1945 = vst [vmem:[#allocation3 + $0x28] sm:$0xff] %v1929_v56  ;;  %1900 = vst [vmem:[#allocation2 + $0x40] sm:$0xff] %v1868_v24  ;;  %v1869_v33 = vadd.f32 %v6496_v49, %v1833_v40  ;;  %v1838_v19 = vmul.f32 %v6493_v25, %v1802_v53  ;;  %v1803_v39 = vmul.f32 %v5081_v42, %v6397_v58 }
 0x54e   : > { %v5083_v31 = vpop.eup %5082  ;;  %5092 = vrsqrt.f32 %v1741_v9 }
 0x54f   : > { %1901 = vst [vmem:[#allocation2 + $0x48] sm:$0xff] %v1869_v33  ;;  %v1928_v47 = vpack.c.bf16 %v1869_v33, %v1868_v24  ;;  %v1874_v43 = vadd.f32 %v6496_v49, %v1838_v19  ;;  %v1839_v13 = vmul.f32 %v6493_v25, %v1803_v39  ;;  %v1800_v36 = vmul.f32 %v5083_v31, %v6402_v60 }
 0x550   : > { %v5085_v28 = vpop.eup %5084 }
 0x551   : > { %1944 = vst [vmem:[#allocation3 + $0x20] sm:$0xff] %v1928_v47  ;;  %1906 = vst [vmem:[#allocation2 + $0x70] sm:$0xff] %v1874_v43  ;;  %v1875_v29 = vadd.f32 %v6496_v49, %v1839_v13  ;;  %v1836_v48 = vmul.f32 %v6493_v25, %v1800_v36  ;;  %v1801_v58 = vmul.f32 %v5085_v28, %v6407_v51 }
 0x552   : > { %v5087_v23 = vpop.eup %5086 }
 0x553   : > { %1907 = vst [vmem:[#allocation2 + $0x78] sm:$0xff] %v1875_v29  ;;  %v1931_v41 = vpack.c.bf16 %v1875_v29, %v1874_v43  ;;  %v1872_v27 = vadd.f32 %v6496_v49, %v1836_v48  ;;  %v1837_v20 = vmul.f32 %v6493_v25, %v1801_v58  ;;  %v1806_v38 = vmul.f32 %v5087_v23, %v6414_v63 }
 0x554   : > { %v5089_v34 = vpop.eup %5088 }
 0x555   : > { %1947 = vst [vmem:[#allocation3 + $0x38] sm:$0xff] %v1931_v41  ;;  %1904 = vst [vmem:[#allocation2 + $0x60] sm:$0xff] %v1872_v27  ;;  %v1873_v60 = vadd.f32 %v6496_v49, %v1837_v20  ;;  %v1842_v44 = vmul.f32 %v6493_v25, %v1806_v38  ;;  %v1807_v51 = vmul.f32 %v5089_v34, %v6417_v52 }
 0x556   : > { %v1673_v46 = vpop.xlane.xlu0 %1672  ;;  %v5091_v55 = vpop.eup %5090 }
 0x557   : > { %1905 = vst [vmem:[#allocation2 + $0x68] sm:$0xff] %v1873_v60  ;;  %v1930_v14 = vpack.c.bf16 %v1873_v60, %v1872_v27  ;;  %v1714_v5 = vmul.f32 0.0078125, %v1673_v46  ;;  %v1878_v8 = vadd.f32 %v6496_v49, %v1842_v44  ;;  %v1843_v11 = vmul.f32 %v6493_v25, %v1807_v51 }
 0x558   : > { %v1804_v62 = vmul.f32 %v5091_v55, %v6422_v17  ;;  %v1675_v35 = vpop.xlane.xlu1 %1674  ;;  %v5093_v26 = vpop.eup %5092 }
 0x559   : > { %1946 = vst [vmem:[#allocation3 + $0x30] sm:$0xff] %v1930_v14  ;;  %v1746_v63 = vadd.f32 1e-05, %v1714_v5  ;;  %v1715_v45 = vmul.f32 0.0078125, %v1675_v35  ;;  %1910 = vst [vmem:[#allocation2 + $0x90] sm:$0xff] %v1878_v8  ;;  %v1879_v4 = vadd.f32 %v6496_v49, %v1843_v11  ;;  %v1805_v52 = vmul.f32 %v5093_v26, %v6427_v54 }
 0x55a   : > { %v1840_v10 = vmul.f32 %v6493_v25, %v1804_v62  ;;  %v1669_v3 = vpop.xlane.xlu0 %1668 }
 0x55b   : > { %5094 = vrsqrt.f32 %v1746_v63  ;;  %v1747_v1 = vadd.f32 1e-05, %v1715_v45  ;;  %v1712_v2 = vmul.f32 0.0078125, %v1669_v3  ;;  %1911 = vst [vmem:[#allocation2 + $0x98] sm:$0xff] %v1879_v4  ;;  %v1933_v32 = vpack.c.bf16 %v1879_v4, %v1878_v8 }
 0x55c   : > { %v1876_v12 = vadd.f32 %v6496_v49, %v1840_v10  ;;  %v1841_v17 = vmul.f32 %v6493_v25, %v1805_v52  ;;  %v1671_v56 = vpop.xlane.xlu1 %1670 }
 0x55d   : > { %5096 = vrsqrt.f32 %v1747_v1  ;;  %v1744_v24 = vadd.f32 1e-05, %v1712_v2  ;;  %v1713_v40 = vmul.f32 0.0078125, %v1671_v56  ;;  %1949 = vst [vmem:[#allocation3 + $0x48] sm:$0xff] %v1933_v32 }
 0x55e   : > { %1908 = vst [vmem:[#allocation2 + $0x80] sm:$0xff] %v1876_v12  ;;  %v1877_v53 = vadd.f32 %v6496_v49, %v1841_v17  ;;  %v1681_v42 = vpop.xlane.xlu0 %1680 }
 0x55f   : > { %5098 = vrsqrt.f32 %v1744_v24  ;;  %v1745_v54 = vadd.f32 1e-05, %v1713_v40  ;;  %v1718_v21 = vmul.f32 0.0078125, %v1681_v42 }
 0x560   : > { %1909 = vst [vmem:[#allocation2 + $0x88] sm:$0xff] %v1877_v53  ;;  %v1932_v59 = vpack.c.bf16 %v1877_v53, %v1876_v12  ;;  %v1683_v33 = vpop.xlane.xlu1 %1682 }
 0x561   : > { %5100 = vrsqrt.f32 %v1745_v54  ;;  %v1750_v19 = vadd.f32 1e-05, %v1718_v21  ;;  %v1719_v39 = vmul.f32 0.0078125, %v1683_v33 }
 0x562   : > { %1948 = vst [vmem:[#allocation3 + $0x40] sm:$0xff] %v1932_v59  ;;  %v1677_v31 = vpop.xlane.xlu0 %1676 }
 0x563   : > { %5102 = vrsqrt.f32 %v1750_v19  ;;  %v1751_v9 = vadd.f32 1e-05, %v1719_v39  ;;  %v1716_v47 = vmul.f32 0.0078125, %v1677_v31 }
 0x564   : > { %v1679_v43 = vpop.xlane.xlu1 %1678 }
 0x565   : > { %v5095_v13 = vpop.eup %5094  ;;  %5104 = vrsqrt.f32 %v1751_v9  ;;  %v1748_v36 = vadd.f32 1e-05, %v1716_v47  ;;  %v1717_v28 = vmul.f32 0.0078125, %v1679_v43 }
 0x566   : > { %v1810_v29 = vmul.f32 %v5095_v13, %v6434_v7  ;;  %v1685_v48 = vpop.xlane.xlu0 %1684 }
 0x567   : > { %v5097_v58 = vpop.eup %5096  ;;  %5106 = vrsqrt.f32 %v1748_v36  ;;  %v1749_v41 = vadd.f32 1e-05, %v1717_v28  ;;  %v1720_v27 = vmul.f32 0.0078125, %v1685_v48 }
 0x568   : > { %v1846_v20 = vmul.f32 %v6493_v25, %v1810_v29  ;;  %v1811_v23 = vmul.f32 %v5097_v58, %v6437_v18  ;;  %v1687_v60 = vpop.xlane.xlu1 %1686 }
 0x569   : > { %v5099_v38 = vpop.eup %5098  ;;  %5108 = vrsqrt.f32 %v1749_v41  ;;  %v1752_v34 = vadd.f32 1e-05, %v1720_v27  ;;  %v1721_v14 = vmul.f32 0.0078125, %v1687_v60 }
 0x56a   : > { %v1882_v44 = vadd.f32 %v6496_v49, %v1846_v20  ;;  %v1847_v51 = vmul.f32 %v6493_v25, %v1811_v23  ;;  %v1808_v7 = vmul.f32 %v5099_v38, %v6442_v22  ;;  %v1689_v46 = vpop.xlane.xlu0 %1688 }
 0x56b   : > { %v5101_v55 = vpop.eup %5100  ;;  %5110 = vrsqrt.f32 %v1752_v34  ;;  %v1753_v5 = vadd.f32 1e-05, %v1721_v14  ;;  %v1722_v8 = vmul.f32 0.0078125, %v1689_v46 }
 0x56c   : > { %1914 = vst [vmem:[#allocation2 + $0xb0] sm:$0xff] %v1882_v44  ;;  %v1883_v11 = vadd.f32 %v6496_v49, %v1847_v51  ;;  %v1844_v18 = vmul.f32 %v6493_v25, %v1808_v7  ;;  %v1809_v62 = vmul.f32 %v5101_v55, %v6447_v37  ;;  %v1691_v35 = vpop.xlane.xlu1 %1690 }
 0x56d   : > { %v5103_v26 = vpop.eup %5102  ;;  %5112 = vrsqrt.f32 %v1753_v5  ;;  %v1754_v63 = vadd.f32 1e-05, %v1722_v8  ;;  %v1723_v45 = vmul.f32 0.0078125, %v1691_v35 }
 0x56e   : > { %1915 = vst [vmem:[#allocation2 + $0xb8] sm:$0xff] %v1883_v11  ;;  %v1935_v4 = vpack.c.bf16 %v1883_v11, %v1882_v44  ;;  %v1880_v22 = vadd.f32 %v6496_v49, %v1844_v18  ;;  %v1845_v10 = vmul.f32 %v6493_v25, %v1809_v62  ;;  %v1814_v52 = vmul.f32 %v5103_v26, %v6452_v61 }
 0x56f   : > { %v5105_v3 = vpop.eup %5104  ;;  %5114 = vrsqrt.f32 %v1754_v63  ;;  %v1755_v1 = vadd.f32 1e-05, %v1723_v45 }
 0x570   : > { %1951 = vst [vmem:[#allocation3 + $0x58] sm:$0xff] %v1935_v4  ;;  %1912 = vst [vmem:[#allocation2 + $0xa0] sm:$0xff] %v1880_v22  ;;  %v1881_v37 = vadd.f32 %v6496_v49, %v1845_v10  ;;  %v1850_v2 = vmul.f32 %v6493_v25, %v1814_v52  ;;  %v1815_v32 = vmul.f32 %v5105_v3, %v6457_v50 }
 0x571   : > { %v5107_v12 = vpop.eup %5106  ;;  %5116 = vrsqrt.f32 %v1755_v1 }
 0x572   : > { %1913 = vst [vmem:[#allocation2 + $0xa8] sm:$0xff] %v1881_v37  ;;  %v1934_v17 = vpack.c.bf16 %v1881_v37, %v1880_v22  ;;  %v1886_v56 = vadd.f32 %v6496_v49, %v1850_v2  ;;  %v1851_v24 = vmul.f32 %v6493_v25, %v1815_v32  ;;  %v1812_v61 = vmul.f32 %v5107_v12, %v6462_v16 }
 0x573   : > { %v5109_v40 = vpop.eup %5108 }
 0x574   : > { %1950 = vst [vmem:[#allocation3 + $0x50] sm:$0xff] %v1934_v17  ;;  %1918 = vst [vmem:[#allocation2 + $0xd0] sm:$0xff] %v1886_v56  ;;  %v1887_v53 = vadd.f32 %v6496_v49, %v1851_v24  ;;  %v1848_v42 = vmul.f32 %v6493_v25, %v1812_v61  ;;  %v1813_v54 = vmul.f32 %v5109_v40, %v6467_v57 }
 0x575   : > { %v5111_v50 = vpop.eup %5110 }
 0x576   : > { %1919 = vst [vmem:[#allocation2 + $0xd8] sm:$0xff] %v1887_v53  ;;  %v1937_v21 = vpack.c.bf16 %v1887_v53, %v1886_v56  ;;  %v1884_v59 = vadd.f32 %v6496_v49, %v1848_v42  ;;  %v1849_v33 = vmul.f32 %v6493_v25, %v1813_v54  ;;  %v1816_v19 = vmul.f32 %v5111_v50, %v6472_v15 }
 0x577   : > { %v5113_v39 = vpop.eup %5112 }
 0x578   : > { %1953 = vst [vmem:[#allocation3 + $0x68] sm:$0xff] %v1937_v21  ;;  %1916 = vst [vmem:[#allocation2 + $0xc0] sm:$0xff] %v1884_v59  ;;  %v1885_v16 = vadd.f32 %v6496_v49, %v1849_v33  ;;  %v1852_v31 = vmul.f32 %v6493_v25, %v1816_v19  ;;  %v1817_v9 = vmul.f32 %v5113_v39, %v6477_v6 }
 0x579   : > { %v5115_v47 = vpop.eup %5114 }
 0x57a   : > { %1917 = vst [vmem:[#allocation2 + $0xc8] sm:$0xff] %v1885_v16  ;;  %v1936_v57 = vpack.c.bf16 %v1885_v16, %v1884_v59  ;;  %v1888_v43 = vadd.f32 %v6496_v49, %v1852_v31  ;;  %v1853_v13 = vmul.f32 %v6493_v25, %v1817_v9  ;;  %v1818_v36 = vmul.f32 %v5115_v47, %v6482_v30 }
 0x57b   : > { %v5117_v28 = vpop.eup %5116 }
 0x57c   : > { %1952 = vst [vmem:[#allocation3 + $0x60] sm:$0xff] %v1936_v57  ;;  %1920 = vst [vmem:[#allocation2 + $0xe0] sm:$0xff] %v1888_v43  ;;  %v1889_v15 = vadd.f32 %v6496_v49, %v1853_v13  ;;  %v1854_v29 = vmul.f32 %v6493_v25, %v1818_v36  ;;  %v1819_v48 = vmul.f32 %v5117_v28, %v6487_v0 }
 0x57e   : > { %1921 = vst [vmem:[#allocation2 + $0xe8] sm:$0xff] %v1889_v15  ;;  %v1938_v6 = vpack.c.bf16 %v1889_v15, %v1888_v43  ;;  %v1890_v58 = vadd.f32 %v6496_v49, %v1854_v29  ;;  %v1855_v41 = vmul.f32 %v6493_v25, %v1819_v48 }
 0x580   : > { %1954 = vst [vmem:[#allocation3 + $0x70] sm:$0xff] %v1938_v6  ;;  %1922 = vst [vmem:[#allocation2 + $0xf0] sm:$0xff] %v1890_v58  ;;  %v1891_v27 = vadd.f32 %v6496_v49, %v1855_v41 }
 0x582   : > { %1923 = vst [vmem:[#allocation2 + $0xf8] sm:$0xff] %v1891_v27  ;;  %v1939_v30 = vpack.c.bf16 %v1891_v27, %v1890_v58 }
 0x584   : > { %1955 = vst [vmem:[#allocation3 + $0x78] sm:$0xff] %v1939_v30 }
 0x585 PF: > { %v5150_v0 = vld [vmem:[%s5847_s9 + $0x4] ss:$16 sps:$4 sm:$0xff]   ;;  %v5152_v20 = vld [vmem:[%s5847_s9 + $0xc] ss:$16 sps:$4 sm:$0xff]   ;;  %v5559_v25 = vmov 0   ;;  %p7439_p9 = scmp.ne.s32.totalorder %s5617_s25, 0 }
 0x586   : > { %2218 = vmatprep.mubr.bf16.mxu0 %v5559_v25  ;;  %2411 = vmatprep.mubr.bf16.mxu1 %v5559_v25  ;;  %v5154_v49 = vld [vmem:[%s5847_s9] ss:$16 sps:$4 sm:$0xff]   ;;  %v5155_v23 = vld [vmem:[%s5847_s9 + $0x8] ss:$16 sps:$4 sm:$0xff]   ;;  %v5156_v60 = vld [vmem:[%s5847_s9 + $0x24] ss:$16 sps:$4 sm:$0xff]  }
 0x587   : > { %2186 = vmatprep.subr.bf16.mxu0 %v5150_v0  ;;  %2379 = vmatprep.subr.bf16.mxu1 %v5152_v20  ;;  %v5158_v38 = vld [vmem:[%s5847_s9 + $0x2c] ss:$16 sps:$4 sm:$0xff]   ;;  %v5160_v34 = vld [vmem:[%s5847_s9 + $0x20] ss:$16 sps:$4 sm:$0xff]   ;;  %v5161_v14 = vld [vmem:[%s5847_s9 + $0x28] ss:$16 sps:$4 sm:$0xff]  }
 0x588   : > { %2187 = vmatpush1.bf16.msra.mxu0 %v5154_v49  ;;  %2380 = vmatpush1.bf16.msra.mxu1 %v5155_v23  ;;  %v5162_v44 = vld [vmem:[%s5847_s9 + $0x44] ss:$16 sps:$4 sm:$0xff]   ;;  %v5164_v51 = vld [vmem:[%s5847_s9 + $0x4c] ss:$16 sps:$4 sm:$0xff]   ;;  %v5166_v7 = vld [vmem:[%s5847_s9 + $0x40] ss:$16 sps:$4 sm:$0xff]  }
 0x589   : > { %2188 = vmatprep.subr.bf16.mxu0 %v5156_v60  ;;  %2381 = vmatprep.subr.bf16.mxu1 %v5158_v38  ;;  %v5167_v46 = vld [vmem:[%s5847_s9 + $0x48] ss:$16 sps:$4 sm:$0xff]   ;;  %v5168_v55 = vld [vmem:[%s5847_s9 + $0x64] ss:$16 sps:$4 sm:$0xff]   ;;  %v5170_v5 = vld [vmem:[%s5847_s9 + $0x6c] ss:$16 sps:$4 sm:$0xff]  }
 0x58a   : > { %v5172_v8 = vld [vmem:[%s5847_s9 + $0x60] ss:$16 sps:$4 sm:$0xff]   ;;  %v5173_v11 = vld [vmem:[%s5847_s9 + $0x68] ss:$16 sps:$4 sm:$0xff]   ;;  %v5174_v18 = vld [vmem:[%s5847_s9 + $0x84] ss:$16 sps:$4 sm:$0xff]  }
 0x58b   : > { %v5176_v62 = vld [vmem:[%s5847_s9 + $0x8c] ss:$16 sps:$4 sm:$0xff]   ;;  %v5178_v35 = vld [vmem:[%s5847_s9 + $0x80] ss:$16 sps:$4 sm:$0xff]   ;;  %v5179_v26 = vld [vmem:[%s5847_s9 + $0x88] ss:$16 sps:$4 sm:$0xff]  }
 0x58c   : > { %2189 = vmatpush1.bf16.msra.mxu0 %v5160_v34  ;;  %2382 = vmatpush1.bf16.msra.mxu1 %v5161_v14  ;;  %v5180_v63 = vld [vmem:[%s5847_s9 + $0xa4] ss:$16 sps:$4 sm:$0xff]   ;;  %v5182_v45 = vld [vmem:[%s5847_s9 + $0xac] ss:$16 sps:$4 sm:$0xff]   ;;  %v5184_v4 = vld [vmem:[%s5847_s9 + $0xa0] ss:$16 sps:$4 sm:$0xff]  }
 0x58d   : > { %2190 = vmatprep.subr.bf16.mxu0 %v5162_v44  ;;  %2383 = vmatprep.subr.bf16.mxu1 %v5164_v51  ;;  %v5185_v22 = vld [vmem:[%s5847_s9 + $0xa8] ss:$16 sps:$4 sm:$0xff]   ;;  %v5186_v10 = vld [vmem:[%s5847_s9 + $0xc4] ss:$16 sps:$4 sm:$0xff]   ;;  %v5188_v52 = vld [vmem:[%s5847_s9 + $0xcc] ss:$16 sps:$4 sm:$0xff]  }
 0x58e   : > { %v5190_v3 = vld [vmem:[%s5847_s9 + $0xc0] ss:$16 sps:$4 sm:$0xff]   ;;  %v5191_v1 = vld [vmem:[%s5847_s9 + $0xc8] ss:$16 sps:$4 sm:$0xff]   ;;  %v5192_v37 = vld [vmem:[%s5847_s9 + $0xe4] ss:$16 sps:$4 sm:$0xff]  }
 0x58f   : > { %v5194_v2 = vld [vmem:[%s5847_s9 + $0xec] ss:$16 sps:$4 sm:$0xff]   ;;  %v5196_v32 = vld [vmem:[%s5847_s9 + $0xe0] ss:$16 sps:$4 sm:$0xff]   ;;  %v5197_v12 = vld [vmem:[%s5847_s9 + $0xe8] ss:$16 sps:$4 sm:$0xff]  }
 0x590   : > { %2191 = vmatpush1.bf16.msra.mxu0 %v5166_v7  ;;  %2384 = vmatpush1.bf16.msra.mxu1 %v5167_v46  ;;  %v5198_v17 = vld [vmem:[%s5855_s26 + $0x40] sm:$0xff]   ;;  %v1956_v24 = vld [vmem:[#allocation3] sm:$0xff]  ;;  %v5202_v53 = vld [vmem:[%s5855_s26 + $0x48] sm:$0xff]  }
 0x591   : > { %2192 = vmatprep.subr.bf16.mxu0 %v5168_v55  ;;  %2385 = vmatprep.subr.bf16.mxu1 %v5170_v5  ;;  %v5199_v56 = vld [vmem:[%s5855_s26 + $0xc0] sm:$0xff]   ;;  %v5203_v42 = vld [vmem:[%s5855_s26 + $0xc8] sm:$0xff]   ;;  %v5206_v21 = vld [vmem:[%s5855_s26 + $0x50] sm:$0xff]  }
 0x592   : > { %v5200_v61 = vld [vmem:[%s5855_s26] sm:$0xff]   ;;  %v5204_v54 = vld [vmem:[%s5855_s26 + $0x8] sm:$0xff]   ;;  %v1957_v59 = vld [vmem:[#allocation3 + $0x8] sm:$0xff] }
 0x593   : > { %v5201_v40 = vld [vmem:[%s5855_s26 + $0x80] sm:$0xff]   ;;  %v5205_v50 = vld [vmem:[%s5855_s26 + $0x88] sm:$0xff]   ;;  %v5207_v33 = vld [vmem:[%s5855_s26 + $0xd0] sm:$0xff]  }
 0x594   : > { %2193 = vmatpush1.bf16.msra.mxu0 %v5172_v8  ;;  %2386 = vmatpush1.bf16.msra.mxu1 %v5173_v11  ;;  %v5208_v19 = vld [vmem:[%s5855_s26 + $0x10] sm:$0xff]   ;;  %v5210_v16 = vld [vmem:[%s5855_s26 + $0x58] sm:$0xff]   ;;  %v5214_v57 = vld [vmem:[%s5855_s26 + $0x60] sm:$0xff]  }
 0x595   : > { %2194 = vmatprep.subr.bf16.mxu0 %v5174_v18  ;;  %2387 = vmatprep.subr.bf16.mxu1 %v5176_v62  ;;  %v5209_v39 = vld [vmem:[%s5855_s26 + $0x90] sm:$0xff]   ;;  %v5211_v31 = vld [vmem:[%s5855_s26 + $0xd8] sm:$0xff]   ;;  %v1958_v43 = vld [vmem:[#allocation3 + $0x10] sm:$0xff]  ;;  %v2006_v62 = vlaneseq }
 0x596   : > { %v5212_v9 = vld [vmem:[%s5855_s26 + $0x18] sm:$0xff]   ;;  %v5215_v13 = vld [vmem:[%s5855_s26 + $0xe0] sm:$0xff]   ;;  %v5218_v15 = vld [vmem:[%s5855_s26 + $0x68] sm:$0xff]  }
 0x597   : > { %v5213_v47 = vld [vmem:[%s5855_s26 + $0x98] sm:$0xff]   ;;  %v5216_v36 = vld [vmem:[%s5855_s26 + $0x20] sm:$0xff]   ;;  %v5219_v29 = vld [vmem:[%s5855_s26 + $0xe8] sm:$0xff]  }
 0x598   : > { %2195 = vmatpush1.bf16.msra.mxu0 %v5178_v35  ;;  %2388 = vmatpush1.bf16.msra.mxu1 %v5179_v26  ;;  %v5217_v28 = vld [vmem:[%s5855_s26 + $0xa0] sm:$0xff]   ;;  %v5220_v48 = vld [vmem:[%s5855_s26 + $0x28] sm:$0xff]   ;;  %v5222_v58 = vld [vmem:[%s5855_s26 + $0x70] sm:$0xff]   ;;  %v2007_v35 = vshrl.u32 %v2006_v62, 7 }
 0x599   : > { %2196 = vmatprep.subr.bf16.mxu0 %v5180_v63  ;;  %2389 = vmatprep.subr.bf16.mxu1 %v5182_v45  ;;  %v5221_v6 = vld [vmem:[%s5855_s26 + $0xa8] sm:$0xff]   ;;  %v5223_v41 = vld [vmem:[%s5855_s26 + $0xf0] sm:$0xff]   ;;  %v5226_v20 = vld [vmem:[%s5855_s26 + $0x78] sm:$0xff]  }
 0x59a   : > { %v1959_v27 = vld [vmem:[#allocation3 + $0x18] sm:$0xff]  ;;  %v5224_v30 = vld [vmem:[%s5855_s26 + $0x30] sm:$0xff]   ;;  %v5227_v49 = vld [vmem:[%s5855_s26 + $0xf8] sm:$0xff]   ;;  %v2008_v26 = vsub.s32 0, %v2007_v35  ;;  %v2016_v63 = vsub.s32 2, %v2007_v35 }
 0x59b   : > { %v5225_v0 = vld [vmem:[%s5855_s26 + $0xb0] sm:$0xff]   ;;  %v5228_v23 = vld [vmem:[%s5855_s26 + $0x38] sm:$0xff]   ;;  %v1962_v14 = vld [vmem:[#allocation3 + $0x30] sm:$0xff] }
 0x59c   : > { %2197 = vmatpush1.bf16.msra.mxu0 %v5184_v4  ;;  %2390 = vmatpush1.bf16.msra.mxu1 %v5185_v22  ;;  %v5229_v60 = vld [vmem:[%s5855_s26 + $0xb8] sm:$0xff]   ;;  %v1960_v38 = vld [vmem:[#allocation3 + $0x20] sm:$0xff]  ;;  %v1963_v44 = vld [vmem:[#allocation3 + $0x38] sm:$0xff]  ;;  %v2012_v4 = vsub.s32 1, %v2007_v35  ;;  %v2020_v22 = vsub.s32 3, %v2007_v35 }
 0x59d   : > { %2198 = vmatprep.subr.bf16.mxu0 %v5186_v10  ;;  %2391 = vmatprep.subr.bf16.mxu1 %v5188_v52  ;;  %v1961_v34 = vld [vmem:[#allocation3 + $0x28] sm:$0xff]  ;;  %v1964_v51 = vld [vmem:[#allocation3 + $0x40] sm:$0xff]  ;;  %v1966_v46 = vld [vmem:[#allocation3 + $0x50] sm:$0xff] }
 0x59e   : > { %v1965_v7 = vld [vmem:[#allocation3 + $0x48] sm:$0xff]  ;;  %v1967_v55 = vld [vmem:[#allocation3 + $0x58] sm:$0xff]  ;;  %v1968_v5 = vld [vmem:[#allocation3 + $0x60] sm:$0xff] }
 0x59f   : > { %v1969_v8 = vld [vmem:[#allocation3 + $0x68] sm:$0xff]  ;;  %v1970_v11 = vld [vmem:[#allocation3 + $0x70] sm:$0xff]  ;;  %v1971_v18 = vld [vmem:[#allocation3 + $0x78] sm:$0xff] }
 0x5a0   : > { %2199 = vmatpush1.bf16.msra.mxu0 %v5190_v3  ;;  %2392 = vmatpush1.bf16.msra.mxu1 %v5191_v1  ;;  %v2004_v45 = vld [vmem:[%s5853_s1] sm:$0xf] }
 0x5a1   : > { %2200 = vmatprep.subr.bf16.mxu0 %v5192_v37  ;;  %2393 = vmatprep.subr.bf16.mxu1 %v5194_v2  ;;  %v6690_v10 = vrot.slane %v2004_v45, %v2008_v26  ;;  %v6692_v52 = vrot.slane %v2004_v45, %v2016_v63  ;;  %v6694_v3 = vrot.slane %v2004_v45, %v2012_v4 }
 0x5a2   : > { %v6696_v1 = vrot.slane %v2004_v45, %v2020_v22 }
 0x5a4   : > { %2201 = vmatpush1.bf16.msra.mxu0 %v5196_v32  ;;  %2394 = vmatpush1.bf16.msra.mxu1 %v5197_v12 }
 0x5a5   : > { %4405 = vmatprep.subr.bf16.mxu0 %v5198_v17  ;;  %4517 = vmatprep.subr.bf16.mxu1 %v5199_v56 }
 0x5a7   : > { %2219 = vmatmul.mubr.bf16.vlgmr.msra.gmra.mrb[0].mxu0 %v1956_v24  ;;  %2412 = vmatmul.mubr.bf16.vlgmr.msra.gmra.mrb[0].mxu1 %v1956_v24 }
 0x5a8   : > { %2228 = vmatprep.mubr.bf16.mxu0 %v5559_v25  ;;  %2421 = vmatprep.mubr.bf16.mxu1 %v5559_v25 }
 0x5a9   : > { %4406 = vmatpush3.bf16.msra.mxu0 %v5200_v61  ;;  %4518 = vmatpush3.bf16.msra.mxu1 %v5201_v40 }
 0x5aa   : > { %4407 = vmatprep.subr.bf16.mxu0 %v5202_v53  ;;  %4519 = vmatprep.subr.bf16.mxu1 %v5203_v42 }
 0x5ad   : > { %4408 = vmatpush3.bf16.msra.mxu0 %v5204_v54  ;;  %4520 = vmatpush3.bf16.msra.mxu1 %v5205_v50 }
 0x5ae   : > { %4409 = vmatprep.subr.bf16.mxu0 %v5206_v21  ;;  %4521 = vmatprep.subr.bf16.mxu1 %v5207_v33 }
 0x5af   : > { %2229 = vmatmul.mubr.bf16.gmra.mrb[4].mxu0 %v1957_v59  ;;  %2422 = vmatmul.mubr.bf16.gmra.mrb[4].mxu1 %v1957_v59 }
 0x5b0   : > { %2238 = vmatprep.mubr.bf16.mxu0 %v5559_v25  ;;  %2431 = vmatprep.mubr.bf16.mxu1 %v5559_v25 }
 0x5b1   : > { %4410 = vmatpush3.bf16.msra.mxu0 %v5208_v19  ;;  %4522 = vmatpush3.bf16.msra.mxu1 %v5209_v39 }
 0x5b2   : > { %4411 = vmatprep.subr.bf16.mxu0 %v5210_v16  ;;  %4523 = vmatprep.subr.bf16.mxu1 %v5211_v31 }
 0x5b5   : > { %4412 = vmatpush3.bf16.msra.mxu0 %v5212_v9  ;;  %4524 = vmatpush3.bf16.msra.mxu1 %v5213_v47 }
 0x5b6   : > { %4413 = vmatprep.subr.bf16.mxu0 %v5214_v57  ;;  %4525 = vmatprep.subr.bf16.mxu1 %v5215_v13 }
 0x5b7   : > { %2239 = vmatmul.mubr.bf16.gmra.mrb[8].mxu0 %v1958_v43  ;;  %2432 = vmatmul.mubr.bf16.gmra.mrb[8].mxu1 %v1958_v43 }
 0x5b8   : > { %2248 = vmatprep.mubr.bf16.mxu0 %v5559_v25  ;;  %2441 = vmatprep.mubr.bf16.mxu1 %v5559_v25 }
 0x5b9   : > { %4414 = vmatpush3.bf16.msra.mxu0 %v5216_v36  ;;  %4526 = vmatpush3.bf16.msra.mxu1 %v5217_v28 }
 0x5ba   : > { %4415 = vmatprep.subr.bf16.mxu0 %v5218_v15  ;;  %4527 = vmatprep.subr.bf16.mxu1 %v5219_v29 }
 0x5bd   : > { %4416 = vmatpush3.bf16.msra.mxu0 %v5220_v48  ;;  %4528 = vmatpush3.bf16.msra.mxu1 %v5221_v6 }
 0x5be   : > { %4417 = vmatprep.subr.bf16.mxu0 %v5222_v58  ;;  %4529 = vmatprep.subr.bf16.mxu1 %v5223_v41 }
 0x5bf   : > { %2249 = vmatmul.mubr.bf16.gmra.mrb[12].mxu0 %v1959_v27  ;;  %2442 = vmatmul.mubr.bf16.gmra.mrb[12].mxu1 %v1959_v27 }
 0x5c0   : > { %2258 = vmatprep.mubr.bf16.mxu0 %v5559_v25  ;;  %2451 = vmatprep.mubr.bf16.mxu1 %v5559_v25 }
 0x5c1   : > { %4418 = vmatpush3.bf16.msra.mxu0 %v5224_v30  ;;  %4530 = vmatpush3.bf16.msra.mxu1 %v5225_v0 }
 0x5c2   : > { %4419 = vmatprep.subr.bf16.mxu0 %v5226_v20  ;;  %4531 = vmatprep.subr.bf16.mxu1 %v5227_v49 }
 0x5c5   : > { %4420 = vmatpush3.bf16.msra.mxu0 %v5228_v23  ;;  %4532 = vmatpush3.bf16.msra.mxu1 %v5229_v60 }
 0x5c7   : > { %2259 = vmatmul.mubr.bf16.gmra.mrb[16].mxu0 %v1960_v38  ;;  %2452 = vmatmul.mubr.bf16.gmra.mrb[16].mxu1 %v1960_v38 }
 0x5c8   : > { %2268 = vmatprep.mubr.bf16.mxu0 %v5559_v25  ;;  %2461 = vmatprep.mubr.bf16.mxu1 %v5559_v25 }
 0x5cf   : > { %2269 = vmatmul.mubr.bf16.gmra.mrb[20].mxu0 %v1961_v34  ;;  %2462 = vmatmul.mubr.bf16.gmra.mrb[20].mxu1 %v1961_v34 }
 0x5d0   : > { %2278 = vmatprep.mubr.bf16.mxu0 %v5559_v25  ;;  %2471 = vmatprep.mubr.bf16.mxu1 %v5559_v25 }
 0x5d7   : > { %2279 = vmatmul.mubr.bf16.gmra.mrb[24].mxu0 %v1962_v14  ;;  %2472 = vmatmul.mubr.bf16.gmra.mrb[24].mxu1 %v1962_v14 }
 0x5d8   : > { %2288 = vmatprep.mubr.bf16.mxu0 %v5559_v25  ;;  %2481 = vmatprep.mubr.bf16.mxu1 %v5559_v25 }
 0x5df   : > { %2289 = vmatmul.mubr.bf16.gmra.mrb[28].mxu0 %v1963_v44  ;;  %2482 = vmatmul.mubr.bf16.gmra.mrb[28].mxu1 %v1963_v44 }
 0x5e0   : > { %2298 = vmatprep.mubr.bf16.mxu0 %v5559_v25  ;;  %2491 = vmatprep.mubr.bf16.mxu1 %v5559_v25 }
 0x5e7   : > { %2299 = vmatmul.mubr.bf16.gmra.mrb[32].mxu0 %v1964_v51  ;;  %2492 = vmatmul.mubr.bf16.gmra.mrb[32].mxu1 %v1964_v51 }
 0x5e8   : > { %2308 = vmatprep.mubr.bf16.mxu0 %v5559_v25  ;;  %2501 = vmatprep.mubr.bf16.mxu1 %v5559_v25 }
 0x5ef   : > { %2309 = vmatmul.mubr.bf16.gmra.mrb[36].mxu0 %v1965_v7  ;;  %2502 = vmatmul.mubr.bf16.gmra.mrb[36].mxu1 %v1965_v7 }
 0x5f0   : > { %2318 = vmatprep.mubr.bf16.mxu0 %v5559_v25  ;;  %2511 = vmatprep.mubr.bf16.mxu1 %v5559_v25 }
 0x5f7   : > { %2319 = vmatmul.mubr.bf16.gmra.mrb[40].mxu0 %v1966_v46  ;;  %2512 = vmatmul.mubr.bf16.gmra.mrb[40].mxu1 %v1966_v46 }
 0x5f8   : > { %2328 = vmatprep.mubr.bf16.mxu0 %v5559_v25  ;;  %2521 = vmatprep.mubr.bf16.mxu1 %v5559_v25 }
 0x5ff   : > { %2329 = vmatmul.mubr.bf16.gmra.mrb[44].mxu0 %v1967_v55  ;;  %2522 = vmatmul.mubr.bf16.gmra.mrb[44].mxu1 %v1967_v55 }
 0x600   : > { %2338 = vmatprep.mubr.bf16.mxu0 %v5559_v25  ;;  %2531 = vmatprep.mubr.bf16.mxu1 %v5559_v25 }
 0x607   : > { %2339 = vmatmul.mubr.bf16.gmra.mrb[48].mxu0 %v1968_v5  ;;  %2532 = vmatmul.mubr.bf16.gmra.mrb[48].mxu1 %v1968_v5 }
 0x608   : > { %2348 = vmatprep.mubr.bf16.mxu0 %v5559_v25  ;;  %2541 = vmatprep.mubr.bf16.mxu1 %v5559_v25 }
 0x60f   : > { %2349 = vmatmul.mubr.bf16.gmra.mrb[52].mxu0 %v1969_v8  ;;  %2542 = vmatmul.mubr.bf16.gmra.mrb[52].mxu1 %v1969_v8 }
 0x610   : > { %2358 = vmatprep.mubr.bf16.mxu0 %v5559_v25  ;;  %2551 = vmatprep.mubr.bf16.mxu1 %v5559_v25 }
 0x617   : > { %2359 = vmatmul.mubr.bf16.gmra.mrb[56].mxu0 %v1970_v11  ;;  %2552 = vmatmul.mubr.bf16.gmra.mrb[56].mxu1 %v1970_v11 }
 0x618   : > { %2368 = vmatprep.mubr.bf16.mxu0 %v5559_v25  ;;  %2561 = vmatprep.mubr.bf16.mxu1 %v5559_v25 }
 0x61f   : > { %2369 = vmatmul.mubr.bf16.gmra.mrb[60].mxu0 %v1971_v18  ;;  %2562 = vmatmul.mubr.bf16.gmra.mrb[60].mxu1 %v1971_v18 }
 0x67a   : > { %v2220_v37 = vpop.f32.mrb[0].mxu0  ;;  %v2413_v25 = vpop.f32.mrb[0].mxu1 }
 0x67b   : > { %v2221_v2 = vadd.f32 %v2220_v37, %v6690_v10  ;;  %v2414_v32 = vadd.f32 %v2413_v25, %v6692_v52  ;;  %v2222_v12 = vpop.f32.mrb[1].mxu0  ;;  %v2415_v17 = vpop.f32.mrb[1].mxu1 }
 0x67c   : > { %v2223_v56 = vadd.f32 %v2222_v12, %v6694_v3  ;;  %v2416_v24 = vadd.f32 %v2415_v17, %v6696_v1  ;;  %v2224_v61 = vpop.f32.mrb[2].mxu0  ;;  %v2417_v40 = vpop.f32.mrb[2].mxu1 }
 0x67d   : > { %v2225_v53 = vadd.f32 %v2224_v61, %v6690_v10  ;;  %v2418_v42 = vadd.f32 %v2417_v40, %v6692_v52  ;;  %v2226_v54 = vpop.f32.mrb[3].mxu0  ;;  %v2419_v50 = vpop.f32.mrb[3].mxu1  ;;  %v2572_v33 = vmax.f32 %v2221_v2, 0.0  ;;  %v2574_v19 = vmax.f32 %v2414_v32, 0.0 }
 0x67e   : > { %v2227_v21 = vadd.f32 %v2226_v54, %v6694_v3  ;;  %v2420_v59 = vadd.f32 %v2419_v50, %v6696_v1  ;;  %v2573_v31 = vmax.f32 %v2223_v56, 0.0  ;;  %v2575_v9 = vmax.f32 %v2416_v24, 0.0 }
 0x67f   : > { %v2576_v39 = vmax.f32 %v2225_v53, 0.0  ;;  %v2578_v16 = vmax.f32 %v2418_v42, 0.0 }
 0x680   : > { %v2577_v47 = vmax.f32 %v2227_v21, 0.0  ;;  %v2579_v57 = vmax.f32 %v2420_v59, 0.0 }
 0x681   : > { %v2700_v43 = vpack.c.bf16 %v2576_v39, %v2572_v33  ;;  %v2702_v13 = vpack.c.bf16 %v2578_v16, %v2574_v19 }
 0x682   : > { %v2701_v36 = vpack.c.bf16 %v2577_v47, %v2573_v31  ;;  %v2703_v28 = vpack.c.bf16 %v2579_v57, %v2575_v9  ;;  %v2230_v15 = vpop.f32.mrb[4].mxu0  ;;  %v2423_v29 = vpop.f32.mrb[4].mxu1 }
 0x683   : > { %v2231_v48 = vadd.f32 %v2230_v15, %v6690_v10  ;;  %v2424_v6 = vadd.f32 %v2423_v29, %v6692_v52  ;;  %v2232_v58 = vpop.f32.mrb[5].mxu0  ;;  %v2425_v41 = vpop.f32.mrb[5].mxu1 }
 0x684   : > { %v2233_v27 = vadd.f32 %v2232_v58, %v6694_v3  ;;  %v2426_v30 = vadd.f32 %v2425_v41, %v6696_v1  ;;  %v2234_v0 = vpop.f32.mrb[6].mxu0  ;;  %v2427_v20 = vpop.f32.mrb[6].mxu1  ;;  %3052 = vmatprep.mubr.bf16.mxu0 %v2701_v36  ;;  %3213 = vmatprep.mubr.bf16.mxu1 %v2703_v28 }
 0x685   : > { %v2235_v49 = vadd.f32 %v2234_v0, %v6690_v10  ;;  %v2428_v23 = vadd.f32 %v2427_v20, %v6692_v52  ;;  %v2236_v60 = vpop.f32.mrb[7].mxu0  ;;  %v2429_v38 = vpop.f32.mrb[7].mxu1  ;;  %3053 = vmatmul.mubr.bf16.vlgmr.msra.gmra.mrb[64].mxu0 %v2700_v43  ;;  %3214 = vmatmul.mubr.bf16.vlgmr.msra.gmra.mrb[64].mxu1 %v2702_v13  ;;  %v2580_v44 = vmax.f32 %v2231_v48, 0.0  ;;  %v2582_v51 = vmax.f32 %v2424_v6, 0.0 }
 0x686   : > { %v2237_v34 = vadd.f32 %v2236_v60, %v6694_v3  ;;  %v2430_v14 = vadd.f32 %v2429_v38, %v6696_v1  ;;  %v2581_v55 = vmax.f32 %v2233_v27, 0.0  ;;  %v2583_v5 = vmax.f32 %v2426_v30, 0.0 }
 0x687   : > { %v2584_v7 = vmax.f32 %v2235_v49, 0.0  ;;  %v2586_v46 = vmax.f32 %v2428_v23, 0.0 }
 0x688   : > { %v2585_v8 = vmax.f32 %v2237_v34, 0.0  ;;  %v2587_v11 = vmax.f32 %v2430_v14, 0.0 }
 0x689   : > { %v2704_v18 = vpack.c.bf16 %v2584_v7, %v2580_v44  ;;  %v2706_v62 = vpack.c.bf16 %v2586_v46, %v2582_v51 }
 0x68a   : > { %v2705_v35 = vpack.c.bf16 %v2585_v8, %v2581_v55  ;;  %v2707_v26 = vpack.c.bf16 %v2587_v11, %v2583_v5  ;;  %v2240_v63 = vpop.f32.mrb[8].mxu0  ;;  %v2433_v45 = vpop.f32.mrb[8].mxu1 }
 0x68b   : > { %v2241_v4 = vadd.f32 %v2240_v63, %v6690_v10  ;;  %v2434_v22 = vadd.f32 %v2433_v45, %v6692_v52  ;;  %v2242_v37 = vpop.f32.mrb[9].mxu0  ;;  %v2435_v25 = vpop.f32.mrb[9].mxu1 }
 0x68c   : > { %v2243_v2 = vadd.f32 %v2242_v37, %v6694_v3  ;;  %v2436_v32 = vadd.f32 %v2435_v25, %v6696_v1  ;;  %v2244_v12 = vpop.f32.mrb[10].mxu0  ;;  %v2437_v17 = vpop.f32.mrb[10].mxu1  ;;  %3060 = vmatprep.mubr.bf16.mxu0 %v2705_v35  ;;  %3221 = vmatprep.mubr.bf16.mxu1 %v2707_v26 }
 0x68d   : > { %v2245_v56 = vadd.f32 %v2244_v12, %v6690_v10  ;;  %v2438_v24 = vadd.f32 %v2437_v17, %v6692_v52  ;;  %v2246_v61 = vpop.f32.mrb[11].mxu0  ;;  %v2439_v40 = vpop.f32.mrb[11].mxu1  ;;  %3061 = vmatmul.mubr.bf16.gmra.mrb[68].mxu0 %v2704_v18  ;;  %3222 = vmatmul.mubr.bf16.gmra.mrb[68].mxu1 %v2706_v62  ;;  %v2588_v54 = vmax.f32 %v2241_v4, 0.0  ;;  %v2590_v50 = vmax.f32 %v2434_v22, 0.0 }
 0x68e   : > { %v2247_v53 = vadd.f32 %v2246_v61, %v6694_v3  ;;  %v2440_v42 = vadd.f32 %v2439_v40, %v6696_v1  ;;  %v2589_v33 = vmax.f32 %v2243_v2, 0.0  ;;  %v2591_v19 = vmax.f32 %v2436_v32, 0.0 }
 0x68f   : > { %v2592_v21 = vmax.f32 %v2245_v56, 0.0  ;;  %v2594_v59 = vmax.f32 %v2438_v24, 0.0 }
 0x690   : > { %v2593_v39 = vmax.f32 %v2247_v53, 0.0  ;;  %v2595_v16 = vmax.f32 %v2440_v42, 0.0 }
 0x691   : > { %v2708_v31 = vpack.c.bf16 %v2592_v21, %v2588_v54  ;;  %v2710_v9 = vpack.c.bf16 %v2594_v59, %v2590_v50 }
 0x692   : > { %v2709_v47 = vpack.c.bf16 %v2593_v39, %v2589_v33  ;;  %v2711_v57 = vpack.c.bf16 %v2595_v16, %v2591_v19  ;;  %v2250_v43 = vpop.f32.mrb[12].mxu0  ;;  %v2443_v13 = vpop.f32.mrb[12].mxu1 }
 0x693   : > { %v2251_v36 = vadd.f32 %v2250_v43, %v6690_v10  ;;  %v2444_v28 = vadd.f32 %v2443_v13, %v6692_v52  ;;  %v2252_v15 = vpop.f32.mrb[13].mxu0  ;;  %v2445_v29 = vpop.f32.mrb[13].mxu1 }
 0x694   : > { %v2253_v48 = vadd.f32 %v2252_v15, %v6694_v3  ;;  %v2446_v6 = vadd.f32 %v2445_v29, %v6696_v1  ;;  %v2254_v58 = vpop.f32.mrb[14].mxu0  ;;  %v2447_v41 = vpop.f32.mrb[14].mxu1  ;;  %3068 = vmatprep.mubr.bf16.mxu0 %v2709_v47  ;;  %3229 = vmatprep.mubr.bf16.mxu1 %v2711_v57 }
 0x695   : > { %v2255_v27 = vadd.f32 %v2254_v58, %v6690_v10  ;;  %v2448_v30 = vadd.f32 %v2447_v41, %v6692_v52  ;;  %v2256_v0 = vpop.f32.mrb[15].mxu0  ;;  %v2449_v20 = vpop.f32.mrb[15].mxu1  ;;  %3069 = vmatmul.mubr.bf16.gmra.mrb[72].mxu0 %v2708_v31  ;;  %3230 = vmatmul.mubr.bf16.gmra.mrb[72].mxu1 %v2710_v9  ;;  %v2596_v60 = vmax.f32 %v2251_v36, 0.0  ;;  %v2598_v38 = vmax.f32 %v2444_v28, 0.0 }
 0x696   : > { %v2257_v49 = vadd.f32 %v2256_v0, %v6694_v3  ;;  %v2450_v23 = vadd.f32 %v2449_v20, %v6696_v1  ;;  %v2597_v44 = vmax.f32 %v2253_v48, 0.0  ;;  %v2599_v51 = vmax.f32 %v2446_v6, 0.0 }
 0x697   : > { %v2600_v34 = vmax.f32 %v2255_v27, 0.0  ;;  %v2602_v14 = vmax.f32 %v2448_v30, 0.0 }
 0x698   : > { %v2601_v7 = vmax.f32 %v2257_v49, 0.0  ;;  %v2603_v46 = vmax.f32 %v2450_v23, 0.0 }
 0x699   : > { %v2712_v55 = vpack.c.bf16 %v2600_v34, %v2596_v60  ;;  %v2714_v5 = vpack.c.bf16 %v2602_v14, %v2598_v38 }
 0x69a   : > { %v2713_v8 = vpack.c.bf16 %v2601_v7, %v2597_v44  ;;  %v2715_v11 = vpack.c.bf16 %v2603_v46, %v2599_v51  ;;  %v2260_v18 = vpop.f32.mrb[16].mxu0  ;;  %v2453_v62 = vpop.f32.mrb[16].mxu1 }
 0x69b   : > { %v2261_v35 = vadd.f32 %v2260_v18, %v6690_v10  ;;  %v2454_v26 = vadd.f32 %v2453_v62, %v6692_v52  ;;  %v2262_v63 = vpop.f32.mrb[17].mxu0  ;;  %v2455_v45 = vpop.f32.mrb[17].mxu1 }
 0x69c   : > { %v2263_v4 = vadd.f32 %v2262_v63, %v6694_v3  ;;  %v2456_v22 = vadd.f32 %v2455_v45, %v6696_v1  ;;  %v2264_v37 = vpop.f32.mrb[18].mxu0  ;;  %v2457_v25 = vpop.f32.mrb[18].mxu1  ;;  %3076 = vmatprep.mubr.bf16.mxu0 %v2713_v8  ;;  %3237 = vmatprep.mubr.bf16.mxu1 %v2715_v11 }
 0x69d   : > { %v2265_v2 = vadd.f32 %v2264_v37, %v6690_v10  ;;  %v2458_v32 = vadd.f32 %v2457_v25, %v6692_v52  ;;  %v2266_v12 = vpop.f32.mrb[19].mxu0  ;;  %v2459_v17 = vpop.f32.mrb[19].mxu1  ;;  %3077 = vmatmul.mubr.bf16.gmra.mrb[76].mxu0 %v2712_v55  ;;  %3238 = vmatmul.mubr.bf16.gmra.mrb[76].mxu1 %v2714_v5  ;;  %v2604_v61 = vmax.f32 %v2261_v35, 0.0  ;;  %v2606_v40 = vmax.f32 %v2454_v26, 0.0 }
 0x69e   : > { %v2267_v56 = vadd.f32 %v2266_v12, %v6694_v3  ;;  %v2460_v24 = vadd.f32 %v2459_v17, %v6696_v1  ;;  %v2605_v54 = vmax.f32 %v2263_v4, 0.0  ;;  %v2607_v50 = vmax.f32 %v2456_v22, 0.0 }
 0x69f   : > { %v2608_v53 = vmax.f32 %v2265_v2, 0.0  ;;  %v2610_v42 = vmax.f32 %v2458_v32, 0.0 }
 0x6a0   : > { %v2609_v21 = vmax.f32 %v2267_v56, 0.0  ;;  %v2611_v59 = vmax.f32 %v2460_v24, 0.0 }
 0x6a1   : > { %v2716_v33 = vpack.c.bf16 %v2608_v53, %v2604_v61  ;;  %v2718_v19 = vpack.c.bf16 %v2610_v42, %v2606_v40 }
 0x6a2   : > { %v2717_v39 = vpack.c.bf16 %v2609_v21, %v2605_v54  ;;  %v2719_v16 = vpack.c.bf16 %v2611_v59, %v2607_v50  ;;  %v2270_v31 = vpop.f32.mrb[20].mxu0  ;;  %v2463_v9 = vpop.f32.mrb[20].mxu1 }
 0x6a3   : > { %v2271_v47 = vadd.f32 %v2270_v31, %v6690_v10  ;;  %v2464_v57 = vadd.f32 %v2463_v9, %v6692_v52  ;;  %v2272_v43 = vpop.f32.mrb[21].mxu0  ;;  %v2465_v13 = vpop.f32.mrb[21].mxu1 }
 0x6a4   : > { %v2273_v36 = vadd.f32 %v2272_v43, %v6694_v3  ;;  %v2466_v28 = vadd.f32 %v2465_v13, %v6696_v1  ;;  %v2274_v15 = vpop.f32.mrb[22].mxu0  ;;  %v2467_v29 = vpop.f32.mrb[22].mxu1  ;;  %3084 = vmatprep.mubr.bf16.mxu0 %v2717_v39  ;;  %3245 = vmatprep.mubr.bf16.mxu1 %v2719_v16 }
 0x6a5   : > { %v2275_v48 = vadd.f32 %v2274_v15, %v6690_v10  ;;  %v2468_v6 = vadd.f32 %v2467_v29, %v6692_v52  ;;  %v2276_v58 = vpop.f32.mrb[23].mxu0  ;;  %v2469_v41 = vpop.f32.mrb[23].mxu1  ;;  %3085 = vmatmul.mubr.bf16.gmra.mrb[80].mxu0 %v2716_v33  ;;  %3246 = vmatmul.mubr.bf16.gmra.mrb[80].mxu1 %v2718_v19  ;;  %v2612_v0 = vmax.f32 %v2271_v47, 0.0  ;;  %v2614_v20 = vmax.f32 %v2464_v57, 0.0 }
 0x6a6   : > { %v2277_v27 = vadd.f32 %v2276_v58, %v6694_v3  ;;  %v2470_v30 = vadd.f32 %v2469_v41, %v6696_v1  ;;  %v2613_v60 = vmax.f32 %v2273_v36, 0.0  ;;  %v2615_v38 = vmax.f32 %v2466_v28, 0.0 }
 0x6a7   : > { %v2616_v49 = vmax.f32 %v2275_v48, 0.0  ;;  %v2618_v23 = vmax.f32 %v2468_v6, 0.0 }
 0x6a8   : > { %v2617_v34 = vmax.f32 %v2277_v27, 0.0  ;;  %v2619_v14 = vmax.f32 %v2470_v30, 0.0 }
 0x6a9   : > { %v2720_v44 = vpack.c.bf16 %v2616_v49, %v2612_v0  ;;  %v2722_v51 = vpack.c.bf16 %v2618_v23, %v2614_v20 }
 0x6aa   : > { %v2721_v7 = vpack.c.bf16 %v2617_v34, %v2613_v60  ;;  %v2723_v46 = vpack.c.bf16 %v2619_v14, %v2615_v38  ;;  %v2280_v55 = vpop.f32.mrb[24].mxu0  ;;  %v2473_v5 = vpop.f32.mrb[24].mxu1 }
 0x6ab   : > { %v2281_v8 = vadd.f32 %v2280_v55, %v6690_v10  ;;  %v2474_v11 = vadd.f32 %v2473_v5, %v6692_v52  ;;  %v2282_v18 = vpop.f32.mrb[25].mxu0  ;;  %v2475_v62 = vpop.f32.mrb[25].mxu1 }
 0x6ac   : > { %v2283_v35 = vadd.f32 %v2282_v18, %v6694_v3  ;;  %v2476_v26 = vadd.f32 %v2475_v62, %v6696_v1  ;;  %v2284_v63 = vpop.f32.mrb[26].mxu0  ;;  %v2477_v45 = vpop.f32.mrb[26].mxu1  ;;  %3092 = vmatprep.mubr.bf16.mxu0 %v2721_v7  ;;  %3253 = vmatprep.mubr.bf16.mxu1 %v2723_v46 }
 0x6ad   : > { %v2285_v4 = vadd.f32 %v2284_v63, %v6690_v10  ;;  %v2478_v22 = vadd.f32 %v2477_v45, %v6692_v52  ;;  %v2286_v37 = vpop.f32.mrb[27].mxu0  ;;  %v2479_v25 = vpop.f32.mrb[27].mxu1  ;;  %3093 = vmatmul.mubr.bf16.gmra.mrb[84].mxu0 %v2720_v44  ;;  %3254 = vmatmul.mubr.bf16.gmra.mrb[84].mxu1 %v2722_v51  ;;  %v2620_v12 = vmax.f32 %v2281_v8, 0.0  ;;  %v2622_v17 = vmax.f32 %v2474_v11, 0.0 }
 0x6ae   : > { %v2287_v2 = vadd.f32 %v2286_v37, %v6694_v3  ;;  %v2480_v32 = vadd.f32 %v2479_v25, %v6696_v1  ;;  %v2621_v61 = vmax.f32 %v2283_v35, 0.0  ;;  %v2623_v40 = vmax.f32 %v2476_v26, 0.0 }
 0x6af   : > { %v2624_v56 = vmax.f32 %v2285_v4, 0.0  ;;  %v2626_v24 = vmax.f32 %v2478_v22, 0.0 }
 0x6b0   : > { %v2625_v53 = vmax.f32 %v2287_v2, 0.0  ;;  %v2627_v42 = vmax.f32 %v2480_v32, 0.0 }
 0x6b1   : > { %v2724_v54 = vpack.c.bf16 %v2624_v56, %v2620_v12  ;;  %v2726_v50 = vpack.c.bf16 %v2626_v24, %v2622_v17 }
 0x6b2   : > { %v2725_v21 = vpack.c.bf16 %v2625_v53, %v2621_v61  ;;  %v2727_v59 = vpack.c.bf16 %v2627_v42, %v2623_v40  ;;  %v2290_v33 = vpop.f32.mrb[28].mxu0  ;;  %v2483_v19 = vpop.f32.mrb[28].mxu1 }
 0x6b3   : > { %v2291_v39 = vadd.f32 %v2290_v33, %v6690_v10  ;;  %v2484_v16 = vadd.f32 %v2483_v19, %v6692_v52  ;;  %v2292_v31 = vpop.f32.mrb[29].mxu0  ;;  %v2485_v9 = vpop.f32.mrb[29].mxu1 }
 0x6b4   : > { %v2293_v47 = vadd.f32 %v2292_v31, %v6694_v3  ;;  %v2486_v57 = vadd.f32 %v2485_v9, %v6696_v1  ;;  %v2294_v43 = vpop.f32.mrb[30].mxu0  ;;  %v2487_v13 = vpop.f32.mrb[30].mxu1  ;;  %3100 = vmatprep.mubr.bf16.mxu0 %v2725_v21  ;;  %3261 = vmatprep.mubr.bf16.mxu1 %v2727_v59 }
 0x6b5   : > { %v2295_v36 = vadd.f32 %v2294_v43, %v6690_v10  ;;  %v2488_v28 = vadd.f32 %v2487_v13, %v6692_v52  ;;  %v2296_v15 = vpop.f32.mrb[31].mxu0  ;;  %v2489_v29 = vpop.f32.mrb[31].mxu1  ;;  %3101 = vmatmul.mubr.bf16.gmra.mrb[88].mxu0 %v2724_v54  ;;  %3262 = vmatmul.mubr.bf16.gmra.mrb[88].mxu1 %v2726_v50  ;;  %v2628_v58 = vmax.f32 %v2291_v39, 0.0  ;;  %v2630_v41 = vmax.f32 %v2484_v16, 0.0 }
 0x6b6   : > { %v2297_v48 = vadd.f32 %v2296_v15, %v6694_v3  ;;  %v2490_v6 = vadd.f32 %v2489_v29, %v6696_v1  ;;  %v2629_v0 = vmax.f32 %v2293_v47, 0.0  ;;  %v2631_v20 = vmax.f32 %v2486_v57, 0.0 }
 0x6b7   : > { %v2632_v27 = vmax.f32 %v2295_v36, 0.0  ;;  %v2634_v30 = vmax.f32 %v2488_v28, 0.0 }
 0x6b8   : > { %v2633_v49 = vmax.f32 %v2297_v48, 0.0  ;;  %v2635_v23 = vmax.f32 %v2490_v6, 0.0 }
 0x6b9   : > { %v2728_v60 = vpack.c.bf16 %v2632_v27, %v2628_v58  ;;  %v2730_v38 = vpack.c.bf16 %v2634_v30, %v2630_v41 }
 0x6ba   : > { %v2729_v34 = vpack.c.bf16 %v2633_v49, %v2629_v0  ;;  %v2731_v14 = vpack.c.bf16 %v2635_v23, %v2631_v20  ;;  %v2300_v44 = vpop.f32.mrb[32].mxu0  ;;  %v2493_v51 = vpop.f32.mrb[32].mxu1 }
 0x6bb   : > { %v2301_v7 = vadd.f32 %v2300_v44, %v6690_v10  ;;  %v2494_v46 = vadd.f32 %v2493_v51, %v6692_v52  ;;  %v2302_v55 = vpop.f32.mrb[33].mxu0  ;;  %v2495_v5 = vpop.f32.mrb[33].mxu1 }
 0x6bc   : > { %v2303_v8 = vadd.f32 %v2302_v55, %v6694_v3  ;;  %v2496_v11 = vadd.f32 %v2495_v5, %v6696_v1  ;;  %v2304_v18 = vpop.f32.mrb[34].mxu0  ;;  %v2497_v62 = vpop.f32.mrb[34].mxu1  ;;  %3108 = vmatprep.mubr.bf16.mxu0 %v2729_v34  ;;  %3269 = vmatprep.mubr.bf16.mxu1 %v2731_v14 }
 0x6bd   : > { %v2305_v35 = vadd.f32 %v2304_v18, %v6690_v10  ;;  %v2498_v26 = vadd.f32 %v2497_v62, %v6692_v52  ;;  %v2306_v63 = vpop.f32.mrb[35].mxu0  ;;  %v2499_v45 = vpop.f32.mrb[35].mxu1  ;;  %3109 = vmatmul.mubr.bf16.gmra.mrb[92].mxu0 %v2728_v60  ;;  %3270 = vmatmul.mubr.bf16.gmra.mrb[92].mxu1 %v2730_v38  ;;  %v2636_v37 = vmax.f32 %v2301_v7, 0.0  ;;  %v2638_v25 = vmax.f32 %v2494_v46, 0.0 }
 0x6be   : > { %v2307_v4 = vadd.f32 %v2306_v63, %v6694_v3  ;;  %v2500_v22 = vadd.f32 %v2499_v45, %v6696_v1  ;;  %v2637_v12 = vmax.f32 %v2303_v8, 0.0  ;;  %v2639_v17 = vmax.f32 %v2496_v11, 0.0 }
 0x6bf   : > { %v2640_v2 = vmax.f32 %v2305_v35, 0.0  ;;  %v2642_v32 = vmax.f32 %v2498_v26, 0.0 }
 0x6c0   : > { %v2641_v56 = vmax.f32 %v2307_v4, 0.0  ;;  %v2643_v24 = vmax.f32 %v2500_v22, 0.0 }
 0x6c1   : > { %v2732_v61 = vpack.c.bf16 %v2640_v2, %v2636_v37  ;;  %v2734_v40 = vpack.c.bf16 %v2642_v32, %v2638_v25 }
 0x6c2   : > { %v2733_v53 = vpack.c.bf16 %v2641_v56, %v2637_v12  ;;  %v2735_v42 = vpack.c.bf16 %v2643_v24, %v2639_v17  ;;  %v2310_v54 = vpop.f32.mrb[36].mxu0  ;;  %v2503_v50 = vpop.f32.mrb[36].mxu1 }
 0x6c3   : > { %v2311_v21 = vadd.f32 %v2310_v54, %v6690_v10  ;;  %v2504_v59 = vadd.f32 %v2503_v50, %v6692_v52  ;;  %v2312_v33 = vpop.f32.mrb[37].mxu0  ;;  %v2505_v19 = vpop.f32.mrb[37].mxu1 }
 0x6c4   : > { %v2313_v39 = vadd.f32 %v2312_v33, %v6694_v3  ;;  %v2506_v16 = vadd.f32 %v2505_v19, %v6696_v1  ;;  %v2314_v31 = vpop.f32.mrb[38].mxu0  ;;  %v2507_v9 = vpop.f32.mrb[38].mxu1  ;;  %3116 = vmatprep.mubr.bf16.mxu0 %v2733_v53  ;;  %3277 = vmatprep.mubr.bf16.mxu1 %v2735_v42 }
 0x6c5   : > { %v2315_v47 = vadd.f32 %v2314_v31, %v6690_v10  ;;  %v2508_v57 = vadd.f32 %v2507_v9, %v6692_v52  ;;  %v2316_v43 = vpop.f32.mrb[39].mxu0  ;;  %v2509_v13 = vpop.f32.mrb[39].mxu1  ;;  %3117 = vmatmul.mubr.bf16.gmra.mrb[96].mxu0 %v2732_v61  ;;  %3278 = vmatmul.mubr.bf16.gmra.mrb[96].mxu1 %v2734_v40  ;;  %v2644_v15 = vmax.f32 %v2311_v21, 0.0  ;;  %v2646_v29 = vmax.f32 %v2504_v59, 0.0 }
 0x6c6   : > { %v2317_v36 = vadd.f32 %v2316_v43, %v6694_v3  ;;  %v2510_v28 = vadd.f32 %v2509_v13, %v6696_v1  ;;  %v2645_v58 = vmax.f32 %v2313_v39, 0.0  ;;  %v2647_v41 = vmax.f32 %v2506_v16, 0.0 }
 0x6c7   : > { %v2648_v48 = vmax.f32 %v2315_v47, 0.0  ;;  %v2650_v6 = vmax.f32 %v2508_v57, 0.0 }
 0x6c8   : > { %v2649_v27 = vmax.f32 %v2317_v36, 0.0  ;;  %v2651_v30 = vmax.f32 %v2510_v28, 0.0 }
 0x6c9   : > { %v2736_v0 = vpack.c.bf16 %v2648_v48, %v2644_v15  ;;  %v2738_v20 = vpack.c.bf16 %v2650_v6, %v2646_v29 }
 0x6ca   : > { %v2737_v49 = vpack.c.bf16 %v2649_v27, %v2645_v58  ;;  %v2739_v23 = vpack.c.bf16 %v2651_v30, %v2647_v41  ;;  %v2320_v60 = vpop.f32.mrb[40].mxu0  ;;  %v2513_v38 = vpop.f32.mrb[40].mxu1 }
 0x6cb   : > { %v2321_v34 = vadd.f32 %v2320_v60, %v6690_v10  ;;  %v2514_v14 = vadd.f32 %v2513_v38, %v6692_v52  ;;  %v2322_v44 = vpop.f32.mrb[41].mxu0  ;;  %v2515_v51 = vpop.f32.mrb[41].mxu1 }
 0x6cc   : > { %v2323_v7 = vadd.f32 %v2322_v44, %v6694_v3  ;;  %v2516_v46 = vadd.f32 %v2515_v51, %v6696_v1  ;;  %v2324_v55 = vpop.f32.mrb[42].mxu0  ;;  %v2517_v5 = vpop.f32.mrb[42].mxu1  ;;  %3124 = vmatprep.mubr.bf16.mxu0 %v2737_v49  ;;  %3285 = vmatprep.mubr.bf16.mxu1 %v2739_v23 }
 0x6cd   : > { %v2325_v8 = vadd.f32 %v2324_v55, %v6690_v10  ;;  %v2518_v11 = vadd.f32 %v2517_v5, %v6692_v52  ;;  %v2326_v18 = vpop.f32.mrb[43].mxu0  ;;  %v2519_v62 = vpop.f32.mrb[43].mxu1  ;;  %3125 = vmatmul.mubr.bf16.gmra.mrb[100].mxu0 %v2736_v0  ;;  %3286 = vmatmul.mubr.bf16.gmra.mrb[100].mxu1 %v2738_v20  ;;  %v2652_v63 = vmax.f32 %v2321_v34, 0.0  ;;  %v2654_v45 = vmax.f32 %v2514_v14, 0.0 }
 0x6ce   : > { %v2327_v35 = vadd.f32 %v2326_v18, %v6694_v3  ;;  %v2520_v26 = vadd.f32 %v2519_v62, %v6696_v1  ;;  %v2653_v37 = vmax.f32 %v2323_v7, 0.0  ;;  %v2655_v25 = vmax.f32 %v2516_v46, 0.0 }
 0x6cf   : > { %v2656_v4 = vmax.f32 %v2325_v8, 0.0  ;;  %v2658_v22 = vmax.f32 %v2518_v11, 0.0 }
 0x6d0   : > { %v2657_v2 = vmax.f32 %v2327_v35, 0.0  ;;  %v2659_v32 = vmax.f32 %v2520_v26, 0.0 }
 0x6d1   : > { %v2740_v12 = vpack.c.bf16 %v2656_v4, %v2652_v63  ;;  %v2742_v17 = vpack.c.bf16 %v2658_v22, %v2654_v45 }
 0x6d2   : > { %v2741_v56 = vpack.c.bf16 %v2657_v2, %v2653_v37  ;;  %v2743_v24 = vpack.c.bf16 %v2659_v32, %v2655_v25  ;;  %v2330_v61 = vpop.f32.mrb[44].mxu0  ;;  %v2523_v40 = vpop.f32.mrb[44].mxu1 }
 0x6d3   : > { %v2331_v53 = vadd.f32 %v2330_v61, %v6690_v10  ;;  %v2524_v42 = vadd.f32 %v2523_v40, %v6692_v52  ;;  %v2332_v54 = vpop.f32.mrb[45].mxu0  ;;  %v2525_v50 = vpop.f32.mrb[45].mxu1 }
 0x6d4   : > { %v2333_v21 = vadd.f32 %v2332_v54, %v6694_v3  ;;  %v2526_v59 = vadd.f32 %v2525_v50, %v6696_v1  ;;  %v2334_v33 = vpop.f32.mrb[46].mxu0  ;;  %v2527_v19 = vpop.f32.mrb[46].mxu1  ;;  %3132 = vmatprep.mubr.bf16.mxu0 %v2741_v56  ;;  %3293 = vmatprep.mubr.bf16.mxu1 %v2743_v24 }
 0x6d5   : > { %v2335_v39 = vadd.f32 %v2334_v33, %v6690_v10  ;;  %v2528_v16 = vadd.f32 %v2527_v19, %v6692_v52  ;;  %v2336_v31 = vpop.f32.mrb[47].mxu0  ;;  %v2529_v9 = vpop.f32.mrb[47].mxu1  ;;  %3133 = vmatmul.mubr.bf16.gmra.mrb[104].mxu0 %v2740_v12  ;;  %3294 = vmatmul.mubr.bf16.gmra.mrb[104].mxu1 %v2742_v17  ;;  %v2660_v43 = vmax.f32 %v2331_v53, 0.0  ;;  %v2662_v13 = vmax.f32 %v2524_v42, 0.0 }
 0x6d6   : > { %v2337_v47 = vadd.f32 %v2336_v31, %v6694_v3  ;;  %v2530_v57 = vadd.f32 %v2529_v9, %v6696_v1  ;;  %v2661_v15 = vmax.f32 %v2333_v21, 0.0  ;;  %v2663_v29 = vmax.f32 %v2526_v59, 0.0 }
 0x6d7   : > { %v2664_v36 = vmax.f32 %v2335_v39, 0.0  ;;  %v2666_v28 = vmax.f32 %v2528_v16, 0.0 }
 0x6d8   : > { %v2665_v48 = vmax.f32 %v2337_v47, 0.0  ;;  %v2667_v6 = vmax.f32 %v2530_v57, 0.0 }
 0x6d9   : > { %v2744_v58 = vpack.c.bf16 %v2664_v36, %v2660_v43  ;;  %v2746_v41 = vpack.c.bf16 %v2666_v28, %v2662_v13 }
 0x6da   : > { %v2745_v27 = vpack.c.bf16 %v2665_v48, %v2661_v15  ;;  %v2747_v30 = vpack.c.bf16 %v2667_v6, %v2663_v29  ;;  %v2340_v0 = vpop.f32.mrb[48].mxu0  ;;  %v2533_v20 = vpop.f32.mrb[48].mxu1 }
 0x6db   : > { %v2341_v49 = vadd.f32 %v2340_v0, %v6690_v10  ;;  %v2534_v23 = vadd.f32 %v2533_v20, %v6692_v52  ;;  %v2342_v60 = vpop.f32.mrb[49].mxu0  ;;  %v2535_v38 = vpop.f32.mrb[49].mxu1 }
 0x6dc   : > { %v2343_v34 = vadd.f32 %v2342_v60, %v6694_v3  ;;  %v2536_v14 = vadd.f32 %v2535_v38, %v6696_v1  ;;  %v2344_v44 = vpop.f32.mrb[50].mxu0  ;;  %v2537_v51 = vpop.f32.mrb[50].mxu1  ;;  %3140 = vmatprep.mubr.bf16.mxu0 %v2745_v27  ;;  %3301 = vmatprep.mubr.bf16.mxu1 %v2747_v30 }
 0x6dd   : > { %v2345_v7 = vadd.f32 %v2344_v44, %v6690_v10  ;;  %v2538_v46 = vadd.f32 %v2537_v51, %v6692_v52  ;;  %v2346_v55 = vpop.f32.mrb[51].mxu0  ;;  %v2539_v5 = vpop.f32.mrb[51].mxu1  ;;  %3141 = vmatmul.mubr.bf16.gmra.mrb[108].mxu0 %v2744_v58  ;;  %3302 = vmatmul.mubr.bf16.gmra.mrb[108].mxu1 %v2746_v41  ;;  %v2668_v18 = vmax.f32 %v2341_v49, 0.0  ;;  %v2670_v62 = vmax.f32 %v2534_v23, 0.0 }
 0x6de   : > { %v2347_v8 = vadd.f32 %v2346_v55, %v6694_v3  ;;  %v2540_v11 = vadd.f32 %v2539_v5, %v6696_v1  ;;  %v2669_v63 = vmax.f32 %v2343_v34, 0.0  ;;  %v2671_v45 = vmax.f32 %v2536_v14, 0.0 }
 0x6df   : > { %v2672_v35 = vmax.f32 %v2345_v7, 0.0  ;;  %v2674_v26 = vmax.f32 %v2538_v46, 0.0 }
 0x6e0   : > { %v2673_v4 = vmax.f32 %v2347_v8, 0.0  ;;  %v2675_v22 = vmax.f32 %v2540_v11, 0.0 }
 0x6e1   : > { %v2748_v37 = vpack.c.bf16 %v2672_v35, %v2668_v18  ;;  %v2750_v25 = vpack.c.bf16 %v2674_v26, %v2670_v62 }
 0x6e2   : > { %v2749_v2 = vpack.c.bf16 %v2673_v4, %v2669_v63  ;;  %v2751_v32 = vpack.c.bf16 %v2675_v22, %v2671_v45  ;;  %v2350_v12 = vpop.f32.mrb[52].mxu0  ;;  %v2543_v17 = vpop.f32.mrb[52].mxu1 }
 0x6e3   : > { %v2351_v56 = vadd.f32 %v2350_v12, %v6690_v10  ;;  %v2544_v24 = vadd.f32 %v2543_v17, %v6692_v52  ;;  %v2352_v61 = vpop.f32.mrb[53].mxu0  ;;  %v2545_v40 = vpop.f32.mrb[53].mxu1 }
 0x6e4   : > { %v2353_v53 = vadd.f32 %v2352_v61, %v6694_v3  ;;  %v2546_v42 = vadd.f32 %v2545_v40, %v6696_v1  ;;  %v2354_v54 = vpop.f32.mrb[54].mxu0  ;;  %v2547_v50 = vpop.f32.mrb[54].mxu1  ;;  %3148 = vmatprep.mubr.bf16.mxu0 %v2749_v2  ;;  %3309 = vmatprep.mubr.bf16.mxu1 %v2751_v32 }
 0x6e5   : > { %v2355_v21 = vadd.f32 %v2354_v54, %v6690_v10  ;;  %v2548_v59 = vadd.f32 %v2547_v50, %v6692_v52  ;;  %v2356_v33 = vpop.f32.mrb[55].mxu0  ;;  %v2549_v19 = vpop.f32.mrb[55].mxu1  ;;  %3149 = vmatmul.mubr.bf16.gmra.mrb[112].mxu0 %v2748_v37  ;;  %3310 = vmatmul.mubr.bf16.gmra.mrb[112].mxu1 %v2750_v25  ;;  %v2676_v31 = vmax.f32 %v2351_v56, 0.0  ;;  %v2678_v9 = vmax.f32 %v2544_v24, 0.0 }
 0x6e6   : > { %v2357_v39 = vadd.f32 %v2356_v33, %v6694_v3  ;;  %v2550_v16 = vadd.f32 %v2549_v19, %v6696_v1  ;;  %v2677_v43 = vmax.f32 %v2353_v53, 0.0  ;;  %v2679_v13 = vmax.f32 %v2546_v42, 0.0 }
 0x6e7   : > { %v2680_v47 = vmax.f32 %v2355_v21, 0.0  ;;  %v2682_v57 = vmax.f32 %v2548_v59, 0.0 }
 0x6e8   : > { %v2681_v36 = vmax.f32 %v2357_v39, 0.0  ;;  %v2683_v28 = vmax.f32 %v2550_v16, 0.0 }
 0x6e9   : > { %v2752_v15 = vpack.c.bf16 %v2680_v47, %v2676_v31  ;;  %v2754_v29 = vpack.c.bf16 %v2682_v57, %v2678_v9 }
 0x6ea   : > { %v2753_v48 = vpack.c.bf16 %v2681_v36, %v2677_v43  ;;  %v2755_v6 = vpack.c.bf16 %v2683_v28, %v2679_v13  ;;  %v2360_v58 = vpop.f32.mrb[56].mxu0  ;;  %v2553_v41 = vpop.f32.mrb[56].mxu1 }
 0x6eb   : > { %v2361_v27 = vadd.f32 %v2360_v58, %v6690_v10  ;;  %v2554_v30 = vadd.f32 %v2553_v41, %v6692_v52  ;;  %v2362_v0 = vpop.f32.mrb[57].mxu0  ;;  %v2555_v20 = vpop.f32.mrb[57].mxu1 }
 0x6ec   : > { %v2363_v49 = vadd.f32 %v2362_v0, %v6694_v3  ;;  %v2556_v23 = vadd.f32 %v2555_v20, %v6696_v1  ;;  %v2364_v60 = vpop.f32.mrb[58].mxu0  ;;  %v2557_v38 = vpop.f32.mrb[58].mxu1  ;;  %3156 = vmatprep.mubr.bf16.mxu0 %v2753_v48  ;;  %3317 = vmatprep.mubr.bf16.mxu1 %v2755_v6 }
 0x6ed   : > { %v2365_v34 = vadd.f32 %v2364_v60, %v6690_v10  ;;  %v2558_v14 = vadd.f32 %v2557_v38, %v6692_v52  ;;  %v2366_v44 = vpop.f32.mrb[59].mxu0  ;;  %v2559_v51 = vpop.f32.mrb[59].mxu1  ;;  %3157 = vmatmul.mubr.bf16.gmra.mrb[116].mxu0 %v2752_v15  ;;  %3318 = vmatmul.mubr.bf16.gmra.mrb[116].mxu1 %v2754_v29  ;;  %v2684_v55 = vmax.f32 %v2361_v27, 0.0  ;;  %v2686_v5 = vmax.f32 %v2554_v30, 0.0 }
 0x6ee   : > { %v2367_v7 = vadd.f32 %v2366_v44, %v6694_v3  ;;  %v2560_v46 = vadd.f32 %v2559_v51, %v6696_v1  ;;  %v2685_v18 = vmax.f32 %v2363_v49, 0.0  ;;  %v2687_v62 = vmax.f32 %v2556_v23, 0.0 }
 0x6ef   : > { %v2688_v8 = vmax.f32 %v2365_v34, 0.0  ;;  %v2690_v11 = vmax.f32 %v2558_v14, 0.0 }
 0x6f0   : > { %v2689_v35 = vmax.f32 %v2367_v7, 0.0  ;;  %v2691_v26 = vmax.f32 %v2560_v46, 0.0 }
 0x6f1   : > { %v2756_v63 = vpack.c.bf16 %v2688_v8, %v2684_v55  ;;  %v2758_v45 = vpack.c.bf16 %v2690_v11, %v2686_v5 }
 0x6f2   : > { %v2757_v4 = vpack.c.bf16 %v2689_v35, %v2685_v18  ;;  %v2759_v22 = vpack.c.bf16 %v2691_v26, %v2687_v62  ;;  %v2370_v37 = vpop.f32.mrb[60].mxu0  ;;  %v2563_v25 = vpop.f32.mrb[60].mxu1 }
 0x6f3   : > { %v2371_v2 = vadd.f32 %v2370_v37, %v6690_v10  ;;  %v2564_v32 = vadd.f32 %v2563_v25, %v6692_v52  ;;  %v2372_v12 = vpop.f32.mrb[61].mxu0  ;;  %v2565_v17 = vpop.f32.mrb[61].mxu1 }
 0x6f4   : > { %v2373_v56 = vadd.f32 %v2372_v12, %v6694_v3  ;;  %v2566_v24 = vadd.f32 %v2565_v17, %v6696_v1  ;;  %v2374_v61 = vpop.f32.mrb[62].mxu0  ;;  %v2567_v40 = vpop.f32.mrb[62].mxu1  ;;  %3164 = vmatprep.mubr.bf16.mxu0 %v2757_v4  ;;  %3325 = vmatprep.mubr.bf16.mxu1 %v2759_v22 }
 0x6f5   : > { %v2375_v53 = vadd.f32 %v2374_v61, %v6690_v10  ;;  %v2568_v42 = vadd.f32 %v2567_v40, %v6692_v52  ;;  %v2376_v54 = vpop.f32.mrb[63].mxu0  ;;  %v2569_v50 = vpop.f32.mrb[63].mxu1  ;;  %3165 = vmatmul.mubr.bf16.gmra.mrb[120].mxu0 %v2756_v63  ;;  %3326 = vmatmul.mubr.bf16.gmra.mrb[120].mxu1 %v2758_v45  ;;  %v2692_v33 = vmax.f32 %v2371_v2, 0.0  ;;  %v2694_v19 = vmax.f32 %v2564_v32, 0.0 }
 0x6f6   : > { %v2377_v21 = vadd.f32 %v2376_v54, %v6694_v3  ;;  %v2570_v59 = vadd.f32 %v2569_v50, %v6696_v1  ;;  %v2693_v31 = vmax.f32 %v2373_v56, 0.0  ;;  %v2695_v9 = vmax.f32 %v2566_v24, 0.0 }
 0x6f7   : > { %v2696_v39 = vmax.f32 %v2375_v53, 0.0  ;;  %v2698_v16 = vmax.f32 %v2568_v42, 0.0 }
 0x6f8   : > { %v2697_v47 = vmax.f32 %v2377_v21, 0.0  ;;  %v2699_v57 = vmax.f32 %v2570_v59, 0.0 }
 0x6f9   : > { %v2760_v43 = vpack.c.bf16 %v2696_v39, %v2692_v33  ;;  %v2762_v10 = vpack.c.bf16 %v2698_v16, %v2694_v19 }
 0x6fa   : > { %v2761_v13 = vpack.c.bf16 %v2697_v47, %v2693_v31  ;;  %v2763_v52 = vpack.c.bf16 %v2699_v57, %v2695_v9 }
 0x6fc   : > { %3172 = vmatprep.mubr.bf16.mxu0 %v2761_v13  ;;  %3333 = vmatprep.mubr.bf16.mxu1 %v2763_v52 }
 0x6fd   : > { %3173 = vmatmul.mubr.bf16.gmra.mrb[124].mxu0 %v2760_v43  ;;  %3334 = vmatmul.mubr.bf16.gmra.mrb[124].mxu1 %v2762_v10 }
 0x758   : > { %v4421_v36 = vpop.f32.mrb[64].mxu0  ;;  %v4533_v3 = vpop.f32.mrb[64].mxu1 }
 0x759   : > { %v4422_v28 = vpop.f32.mrb[65].mxu0  ;;  %v4534_v1 = vpop.f32.mrb[65].mxu1 }
 0x75a   : > { %v4423_v15 = vadd.f32 %v4422_v28, %v4421_v36  ;;  %v4535_v29 = vadd.f32 %v4534_v1, %v4533_v3  ;;  %v4424_v48 = vpop.f32.mrb[66].mxu0  ;;  %v4536_v6 = vpop.f32.mrb[66].mxu1 }
 0x75b   : > { %v4425_v58 = vpop.f32.mrb[67].mxu0  ;;  %v4537_v41 = vpop.f32.mrb[67].mxu1 }
 0x75c   : > { %v6826_v27 = vadd.f32 %v4535_v29, %v4423_v15  ;;  %v4426_v30 = vadd.f32 %v4425_v58, %v4424_v48  ;;  %v4538_v0 = vadd.f32 %v4537_v41, %v4536_v6 }
 0x75e   : > { %v6828_v20 = vadd.f32 %v4538_v0, %v4426_v30  ;;  %3345 = vst [vmem:[#allocation4] sm:$0xff] (!%p7439_p9), %v6826_v27 }
 0x760   : > { %v4427_v49 = vpop.f32.mrb[68].mxu0  ;;  %v4539_v23 = vpop.f32.mrb[68].mxu1  ;;  %3346 = vst [vmem:[#allocation4 + $0x8] sm:$0xff] (!%p7439_p9), %v6828_v20 }
 0x761   : > { %v4428_v60 = vpop.f32.mrb[69].mxu0  ;;  %v4540_v38 = vpop.f32.mrb[69].mxu1 }
 0x762   : > { %v4429_v34 = vadd.f32 %v4428_v60, %v4427_v49  ;;  %v4541_v14 = vadd.f32 %v4540_v38, %v4539_v23  ;;  %v4430_v44 = vpop.f32.mrb[70].mxu0  ;;  %v4542_v51 = vpop.f32.mrb[70].mxu1 }
 0x763   : > { %v4431_v7 = vpop.f32.mrb[71].mxu0  ;;  %v4543_v46 = vpop.f32.mrb[71].mxu1 }
 0x764   : > { %v6830_v55 = vadd.f32 %v4541_v14, %v4429_v34  ;;  %v4432_v5 = vadd.f32 %v4431_v7, %v4430_v44  ;;  %v4544_v8 = vadd.f32 %v4543_v46, %v4542_v51 }
 0x766   : > { %v6832_v11 = vadd.f32 %v4544_v8, %v4432_v5  ;;  %3347 = vst [vmem:[#allocation4 + $0x10] sm:$0xff] (!%p7439_p9), %v6830_v55 }
 0x768   : > { %v4433_v18 = vpop.f32.mrb[72].mxu0  ;;  %v4545_v62 = vpop.f32.mrb[72].mxu1  ;;  %3348 = vst [vmem:[#allocation4 + $0x18] sm:$0xff] (!%p7439_p9), %v6832_v11 }
 0x769   : > { %v4434_v35 = vpop.f32.mrb[73].mxu0  ;;  %v4546_v26 = vpop.f32.mrb[73].mxu1 }
 0x76a   : > { %v4435_v63 = vadd.f32 %v4434_v35, %v4433_v18  ;;  %v4547_v45 = vadd.f32 %v4546_v26, %v4545_v62  ;;  %v4436_v4 = vpop.f32.mrb[74].mxu0  ;;  %v4548_v22 = vpop.f32.mrb[74].mxu1 }
 0x76b   : > { %v4437_v37 = vpop.f32.mrb[75].mxu0  ;;  %v4549_v25 = vpop.f32.mrb[75].mxu1 }
 0x76c   : > { %v6834_v2 = vadd.f32 %v4547_v45, %v4435_v63  ;;  %v4438_v32 = vadd.f32 %v4437_v37, %v4436_v4  ;;  %v4550_v12 = vadd.f32 %v4549_v25, %v4548_v22 }
 0x76e   : > { %v6836_v17 = vadd.f32 %v4550_v12, %v4438_v32  ;;  %3349 = vst [vmem:[#allocation4 + $0x20] sm:$0xff] (!%p7439_p9), %v6834_v2 }
 0x770   : > { %v4439_v56 = vpop.f32.mrb[76].mxu0  ;;  %v4551_v24 = vpop.f32.mrb[76].mxu1  ;;  %3350 = vst [vmem:[#allocation4 + $0x28] sm:$0xff] (!%p7439_p9), %v6836_v17 }
 0x771   : > { %v4440_v61 = vpop.f32.mrb[77].mxu0  ;;  %v4552_v40 = vpop.f32.mrb[77].mxu1 }
 0x772   : > { %v4441_v53 = vadd.f32 %v4440_v61, %v4439_v56  ;;  %v4553_v42 = vadd.f32 %v4552_v40, %v4551_v24  ;;  %v4442_v54 = vpop.f32.mrb[78].mxu0  ;;  %v4554_v50 = vpop.f32.mrb[78].mxu1 }
 0x773   : > { %v4443_v21 = vpop.f32.mrb[79].mxu0  ;;  %v4555_v59 = vpop.f32.mrb[79].mxu1 }
 0x774   : > { %v6838_v33 = vadd.f32 %v4553_v42, %v4441_v53  ;;  %v4444_v19 = vadd.f32 %v4443_v21, %v4442_v54  ;;  %v4556_v39 = vadd.f32 %v4555_v59, %v4554_v50 }
 0x776   : > { %v6840_v16 = vadd.f32 %v4556_v39, %v4444_v19  ;;  %3351 = vst [vmem:[#allocation4 + $0x30] sm:$0xff] (!%p7439_p9), %v6838_v33 }
 0x778   : > { %v4445_v31 = vpop.f32.mrb[80].mxu0  ;;  %v4557_v9 = vpop.f32.mrb[80].mxu1  ;;  %3352 = vst [vmem:[#allocation4 + $0x38] sm:$0xff] (!%p7439_p9), %v6840_v16 }
 0x779   : > { %v4446_v47 = vpop.f32.mrb[81].mxu0  ;;  %v4558_v57 = vpop.f32.mrb[81].mxu1 }
 0x77a   : > { %v4447_v43 = vadd.f32 %v4446_v47, %v4445_v31  ;;  %v4559_v10 = vadd.f32 %v4558_v57, %v4557_v9  ;;  %v4448_v13 = vpop.f32.mrb[82].mxu0  ;;  %v4560_v52 = vpop.f32.mrb[82].mxu1 }
 0x77b   : > { %v4449_v36 = vpop.f32.mrb[83].mxu0  ;;  %v4561_v3 = vpop.f32.mrb[83].mxu1 }
 0x77c   : > { %v6842_v28 = vadd.f32 %v4559_v10, %v4447_v43  ;;  %v4450_v1 = vadd.f32 %v4449_v36, %v4448_v13  ;;  %v4562_v15 = vadd.f32 %v4561_v3, %v4560_v52 }
 0x77e   : > { %v6844_v29 = vadd.f32 %v4562_v15, %v4450_v1  ;;  %3353 = vst [vmem:[#allocation4 + $0x40] sm:$0xff] (!%p7439_p9), %v6842_v28 }
 0x780   : > { %v4451_v48 = vpop.f32.mrb[84].mxu0  ;;  %v4563_v6 = vpop.f32.mrb[84].mxu1  ;;  %3354 = vst [vmem:[#allocation4 + $0x48] sm:$0xff] (!%p7439_p9), %v6844_v29 }
 0x781   : > { %v4452_v58 = vpop.f32.mrb[85].mxu0  ;;  %v4564_v41 = vpop.f32.mrb[85].mxu1 }
 0x782   : > { %v4453_v30 = vadd.f32 %v4452_v58, %v4451_v48  ;;  %v4565_v0 = vadd.f32 %v4564_v41, %v4563_v6  ;;  %v4454_v49 = vpop.f32.mrb[86].mxu0  ;;  %v4566_v23 = vpop.f32.mrb[86].mxu1 }
 0x783   : > { %v4455_v60 = vpop.f32.mrb[87].mxu0  ;;  %v4567_v38 = vpop.f32.mrb[87].mxu1 }
 0x784   : > { %v6846_v34 = vadd.f32 %v4565_v0, %v4453_v30  ;;  %v4456_v14 = vadd.f32 %v4455_v60, %v4454_v49  ;;  %v4568_v44 = vadd.f32 %v4567_v38, %v4566_v23 }
 0x786   : > { %v6848_v51 = vadd.f32 %v4568_v44, %v4456_v14  ;;  %3355 = vst [vmem:[#allocation4 + $0x50] sm:$0xff] (!%p7439_p9), %v6846_v34 }
 0x788   : > { %v4457_v7 = vpop.f32.mrb[88].mxu0  ;;  %v4569_v46 = vpop.f32.mrb[88].mxu1  ;;  %3356 = vst [vmem:[#allocation4 + $0x58] sm:$0xff] (!%p7439_p9), %v6848_v51 }
 0x789   : > { %v4458_v5 = vpop.f32.mrb[89].mxu0  ;;  %v4570_v8 = vpop.f32.mrb[89].mxu1 }
 0x78a   : > { %v4459_v18 = vadd.f32 %v4458_v5, %v4457_v7  ;;  %v4571_v62 = vadd.f32 %v4570_v8, %v4569_v46  ;;  %v4460_v35 = vpop.f32.mrb[90].mxu0  ;;  %v4572_v26 = vpop.f32.mrb[90].mxu1 }
 0x78b   : > { %v4461_v63 = vpop.f32.mrb[91].mxu0  ;;  %v4573_v45 = vpop.f32.mrb[91].mxu1 }
 0x78c   : > { %v6850_v4 = vadd.f32 %v4571_v62, %v4459_v18  ;;  %v4462_v22 = vadd.f32 %v4461_v63, %v4460_v35  ;;  %v4574_v37 = vadd.f32 %v4573_v45, %v4572_v26 }
 0x78e   : > { %v6852_v25 = vadd.f32 %v4574_v37, %v4462_v22  ;;  %3357 = vst [vmem:[#allocation4 + $0x60] sm:$0xff] (!%p7439_p9), %v6850_v4 }
 0x790   : > { %v4463_v32 = vpop.f32.mrb[92].mxu0  ;;  %v4575_v12 = vpop.f32.mrb[92].mxu1  ;;  %3358 = vst [vmem:[#allocation4 + $0x68] sm:$0xff] (!%p7439_p9), %v6852_v25 }
 0x791   : > { %v4464_v56 = vpop.f32.mrb[93].mxu0  ;;  %v4576_v24 = vpop.f32.mrb[93].mxu1 }
 0x792   : > { %v4465_v61 = vadd.f32 %v4464_v56, %v4463_v32  ;;  %v4577_v40 = vadd.f32 %v4576_v24, %v4575_v12  ;;  %v4466_v53 = vpop.f32.mrb[94].mxu0  ;;  %v4578_v42 = vpop.f32.mrb[94].mxu1 }
 0x793   : > { %v4467_v54 = vpop.f32.mrb[95].mxu0  ;;  %v4579_v50 = vpop.f32.mrb[95].mxu1 }
 0x794   : > { %v6854_v21 = vadd.f32 %v4577_v40, %v4465_v61  ;;  %v4468_v59 = vadd.f32 %v4467_v54, %v4466_v53  ;;  %v4580_v19 = vadd.f32 %v4579_v50, %v4578_v42 }
 0x796   : > { %v6856_v39 = vadd.f32 %v4580_v19, %v4468_v59  ;;  %3359 = vst [vmem:[#allocation4 + $0x70] sm:$0xff] (!%p7439_p9), %v6854_v21 }
 0x798   : > { %v4469_v31 = vpop.f32.mrb[96].mxu0  ;;  %v4581_v9 = vpop.f32.mrb[96].mxu1  ;;  %3360 = vst [vmem:[#allocation4 + $0x78] sm:$0xff] (!%p7439_p9), %v6856_v39 }
 0x799   : > { %v4470_v47 = vpop.f32.mrb[97].mxu0  ;;  %v4582_v57 = vpop.f32.mrb[97].mxu1 }
 0x79a   : > { %v4471_v43 = vadd.f32 %v4470_v47, %v4469_v31  ;;  %v4583_v10 = vadd.f32 %v4582_v57, %v4581_v9  ;;  %v4472_v13 = vpop.f32.mrb[98].mxu0  ;;  %v4584_v52 = vpop.f32.mrb[98].mxu1 }
 0x79b   : > { %v4473_v36 = vpop.f32.mrb[99].mxu0  ;;  %v4585_v3 = vpop.f32.mrb[99].mxu1 }
 0x79c   : > { %v6858_v1 = vadd.f32 %v4583_v10, %v4471_v43  ;;  %v4474_v15 = vadd.f32 %v4473_v36, %v4472_v13  ;;  %v4586_v48 = vadd.f32 %v4585_v3, %v4584_v52 }
 0x79e   : > { %v6860_v6 = vadd.f32 %v4586_v48, %v4474_v15  ;;  %3361 = vst [vmem:[#allocation4 + $0x80] sm:$0xff] (!%p7439_p9), %v6858_v1 }
 0x7a0   : > { %v4475_v58 = vpop.f32.mrb[100].mxu0  ;;  %v4587_v41 = vpop.f32.mrb[100].mxu1  ;;  %3362 = vst [vmem:[#allocation4 + $0x88] sm:$0xff] (!%p7439_p9), %v6860_v6 }
 0x7a1   : > { %v4476_v30 = vpop.f32.mrb[101].mxu0  ;;  %v4588_v0 = vpop.f32.mrb[101].mxu1 }
 0x7a2   : > { %v4477_v49 = vadd.f32 %v4476_v30, %v4475_v58  ;;  %v4589_v23 = vadd.f32 %v4588_v0, %v4587_v41  ;;  %v4478_v60 = vpop.f32.mrb[102].mxu0  ;;  %v4590_v38 = vpop.f32.mrb[102].mxu1 }
 0x7a3   : > { %v4479_v14 = vpop.f32.mrb[103].mxu0  ;;  %v4591_v44 = vpop.f32.mrb[103].mxu1 }
 0x7a4   : > { %v6862_v7 = vadd.f32 %v4589_v23, %v4477_v49  ;;  %v4480_v46 = vadd.f32 %v4479_v14, %v4478_v60  ;;  %v4592_v5 = vadd.f32 %v4591_v44, %v4590_v38 }
 0x7a6   : > { %v6864_v8 = vadd.f32 %v4592_v5, %v4480_v46  ;;  %3363 = vst [vmem:[#allocation4 + $0x90] sm:$0xff] (!%p7439_p9), %v6862_v7 }
 0x7a8   : > { %v4481_v18 = vpop.f32.mrb[104].mxu0  ;;  %v4593_v62 = vpop.f32.mrb[104].mxu1  ;;  %3364 = vst [vmem:[#allocation4 + $0x98] sm:$0xff] (!%p7439_p9), %v6864_v8 }
 0x7a9   : > { %v4482_v35 = vpop.f32.mrb[105].mxu0  ;;  %v4594_v26 = vpop.f32.mrb[105].mxu1 }
 0x7aa   : > { %v4483_v63 = vadd.f32 %v4482_v35, %v4481_v18  ;;  %v4595_v45 = vadd.f32 %v4594_v26, %v4593_v62  ;;  %v4484_v22 = vpop.f32.mrb[106].mxu0  ;;  %v4596_v37 = vpop.f32.mrb[106].mxu1 }
 0x7ab   : > { %v4485_v32 = vpop.f32.mrb[107].mxu0  ;;  %v4597_v12 = vpop.f32.mrb[107].mxu1 }
 0x7ac   : > { %v6866_v56 = vadd.f32 %v4595_v45, %v4483_v63  ;;  %v4486_v24 = vadd.f32 %v4485_v32, %v4484_v22  ;;  %v4598_v61 = vadd.f32 %v4597_v12, %v4596_v37 }
 0x7ae   : > { %v6868_v40 = vadd.f32 %v4598_v61, %v4486_v24  ;;  %3365 = vst [vmem:[#allocation4 + $0xa0] sm:$0xff] (!%p7439_p9), %v6866_v56 }
 0x7b0   : > { %v4487_v53 = vpop.f32.mrb[108].mxu0  ;;  %v4599_v42 = vpop.f32.mrb[108].mxu1  ;;  %3366 = vst [vmem:[#allocation4 + $0xa8] sm:$0xff] (!%p7439_p9), %v6868_v40 }
 0x7b1   : > { %v4488_v54 = vpop.f32.mrb[109].mxu0  ;;  %v4600_v50 = vpop.f32.mrb[109].mxu1 }
 0x7b2   : > { %v4489_v59 = vadd.f32 %v4488_v54, %v4487_v53  ;;  %v4601_v19 = vadd.f32 %v4600_v50, %v4599_v42  ;;  %v4490_v31 = vpop.f32.mrb[110].mxu0  ;;  %v4602_v9 = vpop.f32.mrb[110].mxu1 }
 0x7b3   : > { %v4491_v47 = vpop.f32.mrb[111].mxu0  ;;  %v4603_v57 = vpop.f32.mrb[111].mxu1 }
 0x7b4   : > { %v6870_v43 = vadd.f32 %v4601_v19, %v4489_v59  ;;  %v4492_v10 = vadd.f32 %v4491_v47, %v4490_v31  ;;  %v4604_v13 = vadd.f32 %v4603_v57, %v4602_v9 }
 0x7b6   : > { %v6872_v52 = vadd.f32 %v4604_v13, %v4492_v10  ;;  %3367 = vst [vmem:[#allocation4 + $0xb0] sm:$0xff] (!%p7439_p9), %v6870_v43 }
 0x7b8   : > { %v4493_v36 = vpop.f32.mrb[112].mxu0  ;;  %v4605_v3 = vpop.f32.mrb[112].mxu1  ;;  %3368 = vst [vmem:[#allocation4 + $0xb8] sm:$0xff] (!%p7439_p9), %v6872_v52 }
 0x7b9   : > { %v4494_v15 = vpop.f32.mrb[113].mxu0  ;;  %v4606_v48 = vpop.f32.mrb[113].mxu1 }
 0x7ba   : > { %v4495_v58 = vadd.f32 %v4494_v15, %v4493_v36  ;;  %v4607_v41 = vadd.f32 %v4606_v48, %v4605_v3  ;;  %v4496_v30 = vpop.f32.mrb[114].mxu0  ;;  %v4608_v0 = vpop.f32.mrb[114].mxu1 }
 0x7bb   : > { %v4497_v49 = vpop.f32.mrb[115].mxu0  ;;  %v4609_v23 = vpop.f32.mrb[115].mxu1 }
 0x7bc   : > { %v6874_v60 = vadd.f32 %v4607_v41, %v4495_v58  ;;  %v4498_v38 = vadd.f32 %v4497_v49, %v4496_v30  ;;  %v4610_v14 = vadd.f32 %v4609_v23, %v4608_v0 }
 0x7be   : > { %v6876_v44 = vadd.f32 %v4610_v14, %v4498_v38  ;;  %3369 = vst [vmem:[#allocation4 + $0xc0] sm:$0xff] (!%p7439_p9), %v6874_v60 }
 0x7c0   : > { %v4499_v46 = vpop.f32.mrb[116].mxu0  ;;  %v4611_v5 = vpop.f32.mrb[116].mxu1  ;;  %3370 = vst [vmem:[#allocation4 + $0xc8] sm:$0xff] (!%p7439_p9), %v6876_v44 }
 0x7c1   : > { %v4500_v18 = vpop.f32.mrb[117].mxu0  ;;  %v4612_v62 = vpop.f32.mrb[117].mxu1 }
 0x7c2   : > { %v4501_v35 = vadd.f32 %v4500_v18, %v4499_v46  ;;  %v4613_v26 = vadd.f32 %v4612_v62, %v4611_v5  ;;  %v4502_v63 = vpop.f32.mrb[118].mxu0  ;;  %v4614_v45 = vpop.f32.mrb[118].mxu1 }
 0x7c3   : > { %v4503_v22 = vpop.f32.mrb[119].mxu0  ;;  %v4615_v37 = vpop.f32.mrb[119].mxu1 }
 0x7c4   : > { %v6878_v32 = vadd.f32 %v4613_v26, %v4501_v35  ;;  %v4504_v12 = vadd.f32 %v4503_v22, %v4502_v63  ;;  %v4616_v24 = vadd.f32 %v4615_v37, %v4614_v45 }
 0x7c6   : > { %v6880_v61 = vadd.f32 %v4616_v24, %v4504_v12  ;;  %3371 = vst [vmem:[#allocation4 + $0xd0] sm:$0xff] (!%p7439_p9), %v6878_v32 }
 0x7c8   : > { %v4505_v53 = vpop.f32.mrb[120].mxu0  ;;  %v4617_v42 = vpop.f32.mrb[120].mxu1  ;;  %3372 = vst [vmem:[#allocation4 + $0xd8] sm:$0xff] (!%p7439_p9), %v6880_v61 }
 0x7c9   : > { %v4506_v54 = vpop.f32.mrb[121].mxu0  ;;  %v4618_v50 = vpop.f32.mrb[121].mxu1 }
 0x7ca   : > { %v4507_v59 = vadd.f32 %v4506_v54, %v4505_v53  ;;  %v4619_v19 = vadd.f32 %v4618_v50, %v4617_v42  ;;  %v4508_v31 = vpop.f32.mrb[122].mxu0  ;;  %v4620_v9 = vpop.f32.mrb[122].mxu1 }
 0x7cb   : > { %v4509_v47 = vpop.f32.mrb[123].mxu0  ;;  %v4621_v57 = vpop.f32.mrb[123].mxu1 }
 0x7cc   : > { %v6882_v10 = vadd.f32 %v4619_v19, %v4507_v59  ;;  %v4510_v13 = vadd.f32 %v4509_v47, %v4508_v31  ;;  %v4622_v36 = vadd.f32 %v4621_v57, %v4620_v9 }
 0x7ce   : > { %v6884_v3 = vadd.f32 %v4622_v36, %v4510_v13  ;;  %3373 = vst [vmem:[#allocation4 + $0xe0] sm:$0xff] (!%p7439_p9), %v6882_v10 }
 0x7d0   : > { %v4511_v15 = vpop.f32.mrb[124].mxu0  ;;  %v4623_v48 = vpop.f32.mrb[124].mxu1  ;;  %3344 = sbr.rel (%p7439_p9) target bundleno = 2009 (0x7d9), region = 76  ;;  %3374 = vst [vmem:[#allocation4 + $0xe8] sm:$0xff] (!%p7439_p9), %v6884_v3 }
 0x7d1   : > { %v4512_v58 = vpop.f32.mrb[125].mxu0  ;;  %v4624_v41 = vpop.f32.mrb[125].mxu1 }
 0x7d2   : > { %v4513_v30 = vadd.f32 %v4512_v58, %v4511_v15  ;;  %v4625_v0 = vadd.f32 %v4624_v41, %v4623_v48  ;;  %v4514_v49 = vpop.f32.mrb[126].mxu0  ;;  %v4626_v23 = vpop.f32.mrb[126].mxu1 }
 0x7d3   : > { %v4515_v38 = vpop.f32.mrb[127].mxu0  ;;  %v4627_v14 = vpop.f32.mrb[127].mxu1 }
 0x7d4   : > { %v6886_v46 = vadd.f32 %v4625_v0, %v4513_v30  ;;  %v4516_v5 = vadd.f32 %v4515_v38, %v4514_v49  ;;  %v4628_v18 = vadd.f32 %v4627_v14, %v4626_v23 }
 0x7d6   : > { %v6888_v62 = vadd.f32 %v4628_v18, %v4516_v5  ;;  %3375 = vst [vmem:[#allocation4 + $0xf0] sm:$0xff] (!%p7439_p9), %v6886_v46 }
 0x7d8   : > { %3376 = vst [vmem:[#allocation4 + $0xf8] sm:$0xff] %v6888_v62 }
 0x7d9 PF: > { %p4305_p8 = scmp.le.s32.totalorder %s5617_s25, 0 }
 0x7da   : > { %v3381_v35 = vld [vmem:[#allocation4] sm:$0xff] (!%p4305_p8)  ;;  %v3382_v26 = vld [vmem:[#allocation4 + $0x8] sm:$0xff] (!%p4305_p8)  ;;  %v3383_v63 = vld [vmem:[#allocation4 + $0x10] sm:$0xff] (!%p4305_p8) }
 0x7db   : > { %3380 = sbr.rel (%p4305_p8) target bundleno = 2029 (0x7ed), region = 80  ;;  %v3413_v45 = vadd.f32 (!%p4305_p8), %v3381_v35, %v6826_v27  ;;  %v3414_v22 = vadd.f32 (!%p4305_p8), %v3382_v26, %v6828_v20  ;;  %v3415_v37 = vadd.f32 (!%p4305_p8), %v3383_v63, %v6830_v55  ;;  %v3384_v12 = vld [vmem:[#allocation4 + $0x18] sm:$0xff] (!%p4305_p8)  ;;  %v3385_v24 = vld [vmem:[#allocation4 + $0x20] sm:$0xff] (!%p4305_p8)  ;;  %v3386_v53 = vld [vmem:[#allocation4 + $0x28] sm:$0xff] (!%p4305_p8) }
 0x7dc   : > { %v3416_v42 = vadd.f32 (!%p4305_p8), %v3384_v12, %v6832_v11  ;;  %v3417_v54 = vadd.f32 (!%p4305_p8), %v3385_v24, %v6834_v2  ;;  %v3418_v50 = vadd.f32 (!%p4305_p8), %v3386_v53, %v6836_v17  ;;  %v3387_v59 = vld [vmem:[#allocation4 + $0x30] sm:$0xff] (!%p4305_p8)  ;;  %v3388_v19 = vld [vmem:[#allocation4 + $0x38] sm:$0xff] (!%p4305_p8)  ;;  %v3389_v31 = vld [vmem:[#allocation4 + $0x40] sm:$0xff] (!%p4305_p8) }
 0x7dd   : > { %3445 = vst [vmem:[#allocation4] sm:$0xff] (!%p4305_p8), %v3413_v45  ;;  %3446 = vst [vmem:[#allocation4 + $0x8] sm:$0xff] (!%p4305_p8), %v3414_v22  ;;  %v3419_v27 = vadd.f32 (!%p4305_p8), %v3387_v59, %v6838_v33  ;;  %v3420_v20 = vadd.f32 (!%p4305_p8), %v3388_v19, %v6840_v16  ;;  %v3421_v55 = vadd.f32 (!%p4305_p8), %v3389_v31, %v6842_v28  ;;  %v3390_v9 = vld [vmem:[#allocation4 + $0x48] sm:$0xff] (!%p4305_p8)  ;;  %v3391_v47 = vld [vmem:[#allocation4 + $0x50] sm:$0xff] (!%p4305_p8) }
 0x7de   : > { %3447 = vst [vmem:[#allocation4 + $0x10] sm:$0xff] (!%p4305_p8), %v3415_v37  ;;  %v3392_v57 = vld [vmem:[#allocation4 + $0x58] sm:$0xff] (!%p4305_p8)  ;;  %3448 = vst [vmem:[#allocation4 + $0x18] sm:$0xff] (!%p4305_p8), %v3416_v42  ;;  %v3422_v11 = vadd.f32 (!%p4305_p8), %v3390_v9, %v6844_v29  ;;  %v3423_v2 = vadd.f32 (!%p4305_p8), %v3391_v47, %v6846_v34  ;;  %v3393_v13 = vld [vmem:[#allocation4 + $0x60] sm:$0xff] (!%p4305_p8) }
 0x7df   : > { %3449 = vst [vmem:[#allocation4 + $0x20] sm:$0xff] (!%p4305_p8), %v3417_v54  ;;  %3450 = vst [vmem:[#allocation4 + $0x28] sm:$0xff] (!%p4305_p8), %v3418_v50  ;;  %v3424_v17 = vadd.f32 (!%p4305_p8), %v3392_v57, %v6848_v51  ;;  %v3394_v36 = vld [vmem:[#allocation4 + $0x68] sm:$0xff] (!%p4305_p8)  ;;  %v3395_v15 = vld [vmem:[#allocation4 + $0x70] sm:$0xff] (!%p4305_p8)  ;;  %v3425_v33 = vadd.f32 (!%p4305_p8), %v3393_v13, %v6850_v4 }
 0x7e0   : > { %3451 = vst [vmem:[#allocation4 + $0x30] sm:$0xff] (!%p4305_p8), %v3419_v27  ;;  %3452 = vst [vmem:[#allocation4 + $0x38] sm:$0xff] (!%p4305_p8), %v3420_v20  ;;  %v3426_v16 = vadd.f32 (!%p4305_p8), %v3394_v36, %v6852_v25  ;;  %v3427_v28 = vadd.f32 (!%p4305_p8), %v3395_v15, %v6854_v21  ;;  %v3396_v48 = vld [vmem:[#allocation4 + $0x78] sm:$0xff] (!%p4305_p8)  ;;  %v3397_v58 = vld [vmem:[#allocation4 + $0x80] sm:$0xff] (!%p4305_p8) }
 0x7e1   : > { %3453 = vst [vmem:[#allocation4 + $0x40] sm:$0xff] (!%p4305_p8), %v3421_v55  ;;  %v3398_v41 = vld [vmem:[#allocation4 + $0x88] sm:$0xff] (!%p4305_p8)  ;;  %3454 = vst [vmem:[#allocation4 + $0x48] sm:$0xff] (!%p4305_p8), %v3422_v11  ;;  %v3428_v29 = vadd.f32 (!%p4305_p8), %v3396_v48, %v6856_v39  ;;  %v3429_v34 = vadd.f32 (!%p4305_p8), %v3397_v58, %v6858_v1  ;;  %v3399_v30 = vld [vmem:[#allocation4 + $0x90] sm:$0xff] (!%p4305_p8) }
 0x7e2   : > { %3455 = vst [vmem:[#allocation4 + $0x50] sm:$0xff] %v3423_v2  ;;  %3456 = vst [vmem:[#allocation4 + $0x58] sm:$0xff] %v3424_v17  ;;  %v3430_v51 = vadd.f32 %v3398_v41, %v6860_v6  ;;  %v3400_v0 = vld [vmem:[#allocation4 + $0x98] sm:$0xff]  ;;  %v3401_v49 = vld [vmem:[#allocation4 + $0xa0] sm:$0xff]  ;;  %v3431_v4 = vadd.f32 %v3399_v30, %v6862_v7 }
 0x7e3   : > { %3457 = vst [vmem:[#allocation4 + $0x60] sm:$0xff] %v3425_v33  ;;  %3458 = vst [vmem:[#allocation4 + $0x68] sm:$0xff] %v3426_v16  ;;  %v3432_v25 = vadd.f32 %v3400_v0, %v6864_v8  ;;  %v3433_v21 = vadd.f32 %v3401_v49, %v6866_v56  ;;  %v3402_v23 = vld [vmem:[#allocation4 + $0xa8] sm:$0xff]  ;;  %v3403_v38 = vld [vmem:[#allocation4 + $0xb0] sm:$0xff] }
 0x7e4   : > { %3459 = vst [vmem:[#allocation4 + $0x70] sm:$0xff] %v3427_v28  ;;  %v3404_v14 = vld [vmem:[#allocation4 + $0xb8] sm:$0xff]  ;;  %3460 = vst [vmem:[#allocation4 + $0x78] sm:$0xff] %v3428_v29  ;;  %v3434_v39 = vadd.f32 %v3402_v23, %v6868_v40  ;;  %v3435_v1 = vadd.f32 %v3403_v38, %v6870_v43  ;;  %v3405_v5 = vld [vmem:[#allocation4 + $0xc0] sm:$0xff] }
 0x7e5   : > { %3461 = vst [vmem:[#allocation4 + $0x80] sm:$0xff] %v3429_v34  ;;  %3462 = vst [vmem:[#allocation4 + $0x88] sm:$0xff] %v3430_v51  ;;  %v3436_v6 = vadd.f32 %v3404_v14, %v6872_v52  ;;  %v3406_v18 = vld [vmem:[#allocation4 + $0xc8] sm:$0xff]  ;;  %v3407_v35 = vld [vmem:[#allocation4 + $0xd0] sm:$0xff]  ;;  %v3437_v7 = vadd.f32 %v3405_v5, %v6874_v60 }
 0x7e6   : > { %3463 = vst [vmem:[#allocation4 + $0x90] sm:$0xff] %v3431_v4  ;;  %3464 = vst [vmem:[#allocation4 + $0x98] sm:$0xff] %v3432_v25  ;;  %v3438_v8 = vadd.f32 %v3406_v18, %v6876_v44  ;;  %v3439_v56 = vadd.f32 %v3407_v35, %v6878_v32  ;;  %v3408_v26 = vld [vmem:[#allocation4 + $0xd8] sm:$0xff]  ;;  %v3409_v63 = vld [vmem:[#allocation4 + $0xe0] sm:$0xff] }
 0x7e7   : > { %3465 = vst [vmem:[#allocation4 + $0xa0] sm:$0xff] %v3433_v21  ;;  %v3410_v45 = vld [vmem:[#allocation4 + $0xe8] sm:$0xff]  ;;  %3466 = vst [vmem:[#allocation4 + $0xa8] sm:$0xff] %v3434_v39  ;;  %v3440_v40 = vadd.f32 %v3408_v26, %v6880_v61  ;;  %v3441_v43 = vadd.f32 %v3409_v63, %v6882_v10  ;;  %v3411_v22 = vld [vmem:[#allocation4 + $0xf0] sm:$0xff] }
 0x7e8   : > { %3467 = vst [vmem:[#allocation4 + $0xb0] sm:$0xff] %v3435_v1  ;;  %3468 = vst [vmem:[#allocation4 + $0xb8] sm:$0xff] %v3436_v6  ;;  %v3442_v52 = vadd.f32 %v3410_v45, %v6884_v3  ;;  %v3412_v37 = vld [vmem:[#allocation4 + $0xf8] sm:$0xff]  ;;  %v3443_v60 = vadd.f32 %v3411_v22, %v6886_v46 }
 0x7e9   : > { %3469 = vst [vmem:[#allocation4 + $0xc0] sm:$0xff] %v3437_v7  ;;  %3470 = vst [vmem:[#allocation4 + $0xc8] sm:$0xff] %v3438_v8  ;;  %v3444_v44 = vadd.f32 %v3412_v37, %v6888_v62 }
 0x7ea   : > { %3471 = vst [vmem:[#allocation4 + $0xd0] sm:$0xff] %v3439_v56  ;;  %3472 = vst [vmem:[#allocation4 + $0xd8] sm:$0xff] %v3440_v40 }
 0x7eb   : > { %3473 = vst [vmem:[#allocation4 + $0xe0] sm:$0xff] %v3441_v43  ;;  %3474 = vst [vmem:[#allocation4 + $0xe8] sm:$0xff] %v3442_v52 }
 0x7ec   : > { %3475 = vst [vmem:[#allocation4 + $0xf0] sm:$0xff] %v3443_v60  ;;  %3476 = vst [vmem:[#allocation4 + $0xf8] sm:$0xff] %v3444_v44 }
 0x7ed PF: > { %p4306_p4 = scmp.ne.s32.totalorder %s5617_s25, 3 }
 0x7ee   : > { %v6958_v61 = vld [vmem:[#allocation10 + $0x3] ss:$0 sm:$0xff] (!%p4306_p4)  ;;  %v3552_v24 = vld [vmem:[#allocation2 + $0x10] sm:$0xff] (!%p4306_p4)  ;;  %v3551_v42 = vld [vmem:[#allocation2 + $0x8] sm:$0xff] (!%p4306_p4) }
 0x7ef   : > { %3480 = sbr.rel (%p4306_p4) target bundleno = 2412 (0x96c), region = 84  ;;  %v3481_v32 = vld [vmem:[#allocation4] sm:$0xff] (!%p4306_p4)  ;;  %v3482_v46 = vld [vmem:[#allocation4 + $0x8] sm:$0xff] (!%p4306_p4)  ;;  %v3553_v19 = vld [vmem:[#allocation2 + $0x18] sm:$0xff] (!%p4306_p4) }
 0x7f0   : > { %v3550_v10 = vld [vmem:[#allocation2] sm:$0xff] (!%p4306_p4)  ;;  %v3518_v3 = vadd.f32 (!%p4306_p4), %v6958_v61, %v3481_v32  ;;  %v3483_v12 = vld [vmem:[#allocation4 + $0x10] sm:$0xff] (!%p4306_p4)  ;;  %v3519_v53 = vadd.f32 (!%p4306_p4), %v6958_v61, %v3482_v46  ;;  %v3484_v54 = vld [vmem:[#allocation4 + $0x18] sm:$0xff] (!%p4306_p4) }
 0x7f1   : > { %v3520_v62 = vadd.f32 (!%p4306_p4), %v6958_v61, %v3483_v12  ;;  %v3521_v59 = vadd.f32 (!%p4306_p4), %v6958_v61, %v3484_v54  ;;  %v3485_v31 = vld [vmem:[#allocation4 + $0x20] sm:$0xff] (!%p4306_p4)  ;;  %v3486_v27 = vld [vmem:[#allocation4 + $0x28] sm:$0xff] (!%p4306_p4)  ;;  %v3556_v16 = vld [vmem:[#allocation2 + $0x30] sm:$0xff] (!%p4306_p4) }
 0x7f2   : > { %v6963_v50 = vadd.f32 (!%p4306_p4), %v3550_v10, %v3518_v3  ;;  %v6969_v55 = vadd.f32 (!%p4306_p4), %v3551_v42, %v3519_v53  ;;  %v3522_v9 = vadd.f32 (!%p4306_p4), %v6958_v61, %v3485_v31  ;;  %v3554_v57 = vld [vmem:[#allocation2 + $0x20] sm:$0xff] (!%p4306_p4)  ;;  %v3523_v11 = vadd.f32 (!%p4306_p4), %v6958_v61, %v3486_v27  ;;  %v3487_v2 = vld [vmem:[#allocation4 + $0x30] sm:$0xff] (!%p4306_p4)  ;;  %v3555_v17 = vld [vmem:[#allocation2 + $0x28] sm:$0xff] (!%p4306_p4) }
 0x7f3   : > { %v6966_v20 = vadd.f32 (!%p4306_p4), %v3552_v24, %v3520_v62  ;;  %v6973_v47 = vadd.f32 (!%p4306_p4), %v3553_v19, %v3521_v59  ;;  %v3488_v13 = vld [vmem:[#allocation4 + $0x38] sm:$0xff] (!%p4306_p4)  ;;  %v3524_v15 = vadd.f32 (!%p4306_p4), %v6958_v61, %v3487_v2  ;;  %v3489_v48 = vld [vmem:[#allocation4 + $0x40] sm:$0xff] (!%p4306_p4)  ;;  %v3490_v41 = vld [vmem:[#allocation4 + $0x48] sm:$0xff] (!%p4306_p4) }
 0x7f4   : > { %3616 = vadd.xlane.f32.xlu0 (!%p4306_p4), %v6963_v50  ;;  %v6977_v36 = vadd.f32 (!%p4306_p4), %v3554_v57, %v3522_v9  ;;  %v6981_v33 = vadd.f32 (!%p4306_p4), %v3555_v17, %v3523_v11  ;;  %v3525_v28 = vadd.f32 (!%p4306_p4), %v6958_v61, %v3488_v13  ;;  %v3557_v58 = vld [vmem:[#allocation2 + $0x38] sm:$0xff] (!%p4306_p4)  ;;  %v3526_v34 = vadd.f32 (!%p4306_p4), %v6958_v61, %v3489_v48  ;;  %v3558_v30 = vld [vmem:[#allocation2 + $0x40] sm:$0xff] (!%p4306_p4)  ;;  %v3491_v49 = vld [vmem:[#allocation4 + $0x50] sm:$0xff] (!%p4306_p4) }
 0x7f5   : > { %3620 = vadd.xlane.f32.xlu1 (!%p4306_p4), %v6966_v20  ;;  %v6985_v29 = vadd.f32 (!%p4306_p4), %v3556_v16, %v3524_v15  ;;  %v3527_v0 = vadd.f32 (!%p4306_p4), %v6958_v61, %v3490_v41  ;;  %v3559_v4 = vld [vmem:[#allocation2 + $0x48] sm:$0xff] (!%p4306_p4)  ;;  %v3492_v25 = vld [vmem:[#allocation4 + $0x58] sm:$0xff] (!%p4306_p4)  ;;  %v3528_v23 = vadd.f32 (!%p4306_p4), %v6958_v61, %v3491_v49  ;;  %v3560_v14 = vld [vmem:[#allocation2 + $0x50] sm:$0xff] (!%p4306_p4) }
 0x7f6   : > { %v6989_v51 = vadd.f32 %v3557_v58, %v3525_v28  ;;  %v6993_v21 = vadd.f32 %v3558_v30, %v3526_v34  ;;  %v3529_v39 = vadd.f32 %v6958_v61, %v3492_v25  ;;  %v3493_v1 = vld [vmem:[#allocation4 + $0x60] sm:$0xff]  ;;  %v3561_v6 = vld [vmem:[#allocation2 + $0x58] sm:$0xff]  ;;  %v3494_v5 = vld [vmem:[#allocation4 + $0x68] sm:$0xff] }
 0x7f7   : > { %v6997_v38 = vadd.f32 %v3559_v4, %v3527_v0  ;;  %v7001_v18 = vadd.f32 %v3560_v14, %v3528_v23  ;;  %v3530_v35 = vadd.f32 %v6958_v61, %v3493_v1  ;;  %v3562_v8 = vld [vmem:[#allocation2 + $0x60] sm:$0xff]  ;;  %v3531_v56 = vadd.f32 %v6958_v61, %v3494_v5  ;;  %v3495_v26 = vld [vmem:[#allocation4 + $0x70] sm:$0xff]  ;;  %v3563_v63 = vld [vmem:[#allocation2 + $0x68] sm:$0xff] }
 0x7f8   : > { %3618 = vadd.xlane.f32.xlu0 %v6969_v55  ;;  %v7005_v7 = vadd.f32 %v3561_v6, %v3529_v39  ;;  %v3496_v45 = vld [vmem:[#allocation4 + $0x78] sm:$0xff]  ;;  %v3532_v43 = vadd.f32 %v6958_v61, %v3495_v26  ;;  %v3564_v22 = vld [vmem:[#allocation2 + $0x70] sm:$0xff]  ;;  %v3497_v60 = vld [vmem:[#allocation4 + $0x80] sm:$0xff] }
 0x7f9   : > { %3622 = vadd.xlane.f32.xlu1 %v6973_v47  ;;  %v7009_v40 = vadd.f32 %v3562_v8, %v3530_v35  ;;  %v7013_v52 = vadd.f32 %v3563_v63, %v3531_v56  ;;  %v3533_v37 = vadd.f32 %v6958_v61, %v3496_v45  ;;  %v3565_v44 = vld [vmem:[#allocation2 + $0x78] sm:$0xff]  ;;  %v3498_v32 = vld [vmem:[#allocation4 + $0x88] sm:$0xff]  ;;  %v3534_v3 = vadd.f32 %v6958_v61, %v3497_v60  ;;  %v3566_v24 = vld [vmem:[#allocation2 + $0x80] sm:$0xff] }
 0x7fa   : > { %v7017_v10 = vadd.f32 %v3564_v22, %v3532_v43  ;;  %v3535_v46 = vadd.f32 %v6958_v61, %v3498_v32  ;;  %v3499_v62 = vld [vmem:[#allocation4 + $0x90] sm:$0xff]  ;;  %v3567_v53 = vld [vmem:[#allocation2 + $0x88] sm:$0xff]  ;;  %v3500_v42 = vld [vmem:[#allocation4 + $0x98] sm:$0xff] }
 0x7fb   : > { %v7021_v12 = vadd.f32 %v3565_v44, %v3533_v37  ;;  %v7025_v54 = vadd.f32 %v3566_v24, %v3534_v3  ;;  %v3536_v59 = vadd.f32 %v6958_v61, %v3499_v62  ;;  %v3568_v31 = vld [vmem:[#allocation2 + $0x90] sm:$0xff]  ;;  %v3537_v27 = vadd.f32 %v6958_v61, %v3500_v42  ;;  %v3501_v9 = vld [vmem:[#allocation4 + $0xa0] sm:$0xff]  ;;  %v3569_v57 = vld [vmem:[#allocation2 + $0x98] sm:$0xff] }
 0x7fc   : > { %3624 = vadd.xlane.f32.xlu0 %v6977_v36  ;;  %v7029_v19 = vadd.f32 %v3567_v53, %v3535_v46  ;;  %v3502_v11 = vld [vmem:[#allocation4 + $0xa8] sm:$0xff]  ;;  %v3538_v17 = vadd.f32 %v6958_v61, %v3501_v9  ;;  %v3570_v15 = vld [vmem:[#allocation2 + $0xa0] sm:$0xff]  ;;  %v3503_v28 = vld [vmem:[#allocation4 + $0xb0] sm:$0xff] }
 0x7fd   : > { %3626 = vadd.xlane.f32.xlu1 %v6981_v33  ;;  %v7033_v2 = vadd.f32 %v3568_v31, %v3536_v59  ;;  %v7037_v13 = vadd.f32 %v3569_v57, %v3537_v27  ;;  %v3539_v16 = vadd.f32 %v6958_v61, %v3502_v11  ;;  %v3571_v48 = vld [vmem:[#allocation2 + $0xa8] sm:$0xff]  ;;  %v3504_v58 = vld [vmem:[#allocation4 + $0xb8] sm:$0xff]  ;;  %v3540_v34 = vadd.f32 %v6958_v61, %v3503_v28  ;;  %v3572_v0 = vld [vmem:[#allocation2 + $0xb0] sm:$0xff] }
 0x7fe   : > { %v7041_v41 = vadd.f32 %v3570_v15, %v3538_v17  ;;  %v3541_v49 = vadd.f32 %v6958_v61, %v3504_v58  ;;  %v3505_v4 = vld [vmem:[#allocation4 + $0xc0] sm:$0xff]  ;;  %v3573_v25 = vld [vmem:[#allocation2 + $0xb8] sm:$0xff]  ;;  %v3506_v23 = vld [vmem:[#allocation4 + $0xc8] sm:$0xff] }
 0x7ff   : > { %v7045_v30 = vadd.f32 %v3571_v48, %v3539_v16  ;;  %v7049_v14 = vadd.f32 %v3572_v0, %v3540_v34  ;;  %v3542_v39 = vadd.f32 %v6958_v61, %v3505_v4  ;;  %v3574_v6 = vld [vmem:[#allocation2 + $0xc0] sm:$0xff]  ;;  %v3543_v5 = vadd.f32 %v6958_v61, %v3506_v23  ;;  %v3507_v35 = vld [vmem:[#allocation4 + $0xd0] sm:$0xff]  ;;  %v3575_v8 = vld [vmem:[#allocation2 + $0xc8] sm:$0xff] }
 0x800   : > { %3628 = vadd.xlane.f32.xlu0 %v6985_v29  ;;  %v7053_v1 = vadd.f32 %v3573_v25, %v3541_v49  ;;  %v3508_v56 = vld [vmem:[#allocation4 + $0xd8] sm:$0xff]  ;;  %v3544_v63 = vadd.f32 %v6958_v61, %v3507_v35  ;;  %v3576_v43 = vld [vmem:[#allocation2 + $0xd0] sm:$0xff]  ;;  %v3509_v37 = vld [vmem:[#allocation4 + $0xe0] sm:$0xff] }
 0x801   : > { %3630 = vadd.xlane.f32.xlu1 %v6989_v51  ;;  %v7057_v26 = vadd.f32 %v3574_v6, %v3542_v39  ;;  %v7061_v45 = vadd.f32 %v3575_v8, %v3543_v5  ;;  %v3545_v22 = vadd.f32 %v6958_v61, %v3508_v56  ;;  %v3577_v60 = vld [vmem:[#allocation2 + $0xd8] sm:$0xff]  ;;  %v3510_v44 = vld [vmem:[#allocation4 + $0xe8] sm:$0xff]  ;;  %v3546_v3 = vadd.f32 %v6958_v61, %v3509_v37  ;;  %v3578_v46 = vld [vmem:[#allocation2 + $0xe0] sm:$0xff] }
 0x802   : > { %v7065_v32 = vadd.f32 %v3576_v43, %v3544_v63  ;;  %v3547_v62 = vadd.f32 %v6958_v61, %v3510_v44  ;;  %v3511_v53 = vld [vmem:[#allocation4 + $0xf0] sm:$0xff]  ;;  %v3579_v42 = vld [vmem:[#allocation2 + $0xe8] sm:$0xff]  ;;  %v3512_v59 = vld [vmem:[#allocation4 + $0xf8] sm:$0xff] }
 0x803   : > { %v7069_v24 = vadd.f32 %v3577_v60, %v3545_v22  ;;  %v7073_v31 = vadd.f32 %v3578_v46, %v3546_v3  ;;  %v3548_v27 = vadd.f32 %v6958_v61, %v3511_v53  ;;  %v3580_v57 = vld [vmem:[#allocation2 + $0xf0] sm:$0xff]  ;;  %v3549_v11 = vadd.f32 %v6958_v61, %v3512_v59  ;;  %v3581_v17 = vld [vmem:[#allocation2 + $0xf8] sm:$0xff] }
 0x804   : > { %3632 = vadd.xlane.f32.xlu0 %v6993_v21  ;;  %v7077_v9 = vadd.f32 %v3579_v42, %v3547_v62 }
 0x805   : > { %3634 = vadd.xlane.f32.xlu1 %v6997_v38  ;;  %v7081_v15 = vadd.f32 %v3580_v57, %v3548_v27  ;;  %v7084_v16 = vadd.f32 %v3581_v17, %v3549_v11 }
 0x808   : > { %3636 = vadd.xlane.f32.xlu0 %v7001_v18 }
 0x809   : > { %3638 = vadd.xlane.f32.xlu1 %v7005_v7 }
 0x80c   : > { %3640 = vadd.xlane.f32.xlu0 %v7009_v40 }
 0x80d   : > { %3642 = vadd.xlane.f32.xlu1 %v7013_v52 }
 0x810   : > { %3644 = vadd.xlane.f32.xlu0 %v7017_v10 }
 0x811   : > { %3646 = vadd.xlane.f32.xlu1 %v7021_v12 }
 0x814   : > { %3648 = vadd.xlane.f32.xlu0 %v7025_v54 }
 0x815   : > { %3650 = vadd.xlane.f32.xlu1 %v7029_v19 }
 0x818   : > { %3652 = vadd.xlane.f32.xlu0 %v7033_v2 }
 0x819   : > { %3654 = vadd.xlane.f32.xlu1 %v7037_v13 }
 0x81c   : > { %3656 = vadd.xlane.f32.xlu0 %v7041_v41 }
 0x81d   : > { %3658 = vadd.xlane.f32.xlu1 %v7045_v30 }
 0x820   : > { %3660 = vadd.xlane.f32.xlu0 %v7049_v14 }
 0x821   : > { %3662 = vadd.xlane.f32.xlu1 %v7053_v1 }
 0x824   : > { %3664 = vadd.xlane.f32.xlu0 %v7057_v26 }
 0x825   : > { %3666 = vadd.xlane.f32.xlu1 %v7061_v45 }
 0x828   : > { %3668 = vadd.xlane.f32.xlu0 %v7065_v32 }
 0x829   : > { %3670 = vadd.xlane.f32.xlu1 %v7069_v24 }
 0x82c   : > { %3672 = vadd.xlane.f32.xlu0 %v7073_v31 }
 0x82d   : > { %3674 = vadd.xlane.f32.xlu1 %v7077_v9 }
 0x830   : > { %3676 = vadd.xlane.f32.xlu0 %v7081_v15 }
 0x831   : > { %3678 = vadd.xlane.f32.xlu1 %v7084_v16 }
 0x881   : > { %v3617_v28 = vpop.xlane.xlu0 %3616 }
 0x882   : > { %v3681_v48 = vmul.f32 0.0078125, %v3617_v28  ;;  %v3621_v58 = vpop.xlane.xlu1 %3620 }
 0x883   : > { %v3683_v34 = vmul.f32 0.0078125, %v3621_v58 }
 0x884   : > { %v7089_v0 = vsub.f32 %v6963_v50, %v3681_v48 }
 0x885   : > { %v7092_v61 = vsub.f32 %v6966_v20, %v3683_v34  ;;  %v3619_v49 = vpop.xlane.xlu0 %3618 }
 0x886   : > { %v3682_v4 = vmul.f32 0.0078125, %v3619_v49  ;;  %v3745_v25 = vmul.f32 %v7089_v0, %v7089_v0  ;;  %v3623_v23 = vpop.xlane.xlu1 %3622 }
 0x887   : > { %v3684_v39 = vmul.f32 0.0078125, %v3623_v23  ;;  %v3747_v5 = vmul.f32 %v7092_v61, %v7092_v61 }
 0x888   : > { %v7097_v6 = vsub.f32 %v6969_v55, %v3682_v4  ;;  %3777 = vadd.xlane.f32.xlu0 %v3745_v25 }
 0x889   : > { %v7102_v50 = vsub.f32 %v6973_v47, %v3684_v39  ;;  %v3625_v35 = vpop.xlane.xlu0 %3624 }
 0x88a   : > { %v3685_v20 = vmul.f32 0.0078125, %v3625_v35  ;;  %v3746_v8 = vmul.f32 %v7097_v6, %v7097_v6  ;;  %v3627_v56 = vpop.xlane.xlu1 %3626 }
 0x88b   : > { %v3686_v63 = vmul.f32 0.0078125, %v3627_v56  ;;  %v3748_v55 = vmul.f32 %v7102_v50, %v7102_v50 }
 0x88c   : > { %v7107_v43 = vsub.f32 %v6977_v36, %v3685_v20  ;;  %3781 = vadd.xlane.f32.xlu0 %v3747_v5  ;;  %3779 = vadd.xlane.f32.xlu1 %v3746_v8 }
 0x88d   : > { %v7112_v22 = vsub.f32 %v6981_v33, %v3686_v63  ;;  %v3629_v47 = vpop.xlane.xlu0 %3628 }
 0x88e   : > { %v3687_v37 = vmul.f32 0.0078125, %v3629_v47  ;;  %v3749_v60 = vmul.f32 %v7107_v43, %v7107_v43  ;;  %v3631_v44 = vpop.xlane.xlu1 %3630 }
 0x88f   : > { %v3688_v3 = vmul.f32 0.0078125, %v3631_v44  ;;  %v3750_v36 = vmul.f32 %v7112_v22, %v7112_v22 }
 0x890   : > { %v7117_v46 = vsub.f32 %v6985_v29, %v3687_v37  ;;  %3783 = vadd.xlane.f32.xlu1 %v3748_v55  ;;  %3785 = vadd.xlane.f32.xlu0 %v3749_v60 }
 0x891   : > { %v7122_v62 = vsub.f32 %v6989_v51, %v3688_v3  ;;  %v3633_v33 = vpop.xlane.xlu0 %3632 }
 0x892   : > { %v3689_v53 = vmul.f32 0.0078125, %v3633_v33  ;;  %v3751_v42 = vmul.f32 %v7117_v46, %v7117_v46  ;;  %v3635_v59 = vpop.xlane.xlu1 %3634 }
 0x893   : > { %v3690_v27 = vmul.f32 0.0078125, %v3635_v59  ;;  %v3752_v29 = vmul.f32 %v7122_v62, %v7122_v62 }
 0x894   : > { %v7127_v57 = vsub.f32 %v6993_v21, %v3689_v53  ;;  %3787 = vadd.xlane.f32.xlu1 %v3750_v36  ;;  %3789 = vadd.xlane.f32.xlu0 %v3751_v42 }
 0x895   : > { %v7132_v11 = vsub.f32 %v6997_v38, %v3690_v27  ;;  %v3637_v51 = vpop.xlane.xlu0 %3636 }
 0x896   : > { %v3691_v17 = vmul.f32 0.0078125, %v3637_v51  ;;  %v3753_v28 = vmul.f32 %v7127_v57, %v7127_v57  ;;  %v3639_v48 = vpop.xlane.xlu1 %3638 }
 0x897   : > { %v3692_v58 = vmul.f32 0.0078125, %v3639_v48  ;;  %v3754_v21 = vmul.f32 %v7132_v11, %v7132_v11 }
 0x898   : > { %v7137_v34 = vsub.f32 %v7001_v18, %v3691_v17  ;;  %3791 = vadd.xlane.f32.xlu1 %v3752_v29  ;;  %3793 = vadd.xlane.f32.xlu0 %v3753_v28 }
 0x899   : > { %v7142_v49 = vsub.f32 %v7005_v7, %v3692_v58  ;;  %v3641_v38 = vpop.xlane.xlu0 %3640 }
 0x89a   : > { %v3693_v4 = vmul.f32 0.0078125, %v3641_v38  ;;  %v3755_v25 = vmul.f32 %v7137_v34, %v7137_v34  ;;  %v3643_v23 = vpop.xlane.xlu1 %3642 }
 0x89b   : > { %v3694_v39 = vmul.f32 0.0078125, %v3643_v23  ;;  %v3756_v18 = vmul.f32 %v7142_v49, %v7142_v49 }
 0x89c   : > { %v7147_v5 = vsub.f32 %v7009_v40, %v3693_v4  ;;  %3795 = vadd.xlane.f32.xlu1 %v3754_v21  ;;  %3797 = vadd.xlane.f32.xlu0 %v3755_v25 }
 0x89d   : > { %v7152_v35 = vsub.f32 %v7013_v52, %v3694_v39  ;;  %v3645_v7 = vpop.xlane.xlu0 %3644 }
 0x89e   : > { %v3695_v20 = vmul.f32 0.0078125, %v3645_v7  ;;  %v3757_v8 = vmul.f32 %v7147_v5, %v7147_v5  ;;  %v3647_v56 = vpop.xlane.xlu1 %3646 }
 0x89f   : > { %v3696_v63 = vmul.f32 0.0078125, %v3647_v56  ;;  %v3758_v40 = vmul.f32 %v7152_v35, %v7152_v35 }
 0x8a0   : > { %v7157_v55 = vsub.f32 %v7017_v10, %v3695_v20  ;;  %3799 = vadd.xlane.f32.xlu1 %v3756_v18  ;;  %3801 = vadd.xlane.f32.xlu0 %v3757_v8 }
 0x8a1   : > { %v7162_v47 = vsub.f32 %v7021_v12, %v3696_v63  ;;  %v3649_v52 = vpop.xlane.xlu0 %3648 }
 0x8a2   : > { %v3697_v37 = vmul.f32 0.0078125, %v3649_v52  ;;  %v3759_v60 = vmul.f32 %v7157_v55, %v7157_v55  ;;  %v3651_v44 = vpop.xlane.xlu1 %3650 }
 0x8a3   : > { %v3698_v3 = vmul.f32 0.0078125, %v3651_v44  ;;  %v3760_v10 = vmul.f32 %v7162_v47, %v7162_v47 }
 0x8a4   : > { %v7167_v36 = vsub.f32 %v7025_v54, %v3697_v37  ;;  %3803 = vadd.xlane.f32.xlu1 %v3758_v40  ;;  %3805 = vadd.xlane.f32.xlu0 %v3759_v60 }
 0x8a5   : > { %v7172_v33 = vsub.f32 %v7029_v19, %v3698_v3  ;;  %v3653_v12 = vpop.xlane.xlu0 %3652 }
 0x8a6   : > { %v3699_v53 = vmul.f32 0.0078125, %v3653_v12  ;;  %v3761_v42 = vmul.f32 %v7167_v36, %v7167_v36  ;;  %v3655_v59 = vpop.xlane.xlu1 %3654 }
 0x8a7   : > { %v3700_v27 = vmul.f32 0.0078125, %v3655_v59  ;;  %v3762_v54 = vmul.f32 %v7172_v33, %v7172_v33 }
 0x8a8   : > { %v7177_v29 = vsub.f32 %v7033_v2, %v3699_v53  ;;  %3807 = vadd.xlane.f32.xlu1 %v3760_v10  ;;  %3809 = vadd.xlane.f32.xlu0 %v3761_v42 }
 0x8a9   : > { %v7182_v51 = vsub.f32 %v7037_v13, %v3700_v27  ;;  %v3657_v19 = vpop.xlane.xlu0 %3656 }
 0x8aa   : > { %v3701_v17 = vmul.f32 0.0078125, %v3657_v19  ;;  %v3763_v28 = vmul.f32 %v7177_v29, %v7177_v29  ;;  %v3659_v48 = vpop.xlane.xlu1 %3658 }
 0x8ab   : > { %v3702_v58 = vmul.f32 0.0078125, %v3659_v48  ;;  %v3764_v2 = vmul.f32 %v7182_v51, %v7182_v51 }
 0x8ac   : > { %v7187_v21 = vsub.f32 %v7041_v41, %v3701_v17  ;;  %3811 = vadd.xlane.f32.xlu1 %v3762_v54  ;;  %3813 = vadd.xlane.f32.xlu0 %v3763_v28 }
 0x8ad   : > { %v7192_v38 = vsub.f32 %v7045_v30, %v3702_v58  ;;  %v3661_v13 = vpop.xlane.xlu0 %3660 }
 0x8ae   : > { %v3703_v4 = vmul.f32 0.0078125, %v3661_v13  ;;  %v3765_v25 = vmul.f32 %v7187_v21, %v7187_v21  ;;  %v3663_v23 = vpop.xlane.xlu1 %3662 }
 0x8af   : > { %v3704_v39 = vmul.f32 0.0078125, %v3663_v23  ;;  %v3766_v41 = vmul.f32 %v7192_v38, %v7192_v38 }
 0x8b0   : > { %v7197_v18 = vsub.f32 %v7049_v14, %v3703_v4  ;;  %3815 = vadd.xlane.f32.xlu1 %v3764_v2  ;;  %3817 = vadd.xlane.f32.xlu0 %v3765_v25 }
 0x8b1   : > { %v7202_v7 = vsub.f32 %v7053_v1, %v3704_v39  ;;  %v3665_v30 = vpop.xlane.xlu0 %3664 }
 0x8b2   : > { %v3705_v20 = vmul.f32 0.0078125, %v3665_v30  ;;  %v3767_v8 = vmul.f32 %v7197_v18, %v7197_v18  ;;  %v3667_v56 = vpop.xlane.xlu1 %3666 }
 0x8b3   : > { %v3706_v63 = vmul.f32 0.0078125, %v3667_v56  ;;  %v3768_v14 = vmul.f32 %v7202_v7, %v7202_v7 }
 0x8b4   : > { %v7207_v40 = vsub.f32 %v7057_v26, %v3705_v20  ;;  %3819 = vadd.xlane.f32.xlu1 %v3766_v41  ;;  %3821 = vadd.xlane.f32.xlu0 %v3767_v8 }
 0x8b5   : > { %v7212_v52 = vsub.f32 %v7061_v45, %v3706_v63  ;;  %v3669_v1 = vpop.xlane.xlu0 %3668 }
 0x8b6   : > { %v3707_v37 = vmul.f32 0.0078125, %v3669_v1  ;;  %v3769_v60 = vmul.f32 %v7207_v40, %v7207_v40  ;;  %v3671_v44 = vpop.xlane.xlu1 %3670 }
 0x8b7   : > { %v3708_v3 = vmul.f32 0.0078125, %v3671_v44  ;;  %v3770_v26 = vmul.f32 %v7212_v52, %v7212_v52 }
 0x8b8   : > { %v7217_v10 = vsub.f32 %v7065_v32, %v3707_v37  ;;  %3823 = vadd.xlane.f32.xlu1 %v3768_v14  ;;  %3825 = vadd.xlane.f32.xlu0 %v3769_v60 }
 0x8b9   : > { %v7222_v12 = vsub.f32 %v7069_v24, %v3708_v3  ;;  %v3673_v45 = vpop.xlane.xlu0 %3672 }
 0x8ba   : > { %v3709_v53 = vmul.f32 0.0078125, %v3673_v45  ;;  %v3771_v42 = vmul.f32 %v7217_v10, %v7217_v10  ;;  %v3675_v59 = vpop.xlane.xlu1 %3674 }
 0x8bb   : > { %v3710_v27 = vmul.f32 0.0078125, %v3675_v59  ;;  %v3772_v32 = vmul.f32 %v7222_v12, %v7222_v12 }
 0x8bc   : > { %v7227_v54 = vsub.f32 %v7073_v31, %v3709_v53  ;;  %3827 = vadd.xlane.f32.xlu1 %v3770_v26  ;;  %3829 = vadd.xlane.f32.xlu0 %v3771_v42  ;;  %v7248_v42 = vld [vmem:[#allocation10 + $0x4] ss:$0 sm:$0xff] }
 0x8bd   : > { %v7232_v19 = vsub.f32 %v7077_v9, %v3710_v27  ;;  %v3677_v24 = vpop.xlane.xlu0 %3676 }
 0x8be   : > { %v3711_v17 = vmul.f32 0.0078125, %v3677_v24  ;;  %v3773_v28 = vmul.f32 %v7227_v54, %v7227_v54  ;;  %v3679_v48 = vpop.xlane.xlu1 %3678 }
 0x8bf   : > { %v3712_v58 = vmul.f32 0.0078125, %v3679_v48  ;;  %v3774_v31 = vmul.f32 %v7232_v19, %v7232_v19 }
 0x8c0   : > { %v7237_v2 = vsub.f32 %v7081_v15, %v3711_v17  ;;  %3831 = vadd.xlane.f32.xlu1 %v3772_v32  ;;  %3833 = vadd.xlane.f32.xlu0 %v3773_v28  ;;  %v7251_v28 = vld [vmem:[#allocation10 + $0x5] ss:$0 sm:$0xff] }
 0x8c1   : > { %v7242_v13 = vsub.f32 %v7084_v16, %v3712_v58 }
 0x8c2   : > { %v3775_v9 = vmul.f32 %v7237_v2, %v7237_v2 }
 0x8c3   : > { %v3776_v4 = vmul.f32 %v7242_v13, %v7242_v13 }
 0x8c4   : > { %3835 = vadd.xlane.f32.xlu1 %v3774_v31  ;;  %3837 = vadd.xlane.f32.xlu0 %v3775_v9 }
 0x8c8   : > { %3839 = vadd.xlane.f32.xlu1 %v3776_v4 }
 0x915   : > { %v3778_v25 = vpop.xlane.xlu0 %3777 }
 0x916   : > { %v3841_v15 = vmul.f32 0.0078125, %v3778_v25 }
 0x918   : > { %v3873_v23 = vadd.f32 1e-05, %v3841_v15 }
 0x919   : > { %v3780_v39 = vpop.xlane.xlu1 %3779  ;;  %v3782_v41 = vpop.xlane.xlu0 %3781 }
 0x91a   : > { %5230 = vrsqrt.f32 %v3873_v23  ;;  %v3842_v30 = vmul.f32 0.0078125, %v3780_v39  ;;  %v3843_v20 = vmul.f32 0.0078125, %v3782_v41 }
 0x91c   : > { %v3874_v8 = vadd.f32 1e-05, %v3842_v30  ;;  %v3875_v16 = vadd.f32 1e-05, %v3843_v20 }
 0x91d   : > { %v3784_v56 = vpop.xlane.xlu1 %3783  ;;  %v3786_v63 = vpop.xlane.xlu0 %3785 }
 0x91e   : > { %5232 = vrsqrt.f32 %v3874_v8  ;;  %v3844_v14 = vmul.f32 0.0078125, %v3784_v56  ;;  %v3845_v1 = vmul.f32 0.0078125, %v3786_v63 }
 0x91f   : > { %5234 = vrsqrt.f32 %v3875_v16 }
 0x920   : > { %v3876_v37 = vadd.f32 1e-05, %v3844_v14  ;;  %v3877_v60 = vadd.f32 1e-05, %v3845_v1 }
 0x921   : > { %v3788_v44 = vpop.xlane.xlu1 %3787  ;;  %v3790_v3 = vpop.xlane.xlu0 %3789 }
 0x922   : > { %5236 = vrsqrt.f32 %v3876_v37  ;;  %v3846_v26 = vmul.f32 0.0078125, %v3788_v44  ;;  %v3847_v45 = vmul.f32 0.0078125, %v3790_v3 }
 0x923   : > { %5238 = vrsqrt.f32 %v3877_v60 }
 0x924   : > { %v5231_v53 = vpop.eup %5230  ;;  %v3878_v59 = vadd.f32 1e-05, %v3846_v26  ;;  %v3879_v27 = vadd.f32 1e-05, %v3847_v45 }
 0x925   : > { %v3937_v32 = vmul.f32 %v5231_v53, %v7089_v0  ;;  %v3792_v24 = vpop.xlane.xlu1 %3791  ;;  %v3794_v17 = vpop.xlane.xlu0 %3793 }
 0x926   : > { %5240 = vrsqrt.f32 %v3878_v59  ;;  %v3848_v48 = vmul.f32 0.0078125, %v3792_v24  ;;  %v3849_v58 = vmul.f32 0.0078125, %v3794_v17 }
 0x927   : > { %v3973_v31 = vmul.f32 %v7248_v42, %v3937_v32  ;;  %5242 = vrsqrt.f32 %v3879_v27 }
 0x928   : > { %v5233_v9 = vpop.eup %5232  ;;  %v3880_v4 = vadd.f32 1e-05, %v3848_v48  ;;  %v3881_v25 = vadd.f32 1e-05, %v3849_v58 }
 0x929   : > { %v5235_v15 = vpop.eup %5234  ;;  %v4009_v23 = vadd.f32 %v7251_v28, %v3973_v31  ;;  %v3938_v39 = vmul.f32 %v5233_v9, %v7097_v6  ;;  %v3796_v41 = vpop.xlane.xlu1 %3795 }
 0x92a   : > { %v3798_v0 = vpop.xlane.xlu0 %3797  ;;  %v3939_v30 = vmul.f32 %v5235_v15, %v7092_v61  ;;  %5244 = vrsqrt.f32 %v3880_v4  ;;  %v3850_v20 = vmul.f32 0.0078125, %v3796_v41 }
 0x92b   : > { %v3851_v8 = vmul.f32 0.0078125, %v3798_v0  ;;  %4041 = vst [vmem:[#allocation16] sm:$0xff] %v4009_v23  ;;  %v3974_v16 = vmul.f32 %v7248_v42, %v3938_v39  ;;  %5246 = vrsqrt.f32 %v3881_v25 }
 0x92c   : > { %v5237_v56 = vpop.eup %5236  ;;  %v3975_v63 = vmul.f32 %v7248_v42, %v3939_v30  ;;  %v3882_v14 = vadd.f32 1e-05, %v3850_v20 }
 0x92d   : > { %v3883_v1 = vadd.f32 1e-05, %v3851_v8  ;;  %v5239_v37 = vpop.eup %5238  ;;  %v4010_v60 = vadd.f32 %v7251_v28, %v3974_v16  ;;  %v3940_v6 = vmul.f32 %v5237_v56, %v7102_v50  ;;  %v3800_v44 = vpop.xlane.xlu1 %3799 }
 0x92e   : > { %v3802_v3 = vpop.xlane.xlu0 %3801  ;;  %v4011_v61 = vadd.f32 %v7251_v28, %v3975_v63  ;;  %v3941_v26 = vmul.f32 %v5239_v37, %v7107_v43  ;;  %5248 = vrsqrt.f32 %v3882_v14  ;;  %v3852_v45 = vmul.f32 0.0078125, %v3800_v44 }
 0x92f   : > { %4042 = vst [vmem:[#allocation16 + $0x8] sm:$0xff] %v4010_v60  ;;  %v3976_v53 = vmul.f32 %v7248_v42, %v3940_v6  ;;  %5250 = vrsqrt.f32 %v3883_v1  ;;  %v3853_v59 = vmul.f32 0.0078125, %v3802_v3 }
 0x930   : > { %v5241_v27 = vpop.eup %5240  ;;  %4043 = vst [vmem:[#allocation16 + $0x10] sm:$0xff] %v4011_v61  ;;  %v3977_v32 = vmul.f32 %v7248_v42, %v3941_v26  ;;  %v3884_v24 = vadd.f32 1e-05, %v3852_v45 }
 0x931   : > { %v5243_v17 = vpop.eup %5242  ;;  %v4012_v50 = vadd.f32 %v7251_v28, %v3976_v53  ;;  %v3942_v48 = vmul.f32 %v5241_v27, %v7112_v22  ;;  %v3885_v58 = vadd.f32 1e-05, %v3853_v59  ;;  %v3804_v31 = vpop.xlane.xlu1 %3803 }
 0x932   : > { %v3806_v43 = vpop.xlane.xlu0 %3805  ;;  %v4013_v9 = vadd.f32 %v7251_v28, %v3977_v32  ;;  %v3943_v4 = vmul.f32 %v5243_v17, %v7117_v46  ;;  %5252 = vrsqrt.f32 %v3884_v24  ;;  %v3854_v25 = vmul.f32 0.0078125, %v3804_v31 }
 0x933   : > { %4044 = vst [vmem:[#allocation16 + $0x18] sm:$0xff] %v4012_v50  ;;  %v3978_v15 = vmul.f32 %v7248_v42, %v3942_v48  ;;  %5254 = vrsqrt.f32 %v3885_v58  ;;  %v3855_v23 = vmul.f32 0.0078125, %v3806_v43 }
 0x934   : > { %v5245_v39 = vpop.eup %5244  ;;  %4045 = vst [vmem:[#allocation16 + $0x20] sm:$0xff] %v4013_v9  ;;  %v3979_v41 = vmul.f32 %v7248_v42, %v3943_v4  ;;  %v3886_v0 = vadd.f32 1e-05, %v3854_v25 }
 0x935   : > { %v5247_v22 = vpop.eup %5246  ;;  %v4014_v30 = vadd.f32 %v7251_v28, %v3978_v15  ;;  %v3944_v20 = vmul.f32 %v5245_v39, %v7122_v62  ;;  %v3887_v8 = vadd.f32 1e-05, %v3855_v23  ;;  %v3808_v16 = vpop.xlane.xlu1 %3807 }
 0x936   : > { %v3810_v46 = vpop.xlane.xlu0 %3809  ;;  %v4015_v56 = vadd.f32 %v7251_v28, %v3979_v41  ;;  %v3945_v63 = vmul.f32 %v5247_v22, %v7127_v57  ;;  %5256 = vrsqrt.f32 %v3886_v0  ;;  %v3856_v14 = vmul.f32 0.0078125, %v3808_v16 }
 0x937   : > { %4046 = vst [vmem:[#allocation16 + $0x28] sm:$0xff] %v4014_v30  ;;  %v3980_v1 = vmul.f32 %v7248_v42, %v3944_v20  ;;  %5258 = vrsqrt.f32 %v3887_v8  ;;  %v3857_v37 = vmul.f32 0.0078125, %v3810_v46 }
 0x938   : > { %v5249_v60 = vpop.eup %5248  ;;  %4047 = vst [vmem:[#allocation16 + $0x30] sm:$0xff] %v4015_v56  ;;  %v3981_v6 = vmul.f32 %v7248_v42, %v3945_v63  ;;  %v3888_v44 = vadd.f32 1e-05, %v3856_v14 }
 0x939   : > { %v5251_v62 = vpop.eup %5250  ;;  %v4016_v3 = vadd.f32 %v7251_v28, %v3980_v1  ;;  %v3946_v61 = vmul.f32 %v5249_v60, %v7132_v11  ;;  %v3889_v26 = vadd.f32 1e-05, %v3857_v37  ;;  %v3812_v45 = vpop.xlane.xlu1 %3811 }
 0x93a   : > { %v3814_v57 = vpop.xlane.xlu0 %3813  ;;  %v4017_v53 = vadd.f32 %v7251_v28, %v3981_v6  ;;  %v3947_v59 = vmul.f32 %v5251_v62, %v7137_v34  ;;  %5260 = vrsqrt.f32 %v3888_v44  ;;  %v3858_v27 = vmul.f32 0.0078125, %v3812_v45 }
 0x93b   : > { %4048 = vst [vmem:[#allocation16 + $0x38] sm:$0xff] %v4016_v3  ;;  %v3982_v32 = vmul.f32 %v7248_v42, %v3946_v61  ;;  %5262 = vrsqrt.f32 %v3889_v26  ;;  %v3859_v24 = vmul.f32 0.0078125, %v3814_v57 }
 0x93c   : > { %v5253_v17 = vpop.eup %5252  ;;  %4049 = vst [vmem:[#allocation16 + $0x40] sm:$0xff] %v4017_v53  ;;  %v3983_v50 = vmul.f32 %v7248_v42, %v3947_v59  ;;  %v3890_v48 = vadd.f32 1e-05, %v3858_v27 }
 0x93d   : > { %v5255_v11 = vpop.eup %5254  ;;  %v4018_v58 = vadd.f32 %v7251_v28, %v3982_v32  ;;  %v3948_v31 = vmul.f32 %v5253_v17, %v7142_v49  ;;  %v3891_v43 = vadd.f32 1e-05, %v3859_v24  ;;  %v3816_v9 = vpop.xlane.xlu1 %3815 }
 0x93e   : > { %v3818_v34 = vpop.xlane.xlu0 %3817  ;;  %v4019_v4 = vadd.f32 %v7251_v28, %v3983_v50  ;;  %v3949_v25 = vmul.f32 %v5255_v11, %v7147_v5  ;;  %5264 = vrsqrt.f32 %v3890_v48  ;;  %v3860_v15 = vmul.f32 0.0078125, %v3816_v9 }
 0x93f   : > { %4050 = vst [vmem:[#allocation16 + $0x48] sm:$0xff] %v4018_v58  ;;  %v3984_v23 = vmul.f32 %v7248_v42, %v3948_v31  ;;  %5266 = vrsqrt.f32 %v3891_v43  ;;  %v3861_v39 = vmul.f32 0.0078125, %v3818_v34 }
 0x940   : > { %v5257_v41 = vpop.eup %5256  ;;  %4051 = vst [vmem:[#allocation16 + $0x50] sm:$0xff] %v4019_v4  ;;  %v3985_v0 = vmul.f32 %v7248_v42, %v3949_v25  ;;  %v3892_v22 = vadd.f32 1e-05, %v3860_v15 }
 0x941   : > { %v5259_v49 = vpop.eup %5258  ;;  %v4020_v30 = vadd.f32 %v7251_v28, %v3984_v23  ;;  %v3950_v20 = vmul.f32 %v5257_v41, %v7152_v35  ;;  %v3893_v8 = vadd.f32 1e-05, %v3861_v39  ;;  %v3820_v16 = vpop.xlane.xlu1 %3819 }
 0x942   : > { %v3822_v5 = vpop.xlane.xlu0 %3821  ;;  %v4021_v46 = vadd.f32 %v7251_v28, %v3985_v0  ;;  %v3951_v56 = vmul.f32 %v5259_v49, %v7157_v55  ;;  %5268 = vrsqrt.f32 %v3892_v22  ;;  %v3862_v63 = vmul.f32 0.0078125, %v3820_v16 }
 0x943   : > { %4052 = vst [vmem:[#allocation16 + $0x58] sm:$0xff] %v4020_v30  ;;  %v3986_v14 = vmul.f32 %v7248_v42, %v3950_v20  ;;  %5270 = vrsqrt.f32 %v3893_v8  ;;  %v3863_v1 = vmul.f32 0.0078125, %v3822_v5 }
 0x944   : > { %v5261_v37 = vpop.eup %5260  ;;  %4053 = vst [vmem:[#allocation16 + $0x60] sm:$0xff] %v4021_v46  ;;  %v3987_v60 = vmul.f32 %v7248_v42, %v3951_v56  ;;  %v3894_v6 = vadd.f32 1e-05, %v3862_v63 }
 0x945   : > { %v5263_v35 = vpop.eup %5262  ;;  %v4022_v44 = vadd.f32 %v7251_v28, %v3986_v14  ;;  %v3952_v62 = vmul.f32 %v5261_v37, %v7162_v47  ;;  %v3895_v3 = vadd.f32 1e-05, %v3863_v1  ;;  %v3824_v61 = vpop.xlane.xlu1 %3823 }
 0x946   : > { %v3826_v55 = vpop.xlane.xlu0 %3825  ;;  %v4023_v26 = vadd.f32 %v7251_v28, %v3987_v60  ;;  %v3953_v45 = vmul.f32 %v5263_v35, %v7167_v36  ;;  %5272 = vrsqrt.f32 %v3894_v6  ;;  %v3864_v57 = vmul.f32 0.0078125, %v3824_v61 }
 0x947   : > { %4054 = vst [vmem:[#allocation16 + $0x68] sm:$0xff] %v4022_v44  ;;  %v3988_v53 = vmul.f32 %v7248_v42, %v3952_v62  ;;  %5274 = vrsqrt.f32 %v3895_v3  ;;  %v3865_v59 = vmul.f32 0.0078125, %v3826_v55 }
 0x948   : > { %v5265_v27 = vpop.eup %5264  ;;  %4055 = vst [vmem:[#allocation16 + $0x70] sm:$0xff] %v4023_v26  ;;  %v3989_v32 = vmul.f32 %v7248_v42, %v3953_v45  ;;  %v3896_v24 = vadd.f32 1e-05, %v3864_v57 }
 0x949   : > { %v5267_v47 = vpop.eup %5266  ;;  %v4024_v17 = vadd.f32 %v7251_v28, %v3988_v53  ;;  %v3954_v50 = vmul.f32 %v5265_v27, %v7172_v33  ;;  %v3897_v48 = vadd.f32 1e-05, %v3865_v59  ;;  %v3828_v11 = vpop.xlane.xlu1 %3827 }
 0x94a   : > { %v3830_v36 = vpop.xlane.xlu0 %3829  ;;  %v4025_v58 = vadd.f32 %v7251_v28, %v3989_v32  ;;  %v3955_v31 = vmul.f32 %v5267_v47, %v7177_v29  ;;  %5276 = vrsqrt.f32 %v3896_v24  ;;  %v3866_v43 = vmul.f32 0.0078125, %v3828_v11 }
 0x94b   : > { %4056 = vst [vmem:[#allocation16 + $0x78] sm:$0xff] %v4024_v17  ;;  %v3990_v9 = vmul.f32 %v7248_v42, %v3954_v50  ;;  %5278 = vrsqrt.f32 %v3897_v48  ;;  %v3867_v34 = vmul.f32 0.0078125, %v3830_v36 }
 0x94c   : > { %v5269_v4 = vpop.eup %5268  ;;  %4057 = vst [vmem:[#allocation16 + $0x80] sm:$0xff] %v4025_v58  ;;  %v3991_v25 = vmul.f32 %v7248_v42, %v3955_v31  ;;  %v3898_v15 = vadd.f32 1e-05, %v3866_v43 }
 0x94d   : > { %v5271_v33 = vpop.eup %5270  ;;  %v4026_v23 = vadd.f32 %v7251_v28, %v3990_v9  ;;  %v3956_v39 = vmul.f32 %v5269_v4, %v7182_v51  ;;  %v3899_v41 = vadd.f32 1e-05, %v3867_v34  ;;  %v3832_v0 = vpop.xlane.xlu1 %3831 }
 0x94e   : > { %v3834_v29 = vpop.xlane.xlu0 %3833  ;;  %v4027_v22 = vadd.f32 %v7251_v28, %v3991_v25  ;;  %v3957_v49 = vmul.f32 %v5271_v33, %v7187_v21  ;;  %5280 = vrsqrt.f32 %v3898_v15  ;;  %v3868_v30 = vmul.f32 0.0078125, %v3832_v0 }
 0x94f   : > { %4058 = vst [vmem:[#allocation16 + $0x88] sm:$0xff] %v4026_v23  ;;  %v3992_v20 = vmul.f32 %v7248_v42, %v3956_v39  ;;  %5282 = vrsqrt.f32 %v3899_v41  ;;  %v3869_v8 = vmul.f32 0.0078125, %v3834_v29 }
 0x950   : > { %v5273_v16 = vpop.eup %5272  ;;  %4059 = vst [vmem:[#allocation16 + $0x90] sm:$0xff] %v4027_v22  ;;  %v3993_v5 = vmul.f32 %v7248_v42, %v3957_v49  ;;  %v3900_v46 = vadd.f32 1e-05, %v3868_v30 }
 0x951   : > { %v5275_v51 = vpop.eup %5274  ;;  %v4028_v56 = vadd.f32 %v7251_v28, %v3992_v20  ;;  %v3958_v63 = vmul.f32 %v5273_v16, %v7192_v38  ;;  %v3901_v14 = vadd.f32 1e-05, %v3869_v8  ;;  %v3836_v1 = vpop.xlane.xlu1 %3835 }
 0x952   : > { %v3838_v21 = vpop.xlane.xlu0 %3837  ;;  %v4029_v37 = vadd.f32 %v7251_v28, %v3993_v5  ;;  %v3959_v60 = vmul.f32 %v5275_v51, %v7197_v18  ;;  %5284 = vrsqrt.f32 %v3900_v46  ;;  %v3870_v6 = vmul.f32 0.0078125, %v3836_v1 }
 0x953   : > { %4060 = vst [vmem:[#allocation16 + $0x98] sm:$0xff] %v4028_v56  ;;  %v3994_v35 = vmul.f32 %v7248_v42, %v3958_v63  ;;  %5286 = vrsqrt.f32 %v3901_v14  ;;  %v3871_v44 = vmul.f32 0.0078125, %v3838_v21 }
 0x954   : > { %v5277_v62 = vpop.eup %5276  ;;  %4061 = vst [vmem:[#allocation16 + $0xa0] sm:$0xff] %v4029_v37  ;;  %v3995_v3 = vmul.f32 %v7248_v42, %v3959_v60  ;;  %v3902_v61 = vadd.f32 1e-05, %v3870_v6 }
 0x955   : > { %v5279_v38 = vpop.eup %5278  ;;  %v4030_v55 = vadd.f32 %v7251_v28, %v3994_v35  ;;  %v3960_v26 = vmul.f32 %v5277_v62, %v7202_v7  ;;  %v3903_v45 = vadd.f32 1e-05, %v3871_v44  ;;  %v3840_v57 = vpop.xlane.xlu1 %3839 }
 0x956   : > { %v4031_v18 = vadd.f32 %v7251_v28, %v3995_v3  ;;  %v3961_v53 = vmul.f32 %v5279_v38, %v7207_v40  ;;  %5288 = vrsqrt.f32 %v3902_v61  ;;  %v3872_v59 = vmul.f32 0.0078125, %v3840_v57 }
 0x957   : > { %4062 = vst [vmem:[#allocation16 + $0xa8] sm:$0xff] %v4030_v55  ;;  %v3996_v27 = vmul.f32 %v7248_v42, %v3960_v26  ;;  %5290 = vrsqrt.f32 %v3903_v45 }
 0x958   : > { %v5281_v32 = vpop.eup %5280  ;;  %4063 = vst [vmem:[#allocation16 + $0xb0] sm:$0xff] %v4031_v18  ;;  %v3997_v24 = vmul.f32 %v7248_v42, %v3961_v53  ;;  %v3904_v47 = vadd.f32 1e-05, %v3872_v59 }
 0x959   : > { %v5283_v17 = vpop.eup %5282  ;;  %v4032_v7 = vadd.f32 %v7251_v28, %v3996_v27  ;;  %v3962_v50 = vmul.f32 %v5281_v32, %v7212_v52 }
 0x95a   : > { %v4033_v48 = vadd.f32 %v7251_v28, %v3997_v24  ;;  %v3963_v40 = vmul.f32 %v5283_v17, %v7217_v10  ;;  %5292 = vrsqrt.f32 %v3904_v47 }
 0x95b   : > { %4064 = vst [vmem:[#allocation16 + $0xb8] sm:$0xff] %v4032_v7  ;;  %v3998_v11 = vmul.f32 %v7248_v42, %v3962_v50 }
 0x95c   : > { %v5285_v36 = vpop.eup %5284  ;;  %4065 = vst [vmem:[#allocation16 + $0xc0] sm:$0xff] %v4033_v48  ;;  %v3999_v58 = vmul.f32 %v7248_v42, %v3963_v40 }
 0x95d   : > { %v5287_v31 = vpop.eup %5286  ;;  %v4034_v43 = vadd.f32 %v7251_v28, %v3998_v11  ;;  %v3964_v9 = vmul.f32 %v5285_v36, %v7222_v12 }
 0x95e   : > { %v4035_v34 = vadd.f32 %v7251_v28, %v3999_v58  ;;  %v3965_v52 = vmul.f32 %v5287_v31, %v7227_v54 }
 0x95f   : > { %4066 = vst [vmem:[#allocation16 + $0xc8] sm:$0xff] %v4034_v43  ;;  %v4000_v10 = vmul.f32 %v7248_v42, %v3964_v9 }
 0x960   : > { %v5289_v4 = vpop.eup %5288  ;;  %4067 = vst [vmem:[#allocation16 + $0xd0] sm:$0xff] %v4035_v34  ;;  %v4001_v25 = vmul.f32 %v7248_v42, %v3965_v52 }
 0x961   : > { %v5291_v15 = vpop.eup %5290  ;;  %v4036_v33 = vadd.f32 %v7251_v28, %v4000_v10  ;;  %v3966_v23 = vmul.f32 %v5289_v4, %v7232_v19 }
 0x962   : > { %v4037_v39 = vadd.f32 %v7251_v28, %v4001_v25  ;;  %v3967_v12 = vmul.f32 %v5291_v15, %v7237_v2 }
 0x963   : > { %4068 = vst [vmem:[#allocation16 + $0xd8] sm:$0xff] %v4036_v33  ;;  %v4002_v41 = vmul.f32 %v7248_v42, %v3966_v23 }
 0x964   : > { %v5293_v54 = vpop.eup %5292  ;;  %4069 = vst [vmem:[#allocation16 + $0xe0] sm:$0xff] %v4037_v39  ;;  %v4003_v0 = vmul.f32 %v7248_v42, %v3967_v12 }
 0x965   : > { %v4038_v29 = vadd.f32 %v7251_v28, %v4002_v41  ;;  %v3968_v22 = vmul.f32 %v5293_v54, %v7242_v13 }
 0x966   : > { %v4039_v49 = vadd.f32 %v7251_v28, %v4003_v0 }
 0x967   : > { %4070 = vst [vmem:[#allocation16 + $0xe8] sm:$0xff] %v4038_v29  ;;  %v4004_v19 = vmul.f32 %v7248_v42, %v3968_v22 }
 0x968   : > { %4071 = vst [vmem:[#allocation16 + $0xf0] sm:$0xff] %v4039_v49 }
 0x969   : > { %v4040_v30 = vadd.f32 %v7251_v28, %v4004_v19 }
 0x96b   : > { %4072 = vst [vmem:[#allocation16 + $0xf8] sm:$0xff] %v4040_v30 }
 0x96c PF: > { %p4870_p0 = scmp.eq.s32.totalorder %s5617_s25, 3  ;;  %s5560_s7 = smov [#allocation16]  }
 0x96d   : > { %s4079_s20 = sshll.u32 %s5560_s7, 4  ;;  %s4080_s20 = int_to_ptr.vmem [resolvable:$true] %s4079_s20 }
 0x96e   : > { %s5468_s15 = scalar_lea.vmem %s4080_s20, 4096  ;;  %p5475_p2 = scmp.lt.s32.totalorder %s4080_s20, %s4080_s20 }
 0x96f   : > { %p5469_p6 = scmp.ne.s32.totalorder %s4080_s20, %s5468_s15  ;;  %p5476_p7 = scmp.lt.s32.totalorder %s5468_s15, %s5468_s15 }
 0x971   : > { %p5470_p11 = pnand %p5469_p6, %p4870_p0  ;;  %p5477_p5 = por %p5476_p7, %p5475_p2 }
 0x973   : > { %p5471_p13 = pneg %p5470_p11 }
 0x975   : > { %p5478_p10 = pnand %p5477_p5, %p5471_p13 }
 0x977   : > { %5481 = shalt.err (!%p5478_p10)
}
 0x978   : > { %s7440_s23 = sld [smem:[#allocation27_spill]] }
 0x97e   : > { %s7441_s3 = smov %s7440_s23  ;;  %s5482_s24 = scalar_lea.hbm %s7440_s23, 4096 }
 0x97f   : > { %p5483_p1 = scmp.ne.s32.totalorder %s7441_s3, %s5482_s24  ;;  %p5488_p9 = scmp.lt.u32.totalorder %s5482_s24, %s7441_s3 }
 0x981   : > { %p5484_p12 = pnand %p5483_p1, %p4870_p0 }
 0x983   : > { %p5485_p3 = pneg %p5484_p12 }
 0x985   : > { %p5490_p8 = pnand %p5488_p9, %p5485_p3 }
 0x987   : > { %5493 = shalt.err (!%p5490_p8)
}
 0x988   : > { %s5561_s27 = smov 128   ;;  %s5562_s28 = smov 8  }
 0x989   : > { %4840 = dma.vmem_to_hbm [thread:$0]  (%p4870_p0), %s4080_s20, 4096, %s7441_s3, [#allocation7], %s5561_s27, %s5561_s27, %s5562_s28  }
 0x98a   : > { %5527 = dma.done.wait (%p4870_p0), [#allocation7], 4096  }
 0x98b   : > { %5529 = vsyncadd (%p4870_p0), [#allocation7], 4294963200 }
 0x98c PF: > { %s7442_s24 = sld [smem:[#allocation23_spill]]  ;;  %s7443_s13 = sld [smem:[#allocation22_spill]] }
 0x98d   : > { %s7444_s23 = sld [smem:[#allocation24_spill]]  ;;  %s7445_s21 = smov %s5536_s22 }
 0x992   : > { %p22_p4 = scmp.ge.s32.totalorder %s7442_s24, 6   ;;  %s7446_s22 = smov %s7443_s13 }
 0x994   :  { %24 = sbr.rel (!%p22_p4) target bundleno = 12 (0xc), region = 134 }
 0x99b   :  { %4095 = vsyncpa [#allocation6], 1 }
 0x99c   :  { %4097 = vsyncpa [#allocation6 + $0x1], 1 }
 0x99d   :  { %4098 = vsyncpa [#allocation9], 1 }
 0x99e   :  { %4099 = vsyncpa [#allocation12], 1 }
 0x99f   :  { %4101 = vsyncpa [#allocation12 + $0x1], 1 }
 0x9a0   :  { %4102 = vsyncpa [#allocation15], 1 }
 0x9a1   :  { %4104 = vsyncpa [#allocation15 + $0x1], 1 }
 0x9a2   :  { %4105 = vsyncpa [#allocation7], 1 }
 0x9a3   :  { %4107 = vsyncpa [#allocation7 + $0x1], 1 }

</bundles_post_ra>
